<compile_context>
chip_gen: v6e
topology: v6e:2x2x1
jax: 0.10.0
libtpu: 0.0.40
codegen_flags: <defaults>
</compile_context>

<pallas_src>
import functools

import jax
import jax.numpy as jnp
from jax import lax
from jax.experimental import pallas as pl
from jax.experimental.pallas import tpu as pltpu


def _round_up(x, m):
    return (x + m - 1) // m * m


# ------------------------- fused multi-layer LSTM + FC -------------------------
def _fused_lstm_fc_kernel(*refs, n_layers, seq_len, hp, b_tile, matmul_dtype, unroll):
    """Fused L-layer LSTM + linear head, everything VMEM-resident.

    refs layout:
      [0]                  x_ref     (T, Btile, Dxp)   time-major, zero-padded input
      [1 .. 3L]            per layer: w_x (Cin, 4*Hp), w_h (Hp, 4*Hp), b (1, 4*Hp)
      [3L+1], [3L+2]       wfc (Hp, Op), bfc (1, Op)
      [3L+3]               out_ref   (Btile, Op)
      [3L+4 .. 3L+7]       scratch: seq (T, Btile, Hp), proj (T, Btile, 4*Hp),
                                     h (Btile, Hp), c (Btile, Hp)
    """
    x_ref = refs[0]
    layer_refs = refs[1:1 + 3 * n_layers]
    wfc_ref = refs[1 + 3 * n_layers]
    bfc_ref = refs[2 + 3 * n_layers]
    out_ref = refs[3 + 3 * n_layers]
    seq_ref, proj_ref, h_ref, c_ref = refs[4 + 3 * n_layers:]

    for layer in range(n_layers):
        w_x = layer_refs[3 * layer][...]        # (Cin, 4*Hp), gate order i|f|g|o
        w_h = layer_refs[3 * layer + 1][...]    # (Hp, 4*Hp)
        b = layer_refs[3 * layer + 2][...]      # (1, 4*Hp), f32

        in_ref = x_ref if layer == 0 else seq_ref
        cin = in_ref.shape[-1]

        # --- Hoisted input projection: one big (T*Btile, Cin) @ (Cin, 4Hp) matmul.
        # seq_ref is fully read here BEFORE the time loop overwrites it below.
        in2d = in_ref[...].reshape(seq_len * b_tile, cin).astype(matmul_dtype)
        proj = jnp.dot(in2d, w_x, preferred_element_type=jnp.float32) + b
        proj_ref[...] = proj.reshape(seq_len, b_tile, 4 * hp)

        h_ref[...] = jnp.zeros_like(h_ref)
        c_ref[...] = jnp.zeros_like(c_ref)

        last_layer = layer == n_layers - 1

        def step(t, carry, w_h=w_h, last_layer=last_layer):
            h = h_ref[...]                                    # (Btile, Hp), f32 carry
            gates = proj_ref[t] + jnp.dot(h.astype(matmul_dtype), w_h,
                                          preferred_element_type=jnp.float32)
            i_g = jax.nn.sigmoid(gates[:, 0 * hp:1 * hp])     # lane-aligned 128-wide slices
            f_g = jax.nn.sigmoid(gates[:, 1 * hp:2 * hp])
            g_g = jnp.tanh(gates[:, 2 * hp:3 * hp])
            o_g = jax.nn.sigmoid(gates[:, 3 * hp:4 * hp])
            c_new = f_g * c_ref[...] + i_g * g_g
            h_new = o_g * jnp.tanh(c_new)
            c_ref[...] = c_new
            h_ref[...] = h_new
            if not last_layer:                 # next layer needs the full hidden sequence
                seq_ref[t] = h_new
            return carry

        lax.fori_loop(0, seq_len, step, 0, unroll=unroll)

    # FC head on the last-step hidden state; (Btile, Op) lane-dense store.
    out_ref[...] = (
        jnp.dot(h_ref[...].astype(matmul_dtype), wfc_ref[...],
                preferred_element_type=jnp.float32)
        + bfc_ref[...]
    )


def lstm_classifier_forward(x_btd, lstm_params, fc_w, fc_b, hidden_dim,
                            matmul_dtype=jnp.float32):
    """x_btd: (B, T, D) batch-first (like the PyTorch module). Returns (B, O)."""
    B, T, D = x_btd.shape
    H = hidden_dim
    O = fc_w.shape[0]
    L = len(lstm_params)

    Bp = _round_up(max(B, 8), 8)        # f32 sublane quantum
    Hp = _round_up(max(H, 128), 128)    # per-gate lane block
    Dxp = _round_up(max(D, 128), 128)   # lane-aligned input features
    Op = _round_up(max(O, 128), 128)    # lane-dense logits store

    # Batch tiling: a single tile at toy size; >=16 padded rows -> 2 tiles so the
    # "parallel" grid axis can shard across both TensorCores on v7x.
    if Bp <= 8:
        b_tile = Bp
    else:
        b_tile = _round_up(pl.cdiv(Bp, 2), 8)
        Bp = 2 * b_tile
    n_btiles = Bp // b_tile

    # Time-major + zero-pad (single copy; padded lanes/rows are zeros).
    x_tbd = jnp.transpose(x_btd, (1, 0, 2)).astype(jnp.float32)
    x_p = jnp.zeros((T, Bp, Dxp), jnp.float32).at[:, :B, :D].set(x_tbd)

    args = [x_p]
    for layer, (w_ih, w_hh, b_ih, b_hh) in enumerate(lstm_params):
        d_in = w_ih.shape[1]
        cin = Dxp if layer == 0 else Hp
        wih_t = jnp.transpose(w_ih).astype(jnp.float32)       # (d_in, 4H), gates i|f|g|o
        whh_t = jnp.transpose(w_hh).astype(jnp.float32)       # (H, 4H)
        bias = (b_ih + b_hh).reshape(1, 4 * H).astype(jnp.float32)
        w_x = jnp.zeros((cin, 4 * Hp), jnp.float32)
        w_h = jnp.zeros((Hp, 4 * Hp), jnp.float32)
        b_p = jnp.zeros((1, 4 * Hp), jnp.float32)
        for g in range(4):
            w_x = w_x.at[:d_in, g * Hp:g * Hp + H].set(wih_t[:, g * H:(g + 1) * H])
            w_h = w_h.at[:H, g * Hp:g * Hp + H].set(whh_t[:, g * H:(g + 1) * H])
            b_p = b_p.at[:, g * Hp:g * Hp + H].set(bias[:, g * H:(g + 1) * H])
        args += [w_x.astype(matmul_dtype), w_h.astype(matmul_dtype), b_p]

    wfc_p = jnp.zeros((Hp, Op), jnp.float32).at[:H, :O].set(jnp.transpose(fc_w))
    bfc_p = jnp.zeros((1, Op), jnp.float32).at[:, :O].set(fc_b.reshape(1, O))
    args += [wfc_p.astype(matmul_dtype), bfc_p]

    # Explicit scoped-VMEM budget: resident args + scratch + out, with headroom.
    arg_bytes = sum(int(a.size) * a.dtype.itemsize for a in args)
    scratch_bytes = 4 * (T * b_tile * Hp + T * b_tile * 4 * Hp + 2 * b_tile * Hp)
    out_bytes = 4 * Bp * Op
    vmem_limit = int(min(64 * 1024 * 1024,
                         max(2 * (arg_bytes + scratch_bytes + out_bytes),
                             8 * 1024 * 1024)))

    unroll = True if T <= 16 else 8   # bounded unroll once T grows (vreg pressure)

    kernel = functools.partial(
        _fused_lstm_fc_kernel, n_layers=L, seq_len=T, hp=Hp,
        b_tile=b_tile, matmul_dtype=matmul_dtype, unroll=unroll)

    def _const_spec(arr):
        nd = arr.ndim
        return pl.BlockSpec(arr.shape, lambda b, _nd=nd: (0,) * _nd)

    in_specs = [pl.BlockSpec((T, b_tile, Dxp), lambda b: (0, b, 0))]
    in_specs += [_const_spec(a) for a in args[1:]]

    out_p = pl.pallas_call(
        kernel,
        out_shape=jax.ShapeDtypeStruct((Bp, Op), jnp.float32),
        grid=(n_btiles,),
        in_specs=in_specs,
        out_specs=pl.BlockSpec((b_tile, Op), lambda b: (b, 0)),
        scratch_shapes=[
            pltpu.VMEM((T, b_tile, Hp), jnp.float32),       # inter-layer hidden sequence
            pltpu.VMEM((T, b_tile, 4 * Hp), jnp.float32),   # hoisted input projection
            pltpu.VMEM((b_tile, Hp), jnp.float32),          # h carry
            pltpu.VMEM((b_tile, Hp), jnp.float32),          # c carry
        ],
        compiler_params=pltpu.CompilerParams(
            dimension_semantics=("parallel",),
            vmem_limit_bytes=vmem_limit),
    )(*args)

    return out_p[:B, :O]


# --------------------------------- Reference -----------------------------------
def lstm_classifier_ref(x_btd, lstm_params, fc_w, fc_b, hidden_dim):
    B, T, _ = x_btd.shape
    H = hidden_dim
    seq = x_btd
    for (w_ih, w_hh, b_ih, b_hh) in lstm_params:
        h = jnp.zeros((B, H), jnp.float32)
        c = jnp.zeros((B, H), jnp.float32)
        ys = []
        for t in range(T):
            gates = seq[:, t, :] @ w_ih.T + h @ w_hh.T + b_ih + b_hh
            i = jax.nn.sigmoid(gates[:, 0 * H:1 * H])
            f = jax.nn.sigmoid(gates[:, 1 * H:2 * H])
            g = jnp.tanh(gates[:, 2 * H:3 * H])
            o = jax.nn.sigmoid(gates[:, 3 * H:4 * H])
            c = f * c + i * g
            h = o * jnp.tanh(c)
            ys.append(h)
        seq = jnp.stack(ys, axis=1)
    return seq[:, -1, :] @ fc_w.T + fc_b


# ----------------------------------- Main --------------------------------------
if __name__ == "__main__":
    B, T = 2, 8
    input_dim, hidden_dim, layer_dim, output_dim = 16, 32, 2, 4

    key = jax.random.PRNGKey(0)
    bound = 1.0 / jnp.sqrt(hidden_dim)

    lstm_params = []
    for layer in range(layer_dim):
        d_in = input_dim if layer == 0 else hidden_dim
        key, k1, k2, k3, k4 = jax.random.split(key, 5)
        w_ih = jax.random.uniform(k1, (4 * hidden_dim, d_in), jnp.float32, -bound, bound)
        w_hh = jax.random.uniform(k2, (4 * hidden_dim, hidden_dim), jnp.float32, -bound, bound)
        b_ih = jax.random.uniform(k3, (4 * hidden_dim,), jnp.float32, -bound, bound)
        b_hh = jax.random.uniform(k4, (4 * hidden_dim,), jnp.float32, -bound, bound)
        lstm_params.append((w_ih, w_hh, b_ih, b_hh))

    key, kw, kb, kx = jax.random.split(key, 4)
    fc_w = jax.random.uniform(kw, (output_dim, hidden_dim), jnp.float32, -bound, bound)
    fc_b = jax.random.uniform(kb, (output_dim,), jnp.float32, -bound, bound)

    x = jax.random.normal(kx, (B, T, input_dim), jnp.float32)
    ref = lstm_classifier_ref(x, lstm_params, fc_w, fc_b, hidden_dim)

    # f32 matmul path: tight parity with the f32 PyTorch-style reference.
    out = lstm_classifier_forward(x, lstm_params, fc_w, fc_b, hidden_dim,
                                  matmul_dtype=jnp.float32)
    out = jax.block_until_ready(out)
    assert out.shape == (B, output_dim), out.shape
    assert jnp.allclose(out, ref, atol=1e-3, rtol=1e-3), (out, ref)

    # bf16 matmul path (production setting): bf16 dot operands, f32 accumulation
    # and f32 h/c carries / nonlinearities -> looser parity vs. f32 reference.
    out_bf16 = lstm_classifier_forward(x, lstm_params, fc_w, fc_b, hidden_dim,
                                       matmul_dtype=jnp.bfloat16)
    out_bf16 = jax.block_until_ready(out_bf16)
    assert jnp.allclose(out_bf16, ref, atol=5e-2, rtol=5e-2), (out_bf16, ref)

    print("KERNEL_OK")
</pallas_src>

<mosaic_0001>
module attributes {stable_mosaic.version = 11 : i64} {
  func.func @_fused_lstm_fc_kernel(%arg0: i32, %arg1: memref<8x8x128xf32, #tpu.memory_space<vmem>>, %arg2: memref<128x512xf32, #tpu.memory_space<vmem>>, %arg3: memref<128x512xf32, #tpu.memory_space<vmem>>, %arg4: memref<1x512xf32, #tpu.memory_space<vmem>>, %arg5: memref<128x512xf32, #tpu.memory_space<vmem>>, %arg6: memref<128x512xf32, #tpu.memory_space<vmem>>, %arg7: memref<1x512xf32, #tpu.memory_space<vmem>>, %arg8: memref<128x128xf32, #tpu.memory_space<vmem>>, %arg9: memref<1x128xf32, #tpu.memory_space<vmem>>, %arg10: memref<8x128xf32, #tpu.memory_space<vmem>>, %arg11: memref<8x8x128xf32, #tpu.memory_space<vmem>>, %arg12: memref<8x8x512xf32, #tpu.memory_space<vmem>>, %arg13: memref<8x128xf32, #tpu.memory_space<vmem>>, %arg14: memref<8x128xf32, #tpu.memory_space<vmem>>) attributes {dimension_semantics = [#tpu.dimension_semantics<parallel>], iteration_bounds = array<i64: 1>, scalar_prefetch = 0 : i64, scratch_operands = 4 : i64, tpu.core_type = #tpu.core_type<tc>, window_params = [{transform_indices = @transform_0, window_bounds = array<i64: 8, 8, 128>}, {pipeline_mode = #tpu.pipeline_mode<synchronous>, transform_indices = @transform_1, window_bounds = array<i64: 128, 512>}, {pipeline_mode = #tpu.pipeline_mode<synchronous>, transform_indices = @transform_2, window_bounds = array<i64: 128, 512>}, {pipeline_mode = #tpu.pipeline_mode<synchronous>, transform_indices = @transform_3, window_bounds = array<i64: 1, 512>}, {pipeline_mode = #tpu.pipeline_mode<synchronous>, transform_indices = @transform_4, window_bounds = array<i64: 128, 512>}, {pipeline_mode = #tpu.pipeline_mode<synchronous>, transform_indices = @transform_5, window_bounds = array<i64: 128, 512>}, {pipeline_mode = #tpu.pipeline_mode<synchronous>, transform_indices = @transform_6, window_bounds = array<i64: 1, 512>}, {pipeline_mode = #tpu.pipeline_mode<synchronous>, transform_indices = @transform_7, window_bounds = array<i64: 128, 128>}, {pipeline_mode = #tpu.pipeline_mode<synchronous>, transform_indices = @transform_8, window_bounds = array<i64: 1, 128>}, {transform_indices = @transform_9, window_bounds = array<i64: 8, 128>}]} {
    %c0 = arith.constant 0 : index
    %c0_0 = arith.constant 0 : index
    %0 = vector.load %arg2[%c0, %c0_0] : memref<128x512xf32, #tpu.memory_space<vmem>>, vector<128x512xf32>
    %c0_1 = arith.constant 0 : index
    %c0_2 = arith.constant 0 : index
    %1 = vector.load %arg3[%c0_1, %c0_2] : memref<128x512xf32, #tpu.memory_space<vmem>>, vector<128x512xf32>
    %c0_3 = arith.constant 0 : index
    %c0_4 = arith.constant 0 : index
    %2 = vector.load %arg4[%c0_3, %c0_4] : memref<1x512xf32, #tpu.memory_space<vmem>>, vector<1x512xf32>
    %c0_5 = arith.constant 0 : index
    %c0_6 = arith.constant 0 : index
    %c0_7 = arith.constant 0 : index
    %3 = vector.load %arg1[%c0_5, %c0_6, %c0_7] : memref<8x8x128xf32, #tpu.memory_space<vmem>>, vector<8x8x128xf32>
    %4 = vector.shape_cast %3 : vector<8x8x128xf32> to vector<64x128xf32>
    %cst = arith.constant dense<0.000000e+00> : vector<64x512xf32>
    %5 = tpu.matmul %4, %0, %cst {dimension_numbers = #tpu.dot_dimension_numbers<[1], [0], [0], [1], [0, 0, 1, 1], [], []>} : vector<64x128xf32>, vector<128x512xf32>, vector<64x512xf32> -> vector<64x512xf32>
    %6 = vector.broadcast %2 : vector<1x512xf32> to vector<64x512xf32>
    %7 = arith.addf %5, %6 : vector<64x512xf32>
    %8 = vector.shape_cast %7 : vector<64x512xf32> to vector<8x8x512xf32>
    %c0_8 = arith.constant 0 : index
    %c0_9 = arith.constant 0 : index
    %c0_10 = arith.constant 0 : index
    %9 = vector.load %arg12[%c0_8, %c0_9, %c0_10] : memref<8x8x512xf32, #tpu.memory_space<vmem>>, vector<8x8x512xf32>
    tpu.vector_store %arg12[%c0_8, %c0_9, %c0_10], %8 {strides = array<i32>} : memref<8x8x512xf32, #tpu.memory_space<vmem>>, vector<8x8x512xf32>,
    %cst_11 = arith.constant 0.000000e+00 : f32
    %10 = vector.broadcast %cst_11 : f32 to vector<8x128xf32>
    %c0_12 = arith.constant 0 : index
    %c0_13 = arith.constant 0 : index
    %11 = vector.load %arg13[%c0_12, %c0_13] : memref<8x128xf32, #tpu.memory_space<vmem>>, vector<8x128xf32>
    tpu.vector_store %arg13[%c0_12, %c0_13], %10 {strides = array<i32>} : memref<8x128xf32, #tpu.memory_space<vmem>>, vector<8x128xf32>,
    %cst_14 = arith.constant 0.000000e+00 : f32
    %12 = vector.broadcast %cst_14 : f32 to vector<8x128xf32>
    %c0_15 = arith.constant 0 : index
    %c0_16 = arith.constant 0 : index
    %13 = vector.load %arg14[%c0_15, %c0_16] : memref<8x128xf32, #tpu.memory_space<vmem>>, vector<8x128xf32>
    tpu.vector_store %arg14[%c0_15, %c0_16], %12 {strides = array<i32>} : memref<8x128xf32, #tpu.memory_space<vmem>>, vector<8x128xf32>,
    %c0_i32 = arith.constant 0 : i32
    %c0_17 = arith.constant 0 : index
    %c0_18 = arith.constant 0 : index
    %14 = vector.load %arg13[%c0_17, %c0_18] : memref<8x128xf32, #tpu.memory_space<vmem>>, vector<8x128xf32>
    %15 = arith.index_cast %c0_i32 : i32 to index
    %c0_19 = arith.constant 0 : index
    %c0_20 = arith.constant 0 : index
    %16 = vector.load %arg12[%15, %c0_19, %c0_20] : memref<8x8x512xf32, #tpu.memory_space<vmem>>, vector<1x8x512xf32>
    %17 = vector.shape_cast %16 : vector<1x8x512xf32> to vector<8x512xf32>
    %cst_21 = arith.constant dense<0.000000e+00> : vector<8x512xf32>
    %18 = tpu.matmul %14, %1, %cst_21 {dimension_numbers = #tpu.dot_dimension_numbers<[1], [0], [0], [1], [0, 0, 1, 1], [], []>} : vector<8x128xf32>, vector<128x512xf32>, vector<8x512xf32> -> vector<8x512xf32>
    %19 = arith.addf %17, %18 : vector<8x512xf32>
    %20 = vector.extract_strided_slice %19 {offsets = [0, 0], sizes = [8, 128], strides = [1, 1]} : vector<8x512xf32> to vector<8x128xf32>
    %21 = arith.negf %20 : vector<8x128xf32>
    %22 = math.exp %21 : vector<8x128xf32>
    %cst_22 = arith.constant 1.000000e+00 : f32
    %23 = vector.broadcast %cst_22 : f32 to vector<8x128xf32>
    %24 = arith.addf %23, %22 : vector<8x128xf32>
    %25 = arith.divf %23, %24 : vector<8x128xf32>
    %26 = vector.extract_strided_slice %19 {offsets = [0, 128], sizes = [8, 128], strides = [1, 1]} : vector<8x512xf32> to vector<8x128xf32>
    %27 = arith.negf %26 : vector<8x128xf32>
    %28 = math.exp %27 : vector<8x128xf32>
    %cst_23 = arith.constant 1.000000e+00 : f32
    %29 = vector.broadcast %cst_23 : f32 to vector<8x128xf32>
    %30 = arith.addf %29, %28 : vector<8x128xf32>
    %31 = arith.divf %29, %30 : vector<8x128xf32>
    %32 = vector.extract_strided_slice %19 {offsets = [0, 256], sizes = [8, 128], strides = [1, 1]} : vector<8x512xf32> to vector<8x128xf32>
    %33 = math.tanh %32 : vector<8x128xf32>
    %34 = vector.extract_strided_slice %19 {offsets = [0, 384], sizes = [8, 128], strides = [1, 1]} : vector<8x512xf32> to vector<8x128xf32>
    %35 = arith.negf %34 : vector<8x128xf32>
    %36 = math.exp %35 : vector<8x128xf32>
    %cst_24 = arith.constant 1.000000e+00 : f32
    %37 = vector.broadcast %cst_24 : f32 to vector<8x128xf32>
    %38 = arith.addf %37, %36 : vector<8x128xf32>
    %39 = arith.divf %37, %38 : vector<8x128xf32>
    %c0_25 = arith.constant 0 : index
    %c0_26 = arith.constant 0 : index
    %40 = vector.load %arg14[%c0_25, %c0_26] : memref<8x128xf32, #tpu.memory_space<vmem>>, vector<8x128xf32>
    %41 = arith.mulf %31, %40 : vector<8x128xf32>
    %42 = arith.mulf %25, %33 : vector<8x128xf32>
    %43 = arith.addf %41, %42 : vector<8x128xf32>
    %44 = math.tanh %43 : vector<8x128xf32>
    %45 = arith.mulf %39, %44 : vector<8x128xf32>
    %c0_27 = arith.constant 0 : index
    %c0_28 = arith.constant 0 : index
    %46 = vector.load %arg14[%c0_27, %c0_28] : memref<8x128xf32, #tpu.memory_space<vmem>>, vector<8x128xf32>
    tpu.vector_store %arg14[%c0_27, %c0_28], %43 {strides = array<i32>} : memref<8x128xf32, #tpu.memory_space<vmem>>, vector<8x128xf32>,
    %c0_29 = arith.constant 0 : index
    %c0_30 = arith.constant 0 : index
    %47 = vector.load %arg13[%c0_29, %c0_30] : memref<8x128xf32, #tpu.memory_space<vmem>>, vector<8x128xf32>
    tpu.vector_store %arg13[%c0_29, %c0_30], %45 {strides = array<i32>} : memref<8x128xf32, #tpu.memory_space<vmem>>, vector<8x128xf32>,
    %48 = arith.index_cast %c0_i32 : i32 to index
    %c0_31 = arith.constant 0 : index
    %c0_32 = arith.constant 0 : index
    %49 = vector.load %arg11[%48, %c0_31, %c0_32] : memref<8x8x128xf32, #tpu.memory_space<vmem>>, vector<1x8x128xf32>
    %50 = vector.shape_cast %49 : vector<1x8x128xf32> to vector<8x128xf32>
    %51 = vector.shape_cast %45 : vector<8x128xf32> to vector<1x8x128xf32>
    tpu.vector_store %arg11[%48, %c0_31, %c0_32], %51 {strides = array<i32>} : memref<8x8x128xf32, #tpu.memory_space<vmem>>, vector<1x8x128xf32>,
    %c1_i32 = arith.constant 1 : i32
    %c0_33 = arith.constant 0 : index
    %c0_34 = arith.constant 0 : index
    %52 = vector.load %arg13[%c0_33, %c0_34] : memref<8x128xf32, #tpu.memory_space<vmem>>, vector<8x128xf32>
    %53 = arith.index_cast %c1_i32 : i32 to index
    %c0_35 = arith.constant 0 : index
    %c0_36 = arith.constant 0 : index
    %54 = vector.load %arg12[%53, %c0_35, %c0_36] : memref<8x8x512xf32, #tpu.memory_space<vmem>>, vector<1x8x512xf32>
    %55 = vector.shape_cast %54 : vector<1x8x512xf32> to vector<8x512xf32>
    %cst_37 = arith.constant dense<0.000000e+00> : vector<8x512xf32>
    %56 = tpu.matmul %52, %1, %cst_37 {dimension_numbers = #tpu.dot_dimension_numbers<[1], [0], [0], [1], [0, 0, 1, 1], [], []>} : vector<8x128xf32>, vector<128x512xf32>, vector<8x512xf32> -> vector<8x512xf32>
    %57 = arith.addf %55, %56 : vector<8x512xf32>
    %58 = vector.extract_strided_slice %57 {offsets = [0, 0], sizes = [8, 128], strides = [1, 1]} : vector<8x512xf32> to vector<8x128xf32>
    %59 = arith.negf %58 : vector<8x128xf32>
    %60 = math.exp %59 : vector<8x128xf32>
    %cst_38 = arith.constant 1.000000e+00 : f32
    %61 = vector.broadcast %cst_38 : f32 to vector<8x128xf32>
    %62 = arith.addf %61, %60 : vector<8x128xf32>
    %63 = arith.divf %61, %62 : vector<8x128xf32>
    %64 = vector.extract_strided_slice %57 {offsets = [0, 128], sizes = [8, 128], strides = [1, 1]} : vector<8x512xf32> to vector<8x128xf32>
    %65 = arith.negf %64 : vector<8x128xf32>
    %66 = math.exp %65 : vector<8x128xf32>
    %cst_39 = arith.constant 1.000000e+00 : f32
    %67 = vector.broadcast %cst_39 : f32 to vector<8x128xf32>
    %68 = arith.addf %67, %66 : vector<8x128xf32>
    %69 = arith.divf %67, %68 : vector<8x128xf32>
    %70 = vector.extract_strided_slice %57 {offsets = [0, 256], sizes = [8, 128], strides = [1, 1]} : vector<8x512xf32> to vector<8x128xf32>
    %71 = math.tanh %70 : vector<8x128xf32>
    %72 = vector.extract_strided_slice %57 {offsets = [0, 384], sizes = [8, 128], strides = [1, 1]} : vector<8x512xf32> to vector<8x128xf32>
    %73 = arith.negf %72 : vector<8x128xf32>
    %74 = math.exp %73 : vector<8x128xf32>
    %cst_40 = arith.constant 1.000000e+00 : f32
    %75 = vector.broadcast %cst_40 : f32 to vector<8x128xf32>
    %76 = arith.addf %75, %74 : vector<8x128xf32>
    %77 = arith.divf %75, %76 : vector<8x128xf32>
    %c0_41 = arith.constant 0 : index
    %c0_42 = arith.constant 0 : index
    %78 = vector.load %arg14[%c0_41, %c0_42] : memref<8x128xf32, #tpu.memory_space<vmem>>, vector<8x128xf32>
    %79 = arith.mulf %69, %78 : vector<8x128xf32>
    %80 = arith.mulf %63, %71 : vector<8x128xf32>
    %81 = arith.addf %79, %80 : vector<8x128xf32>
    %82 = math.tanh %81 : vector<8x128xf32>
    %83 = arith.mulf %77, %82 : vector<8x128xf32>
    %c0_43 = arith.constant 0 : index
    %c0_44 = arith.constant 0 : index
    %84 = vector.load %arg14[%c0_43, %c0_44] : memref<8x128xf32, #tpu.memory_space<vmem>>, vector<8x128xf32>
    tpu.vector_store %arg14[%c0_43, %c0_44], %81 {strides = array<i32>} : memref<8x128xf32, #tpu.memory_space<vmem>>, vector<8x128xf32>,
    %c0_45 = arith.constant 0 : index
    %c0_46 = arith.constant 0 : index
    %85 = vector.load %arg13[%c0_45, %c0_46] : memref<8x128xf32, #tpu.memory_space<vmem>>, vector<8x128xf32>
    tpu.vector_store %arg13[%c0_45, %c0_46], %83 {strides = array<i32>} : memref<8x128xf32, #tpu.memory_space<vmem>>, vector<8x128xf32>,
    %86 = arith.index_cast %c1_i32 : i32 to index
    %c0_47 = arith.constant 0 : index
    %c0_48 = arith.constant 0 : index
    %87 = vector.load %arg11[%86, %c0_47, %c0_48] : memref<8x8x128xf32, #tpu.memory_space<vmem>>, vector<1x8x128xf32>
    %88 = vector.shape_cast %87 : vector<1x8x128xf32> to vector<8x128xf32>
    %89 = vector.shape_cast %83 : vector<8x128xf32> to vector<1x8x128xf32>
    tpu.vector_store %arg11[%86, %c0_47, %c0_48], %89 {strides = array<i32>} : memref<8x8x128xf32, #tpu.memory_space<vmem>>, vector<1x8x128xf32>,
    %c2_i32 = arith.constant 2 : i32
    %c0_49 = arith.constant 0 : index
    %c0_50 = arith.constant 0 : index
    %90 = vector.load %arg13[%c0_49, %c0_50] : memref<8x128xf32, #tpu.memory_space<vmem>>, vector<8x128xf32>
    %91 = arith.index_cast %c2_i32 : i32 to index
    %c0_51 = arith.constant 0 : index
    %c0_52 = arith.constant 0 : index
    %92 = vector.load %arg12[%91, %c0_51, %c0_52] : memref<8x8x512xf32, #tpu.memory_space<vmem>>, vector<1x8x512xf32>
    %93 = vector.shape_cast %92 : vector<1x8x512xf32> to vector<8x512xf32>
    %cst_53 = arith.constant dense<0.000000e+00> : vector<8x512xf32>
    %94 = tpu.matmul %90, %1, %cst_53 {dimension_numbers = #tpu.dot_dimension_numbers<[1], [0], [0], [1], [0, 0, 1, 1], [], []>} : vector<8x128xf32>, vector<128x512xf32>, vector<8x512xf32> -> vector<8x512xf32>
    %95 = arith.addf %93, %94 : vector<8x512xf32>
    %96 = vector.extract_strided_slice %95 {offsets = [0, 0], sizes = [8, 128], strides = [1, 1]} : vector<8x512xf32> to vector<8x128xf32>
    %97 = arith.negf %96 : vector<8x128xf32>
    %98 = math.exp %97 : vector<8x128xf32>
    %cst_54 = arith.constant 1.000000e+00 : f32
    %99 = vector.broadcast %cst_54 : f32 to vector<8x128xf32>
    %100 = arith.addf %99, %98 : vector<8x128xf32>
    %101 = arith.divf %99, %100 : vector<8x128xf32>
    %102 = vector.extract_strided_slice %95 {offsets = [0, 128], sizes = [8, 128], strides = [1, 1]} : vector<8x512xf32> to vector<8x128xf32>
    %103 = arith.negf %102 : vector<8x128xf32>
    %104 = math.exp %103 : vector<8x128xf32>
    %cst_55 = arith.constant 1.000000e+00 : f32
    %105 = vector.broadcast %cst_55 : f32 to vector<8x128xf32>
    %106 = arith.addf %105, %104 : vector<8x128xf32>
    %107 = arith.divf %105, %106 : vector<8x128xf32>
    %108 = vector.extract_strided_slice %95 {offsets = [0, 256], sizes = [8, 128], strides = [1, 1]} : vector<8x512xf32> to vector<8x128xf32>
    %109 = math.tanh %108 : vector<8x128xf32>
    %110 = vector.extract_strided_slice %95 {offsets = [0, 384], sizes = [8, 128], strides = [1, 1]} : vector<8x512xf32> to vector<8x128xf32>
    %111 = arith.negf %110 : vector<8x128xf32>
    %112 = math.exp %111 : vector<8x128xf32>
    %cst_56 = arith.constant 1.000000e+00 : f32
    %113 = vector.broadcast %cst_56 : f32 to vector<8x128xf32>
    %114 = arith.addf %113, %112 : vector<8x128xf32>
    %115 = arith.divf %113, %114 : vector<8x128xf32>
    %c0_57 = arith.constant 0 : index
    %c0_58 = arith.constant 0 : index
    %116 = vector.load %arg14[%c0_57, %c0_58] : memref<8x128xf32, #tpu.memory_space<vmem>>, vector<8x128xf32>
    %117 = arith.mulf %107, %116 : vector<8x128xf32>
    %118 = arith.mulf %101, %109 : vector<8x128xf32>
    %119 = arith.addf %117, %118 : vector<8x128xf32>
    %120 = math.tanh %119 : vector<8x128xf32>
    %121 = arith.mulf %115, %120 : vector<8x128xf32>
    %c0_59 = arith.constant 0 : index
    %c0_60 = arith.constant 0 : index
    %122 = vector.load %arg14[%c0_59, %c0_60] : memref<8x128xf32, #tpu.memory_space<vmem>>, vector<8x128xf32>
    tpu.vector_store %arg14[%c0_59, %c0_60], %119 {strides = array<i32>} : memref<8x128xf32, #tpu.memory_space<vmem>>, vector<8x128xf32>,
    %c0_61 = arith.constant 0 : index
    %c0_62 = arith.constant 0 : index
    %123 = vector.load %arg13[%c0_61, %c0_62] : memref<8x128xf32, #tpu.memory_space<vmem>>, vector<8x128xf32>
    tpu.vector_store %arg13[%c0_61, %c0_62], %121 {strides = array<i32>} : memref<8x128xf32, #tpu.memory_space<vmem>>, vector<8x128xf32>,
    %124 = arith.index_cast %c2_i32 : i32 to index
    %c0_63 = arith.constant 0 : index
    %c0_64 = arith.constant 0 : index
    %125 = vector.load %arg11[%124, %c0_63, %c0_64] : memref<8x8x128xf32, #tpu.memory_space<vmem>>, vector<1x8x128xf32>
    %126 = vector.shape_cast %125 : vector<1x8x128xf32> to vector<8x128xf32>
    %127 = vector.shape_cast %121 : vector<8x128xf32> to vector<1x8x128xf32>
    tpu.vector_store %arg11[%124, %c0_63, %c0_64], %127 {strides = array<i32>} : memref<8x8x128xf32, #tpu.memory_space<vmem>>, vector<1x8x128xf32>,
    %c3_i32 = arith.constant 3 : i32
    %c0_65 = arith.constant 0 : index
    %c0_66 = arith.constant 0 : index
    %128 = vector.load %arg13[%c0_65, %c0_66] : memref<8x128xf32, #tpu.memory_space<vmem>>, vector<8x128xf32>
    %129 = arith.index_cast %c3_i32 : i32 to index
    %c0_67 = arith.constant 0 : index
    %c0_68 = arith.constant 0 : index
    %130 = vector.load %arg12[%129, %c0_67, %c0_68] : memref<8x8x512xf32, #tpu.memory_space<vmem>>, vector<1x8x512xf32>
    %131 = vector.shape_cast %130 : vector<1x8x512xf32> to vector<8x512xf32>
    %cst_69 = arith.constant dense<0.000000e+00> : vector<8x512xf32>
    %132 = tpu.matmul %128, %1, %cst_69 {dimension_numbers = #tpu.dot_dimension_numbers<[1], [0], [0], [1], [0, 0, 1, 1], [], []>} : vector<8x128xf32>, vector<128x512xf32>, vector<8x512xf32> -> vector<8x512xf32>
    %133 = arith.addf %131, %132 : vector<8x512xf32>
    %134 = vector.extract_strided_slice %133 {offsets = [0, 0], sizes = [8, 128], strides = [1, 1]} : vector<8x512xf32> to vector<8x128xf32>
    %135 = arith.negf %134 : vector<8x128xf32>
    %136 = math.exp %135 : vector<8x128xf32>
    %cst_70 = arith.constant 1.000000e+00 : f32
    %137 = vector.broadcast %cst_70 : f32 to vector<8x128xf32>
    %138 = arith.addf %137, %136 : vector<8x128xf32>
    %139 = arith.divf %137, %138 : vector<8x128xf32>
    %140 = vector.extract_strided_slice %133 {offsets = [0, 128], sizes = [8, 128], strides = [1, 1]} : vector<8x512xf32> to vector<8x128xf32>
    %141 = arith.negf %140 : vector<8x128xf32>
    %142 = math.exp %141 : vector<8x128xf32>
    %cst_71 = arith.constant 1.000000e+00 : f32
    %143 = vector.broadcast %cst_71 : f32 to vector<8x128xf32>
    %144 = arith.addf %143, %142 : vector<8x128xf32>
    %145 = arith.divf %143, %144 : vector<8x128xf32>
    %146 = vector.extract_strided_slice %133 {offsets = [0, 256], sizes = [8, 128], strides = [1, 1]} : vector<8x512xf32> to vector<8x128xf32>
    %147 = math.tanh %146 : vector<8x128xf32>
    %148 = vector.extract_strided_slice %133 {offsets = [0, 384], sizes = [8, 128], strides = [1, 1]} : vector<8x512xf32> to vector<8x128xf32>
    %149 = arith.negf %148 : vector<8x128xf32>
    %150 = math.exp %149 : vector<8x128xf32>
    %cst_72 = arith.constant 1.000000e+00 : f32
    %151 = vector.broadcast %cst_72 : f32 to vector<8x128xf32>
    %152 = arith.addf %151, %150 : vector<8x128xf32>
    %153 = arith.divf %151, %152 : vector<8x128xf32>
    %c0_73 = arith.constant 0 : index
    %c0_74 = arith.constant 0 : index
    %154 = vector.load %arg14[%c0_73, %c0_74] : memref<8x128xf32, #tpu.memory_space<vmem>>, vector<8x128xf32>
    %155 = arith.mulf %145, %154 : vector<8x128xf32>
    %156 = arith.mulf %139, %147 : vector<8x128xf32>
    %157 = arith.addf %155, %156 : vector<8x128xf32>
    %158 = math.tanh %157 : vector<8x128xf32>
    %159 = arith.mulf %153, %158 : vector<8x128xf32>
    %c0_75 = arith.constant 0 : index
    %c0_76 = arith.constant 0 : index
    %160 = vector.load %arg14[%c0_75, %c0_76] : memref<8x128xf32, #tpu.memory_space<vmem>>, vector<8x128xf32>
    tpu.vector_store %arg14[%c0_75, %c0_76], %157 {strides = array<i32>} : memref<8x128xf32, #tpu.memory_space<vmem>>, vector<8x128xf32>,
    %c0_77 = arith.constant 0 : index
    %c0_78 = arith.constant 0 : index
    %161 = vector.load %arg13[%c0_77, %c0_78] : memref<8x128xf32, #tpu.memory_space<vmem>>, vector<8x128xf32>
    tpu.vector_store %arg13[%c0_77, %c0_78], %159 {strides = array<i32>} : memref<8x128xf32, #tpu.memory_space<vmem>>, vector<8x128xf32>,
    %162 = arith.index_cast %c3_i32 : i32 to index
    %c0_79 = arith.constant 0 : index
    %c0_80 = arith.constant 0 : index
    %163 = vector.load %arg11[%162, %c0_79, %c0_80] : memref<8x8x128xf32, #tpu.memory_space<vmem>>, vector<1x8x128xf32>
    %164 = vector.shape_cast %163 : vector<1x8x128xf32> to vector<8x128xf32>
    %165 = vector.shape_cast %159 : vector<8x128xf32> to vector<1x8x128xf32>
    tpu.vector_store %arg11[%162, %c0_79, %c0_80], %165 {strides = array<i32>} : memref<8x8x128xf32, #tpu.memory_space<vmem>>, vector<1x8x128xf32>,
    %c4_i32 = arith.constant 4 : i32
    %c0_81 = arith.constant 0 : index
    %c0_82 = arith.constant 0 : index
    %166 = vector.load %arg13[%c0_81, %c0_82] : memref<8x128xf32, #tpu.memory_space<vmem>>, vector<8x128xf32>
    %167 = arith.index_cast %c4_i32 : i32 to index
    %c0_83 = arith.constant 0 : index
    %c0_84 = arith.constant 0 : index
    %168 = vector.load %arg12[%167, %c0_83, %c0_84] : memref<8x8x512xf32, #tpu.memory_space<vmem>>, vector<1x8x512xf32>
    %169 = vector.shape_cast %168 : vector<1x8x512xf32> to vector<8x512xf32>
    %cst_85 = arith.constant dense<0.000000e+00> : vector<8x512xf32>
    %170 = tpu.matmul %166, %1, %cst_85 {dimension_numbers = #tpu.dot_dimension_numbers<[1], [0], [0], [1], [0, 0, 1, 1], [], []>} : vector<8x128xf32>, vector<128x512xf32>, vector<8x512xf32> -> vector<8x512xf32>
    %171 = arith.addf %169, %170 : vector<8x512xf32>
    %172 = vector.extract_strided_slice %171 {offsets = [0, 0], sizes = [8, 128], strides = [1, 1]} : vector<8x512xf32> to vector<8x128xf32>
    %173 = arith.negf %172 : vector<8x128xf32>
    %174 = math.exp %173 : vector<8x128xf32>
    %cst_86 = arith.constant 1.000000e+00 : f32
    %175 = vector.broadcast %cst_86 : f32 to vector<8x128xf32>
    %176 = arith.addf %175, %174 : vector<8x128xf32>
    %177 = arith.divf %175, %176 : vector<8x128xf32>
    %178 = vector.extract_strided_slice %171 {offsets = [0, 128], sizes = [8, 128], strides = [1, 1]} : vector<8x512xf32> to vector<8x128xf32>
    %179 = arith.negf %178 : vector<8x128xf32>
    %180 = math.exp %179 : vector<8x128xf32>
    %cst_87 = arith.constant 1.000000e+00 : f32
    %181 = vector.broadcast %cst_87 : f32 to vector<8x128xf32>
    %182 = arith.addf %181, %180 : vector<8x128xf32>
    %183 = arith.divf %181, %182 : vector<8x128xf32>
    %184 = vector.extract_strided_slice %171 {offsets = [0, 256], sizes = [8, 128], strides = [1, 1]} : vector<8x512xf32> to vector<8x128xf32>
    %185 = math.tanh %184 : vector<8x128xf32>
    %186 = vector.extract_strided_slice %171 {offsets = [0, 384], sizes = [8, 128], strides = [1, 1]} : vector<8x512xf32> to vector<8x128xf32>
    %187 = arith.negf %186 : vector<8x128xf32>
    %188 = math.exp %187 : vector<8x128xf32>
    %cst_88 = arith.constant 1.000000e+00 : f32
    %189 = vector.broadcast %cst_88 : f32 to vector<8x128xf32>
    %190 = arith.addf %189, %188 : vector<8x128xf32>
    %191 = arith.divf %189, %190 : vector<8x128xf32>
    %c0_89 = arith.constant 0 : index
    %c0_90 = arith.constant 0 : index
    %192 = vector.load %arg14[%c0_89, %c0_90] : memref<8x128xf32, #tpu.memory_space<vmem>>, vector<8x128xf32>
    %193 = arith.mulf %183, %192 : vector<8x128xf32>
    %194 = arith.mulf %177, %185 : vector<8x128xf32>
    %195 = arith.addf %193, %194 : vector<8x128xf32>
    %196 = math.tanh %195 : vector<8x128xf32>
    %197 = arith.mulf %191, %196 : vector<8x128xf32>
    %c0_91 = arith.constant 0 : index
    %c0_92 = arith.constant 0 : index
    %198 = vector.load %arg14[%c0_91, %c0_92] : memref<8x128xf32, #tpu.memory_space<vmem>>, vector<8x128xf32>
    tpu.vector_store %arg14[%c0_91, %c0_92], %195 {strides = array<i32>} : memref<8x128xf32, #tpu.memory_space<vmem>>, vector<8x128xf32>,
    %c0_93 = arith.constant 0 : index
    %c0_94 = arith.constant 0 : index
    %199 = vector.load %arg13[%c0_93, %c0_94] : memref<8x128xf32, #tpu.memory_space<vmem>>, vector<8x128xf32>
    tpu.vector_store %arg13[%c0_93, %c0_94], %197 {strides = array<i32>} : memref<8x128xf32, #tpu.memory_space<vmem>>, vector<8x128xf32>,
    %200 = arith.index_cast %c4_i32 : i32 to index
    %c0_95 = arith.constant 0 : index
    %c0_96 = arith.constant 0 : index
    %201 = vector.load %arg11[%200, %c0_95, %c0_96] : memref<8x8x128xf32, #tpu.memory_space<vmem>>, vector<1x8x128xf32>
    %202 = vector.shape_cast %201 : vector<1x8x128xf32> to vector<8x128xf32>
    %203 = vector.shape_cast %197 : vector<8x128xf32> to vector<1x8x128xf32>
    tpu.vector_store %arg11[%200, %c0_95, %c0_96], %203 {strides = array<i32>} : memref<8x8x128xf32, #tpu.memory_space<vmem>>, vector<1x8x128xf32>,
    %c5_i32 = arith.constant 5 : i32
    %c0_97 = arith.constant 0 : index
    %c0_98 = arith.constant 0 : index
    %204 = vector.load %arg13[%c0_97, %c0_98] : memref<8x128xf32, #tpu.memory_space<vmem>>, vector<8x128xf32>
    %205 = arith.index_cast %c5_i32 : i32 to index
    %c0_99 = arith.constant 0 : index
    %c0_100 = arith.constant 0 : index
    %206 = vector.load %arg12[%205, %c0_99, %c0_100] : memref<8x8x512xf32, #tpu.memory_space<vmem>>, vector<1x8x512xf32>
    %207 = vector.shape_cast %206 : vector<1x8x512xf32> to vector<8x512xf32>
    %cst_101 = arith.constant dense<0.000000e+00> : vector<8x512xf32>
    %208 = tpu.matmul %204, %1, %cst_101 {dimension_numbers = #tpu.dot_dimension_numbers<[1], [0], [0], [1], [0, 0, 1, 1], [], []>} : vector<8x128xf32>, vector<128x512xf32>, vector<8x512xf32> -> vector<8x512xf32>
    %209 = arith.addf %207, %208 : vector<8x512xf32>
    %210 = vector.extract_strided_slice %209 {offsets = [0, 0], sizes = [8, 128], strides = [1, 1]} : vector<8x512xf32> to vector<8x128xf32>
    %211 = arith.negf %210 : vector<8x128xf32>
    %212 = math.exp %211 : vector<8x128xf32>
    %cst_102 = arith.constant 1.000000e+00 : f32
    %213 = vector.broadcast %cst_102 : f32 to vector<8x128xf32>
    %214 = arith.addf %213, %212 : vector<8x128xf32>
    %215 = arith.divf %213, %214 : vector<8x128xf32>
    %216 = vector.extract_strided_slice %209 {offsets = [0, 128], sizes = [8, 128], strides = [1, 1]} : vector<8x512xf32> to vector<8x128xf32>
    %217 = arith.negf %216 : vector<8x128xf32>
    %218 = math.exp %217 : vector<8x128xf32>
    %cst_103 = arith.constant 1.000000e+00 : f32
    %219 = vector.broadcast %cst_103 : f32 to vector<8x128xf32>
    %220 = arith.addf %219, %218 : vector<8x128xf32>
    %221 = arith.divf %219, %220 : vector<8x128xf32>
    %222 = vector.extract_strided_slice %209 {offsets = [0, 256], sizes = [8, 128], strides = [1, 1]} : vector<8x512xf32> to vector<8x128xf32>
    %223 = math.tanh %222 : vector<8x128xf32>
    %224 = vector.extract_strided_slice %209 {offsets = [0, 384], sizes = [8, 128], strides = [1, 1]} : vector<8x512xf32> to vector<8x128xf32>
    %225 = arith.negf %224 : vector<8x128xf32>
    %226 = math.exp %225 : vector<8x128xf32>
    %cst_104 = arith.constant 1.000000e+00 : f32
    %227 = vector.broadcast %cst_104 : f32 to vector<8x128xf32>
    %228 = arith.addf %227, %226 : vector<8x128xf32>
    %229 = arith.divf %227, %228 : vector<8x128xf32>
    %c0_105 = arith.constant 0 : index
    %c0_106 = arith.constant 0 : index
    %230 = vector.load %arg14[%c0_105, %c0_106] : memref<8x128xf32, #tpu.memory_space<vmem>>, vector<8x128xf32>
    %231 = arith.mulf %221, %230 : vector<8x128xf32>
    %232 = arith.mulf %215, %223 : vector<8x128xf32>
    %233 = arith.addf %231, %232 : vector<8x128xf32>
    %234 = math.tanh %233 : vector<8x128xf32>
    %235 = arith.mulf %229, %234 : vector<8x128xf32>
    %c0_107 = arith.constant 0 : index
    %c0_108 = arith.constant 0 : index
    %236 = vector.load %arg14[%c0_107, %c0_108] : memref<8x128xf32, #tpu.memory_space<vmem>>, vector<8x128xf32>
    tpu.vector_store %arg14[%c0_107, %c0_108], %233 {strides = array<i32>} : memref<8x128xf32, #tpu.memory_space<vmem>>, vector<8x128xf32>,
    %c0_109 = arith.constant 0 : index
    %c0_110 = arith.constant 0 : index
    %237 = vector.load %arg13[%c0_109, %c0_110] : memref<8x128xf32, #tpu.memory_space<vmem>>, vector<8x128xf32>
    tpu.vector_store %arg13[%c0_109, %c0_110], %235 {strides = array<i32>} : memref<8x128xf32, #tpu.memory_space<vmem>>, vector<8x128xf32>,
    %238 = arith.index_cast %c5_i32 : i32 to index
    %c0_111 = arith.constant 0 : index
    %c0_112 = arith.constant 0 : index
    %239 = vector.load %arg11[%238, %c0_111, %c0_112] : memref<8x8x128xf32, #tpu.memory_space<vmem>>, vector<1x8x128xf32>
    %240 = vector.shape_cast %239 : vector<1x8x128xf32> to vector<8x128xf32>
    %241 = vector.shape_cast %235 : vector<8x128xf32> to vector<1x8x128xf32>
    tpu.vector_store %arg11[%238, %c0_111, %c0_112], %241 {strides = array<i32>} : memref<8x8x128xf32, #tpu.memory_space<vmem>>, vector<1x8x128xf32>,
    %c6_i32 = arith.constant 6 : i32
    %c0_113 = arith.constant 0 : index
    %c0_114 = arith.constant 0 : index
    %242 = vector.load %arg13[%c0_113, %c0_114] : memref<8x128xf32, #tpu.memory_space<vmem>>, vector<8x128xf32>
    %243 = arith.index_cast %c6_i32 : i32 to index
    %c0_115 = arith.constant 0 : index
    %c0_116 = arith.constant 0 : index
    %244 = vector.load %arg12[%243, %c0_115, %c0_116] : memref<8x8x512xf32, #tpu.memory_space<vmem>>, vector<1x8x512xf32>
    %245 = vector.shape_cast %244 : vector<1x8x512xf32> to vector<8x512xf32>
    %cst_117 = arith.constant dense<0.000000e+00> : vector<8x512xf32>
    %246 = tpu.matmul %242, %1, %cst_117 {dimension_numbers = #tpu.dot_dimension_numbers<[1], [0], [0], [1], [0, 0, 1, 1], [], []>} : vector<8x128xf32>, vector<128x512xf32>, vector<8x512xf32> -> vector<8x512xf32>
    %247 = arith.addf %245, %246 : vector<8x512xf32>
    %248 = vector.extract_strided_slice %247 {offsets = [0, 0], sizes = [8, 128], strides = [1, 1]} : vector<8x512xf32> to vector<8x128xf32>
    %249 = arith.negf %248 : vector<8x128xf32>
    %250 = math.exp %249 : vector<8x128xf32>
    %cst_118 = arith.constant 1.000000e+00 : f32
    %251 = vector.broadcast %cst_118 : f32 to vector<8x128xf32>
    %252 = arith.addf %251, %250 : vector<8x128xf32>
    %253 = arith.divf %251, %252 : vector<8x128xf32>
    %254 = vector.extract_strided_slice %247 {offsets = [0, 128], sizes = [8, 128], strides = [1, 1]} : vector<8x512xf32> to vector<8x128xf32>
    %255 = arith.negf %254 : vector<8x128xf32>
    %256 = math.exp %255 : vector<8x128xf32>
    %cst_119 = arith.constant 1.000000e+00 : f32
    %257 = vector.broadcast %cst_119 : f32 to vector<8x128xf32>
    %258 = arith.addf %257, %256 : vector<8x128xf32>
    %259 = arith.divf %257, %258 : vector<8x128xf32>
    %260 = vector.extract_strided_slice %247 {offsets = [0, 256], sizes = [8, 128], strides = [1, 1]} : vector<8x512xf32> to vector<8x128xf32>
    %261 = math.tanh %260 : vector<8x128xf32>
    %262 = vector.extract_strided_slice %247 {offsets = [0, 384], sizes = [8, 128], strides = [1, 1]} : vector<8x512xf32> to vector<8x128xf32>
    %263 = arith.negf %262 : vector<8x128xf32>
    %264 = math.exp %263 : vector<8x128xf32>
    %cst_120 = arith.constant 1.000000e+00 : f32
    %265 = vector.broadcast %cst_120 : f32 to vector<8x128xf32>
    %266 = arith.addf %265, %264 : vector<8x128xf32>
    %267 = arith.divf %265, %266 : vector<8x128xf32>
    %c0_121 = arith.constant 0 : index
    %c0_122 = arith.constant 0 : index
    %268 = vector.load %arg14[%c0_121, %c0_122] : memref<8x128xf32, #tpu.memory_space<vmem>>, vector<8x128xf32>
    %269 = arith.mulf %259, %268 : vector<8x128xf32>
    %270 = arith.mulf %253, %261 : vector<8x128xf32>
    %271 = arith.addf %269, %270 : vector<8x128xf32>
    %272 = math.tanh %271 : vector<8x128xf32>
    %273 = arith.mulf %267, %272 : vector<8x128xf32>
    %c0_123 = arith.constant 0 : index
    %c0_124 = arith.constant 0 : index
    %274 = vector.load %arg14[%c0_123, %c0_124] : memref<8x128xf32, #tpu.memory_space<vmem>>, vector<8x128xf32>
    tpu.vector_store %arg14[%c0_123, %c0_124], %271 {strides = array<i32>} : memref<8x128xf32, #tpu.memory_space<vmem>>, vector<8x128xf32>,
    %c0_125 = arith.constant 0 : index
    %c0_126 = arith.constant 0 : index
    %275 = vector.load %arg13[%c0_125, %c0_126] : memref<8x128xf32, #tpu.memory_space<vmem>>, vector<8x128xf32>
    tpu.vector_store %arg13[%c0_125, %c0_126], %273 {strides = array<i32>} : memref<8x128xf32, #tpu.memory_space<vmem>>, vector<8x128xf32>,
    %276 = arith.index_cast %c6_i32 : i32 to index
    %c0_127 = arith.constant 0 : index
    %c0_128 = arith.constant 0 : index
    %277 = vector.load %arg11[%276, %c0_127, %c0_128] : memref<8x8x128xf32, #tpu.memory_space<vmem>>, vector<1x8x128xf32>
    %278 = vector.shape_cast %277 : vector<1x8x128xf32> to vector<8x128xf32>
    %279 = vector.shape_cast %273 : vector<8x128xf32> to vector<1x8x128xf32>
    tpu.vector_store %arg11[%276, %c0_127, %c0_128], %279 {strides = array<i32>} : memref<8x8x128xf32, #tpu.memory_space<vmem>>, vector<1x8x128xf32>,
    %c7_i32 = arith.constant 7 : i32
    %c0_129 = arith.constant 0 : index
    %c0_130 = arith.constant 0 : index
    %280 = vector.load %arg13[%c0_129, %c0_130] : memref<8x128xf32, #tpu.memory_space<vmem>>, vector<8x128xf32>
    %281 = arith.index_cast %c7_i32 : i32 to index
    %c0_131 = arith.constant 0 : index
    %c0_132 = arith.constant 0 : index
    %282 = vector.load %arg12[%281, %c0_131, %c0_132] : memref<8x8x512xf32, #tpu.memory_space<vmem>>, vector<1x8x512xf32>
    %283 = vector.shape_cast %282 : vector<1x8x512xf32> to vector<8x512xf32>
    %cst_133 = arith.constant dense<0.000000e+00> : vector<8x512xf32>
    %284 = tpu.matmul %280, %1, %cst_133 {dimension_numbers = #tpu.dot_dimension_numbers<[1], [0], [0], [1], [0, 0, 1, 1], [], []>} : vector<8x128xf32>, vector<128x512xf32>, vector<8x512xf32> -> vector<8x512xf32>
    %285 = arith.addf %283, %284 : vector<8x512xf32>
    %286 = vector.extract_strided_slice %285 {offsets = [0, 0], sizes = [8, 128], strides = [1, 1]} : vector<8x512xf32> to vector<8x128xf32>
    %287 = arith.negf %286 : vector<8x128xf32>
    %288 = math.exp %287 : vector<8x128xf32>
    %cst_134 = arith.constant 1.000000e+00 : f32
    %289 = vector.broadcast %cst_134 : f32 to vector<8x128xf32>
    %290 = arith.addf %289, %288 : vector<8x128xf32>
    %291 = arith.divf %289, %290 : vector<8x128xf32>
    %292 = vector.extract_strided_slice %285 {offsets = [0, 128], sizes = [8, 128], strides = [1, 1]} : vector<8x512xf32> to vector<8x128xf32>
    %293 = arith.negf %292 : vector<8x128xf32>
    %294 = math.exp %293 : vector<8x128xf32>
    %cst_135 = arith.constant 1.000000e+00 : f32
    %295 = vector.broadcast %cst_135 : f32 to vector<8x128xf32>
    %296 = arith.addf %295, %294 : vector<8x128xf32>
    %297 = arith.divf %295, %296 : vector<8x128xf32>
    %298 = vector.extract_strided_slice %285 {offsets = [0, 256], sizes = [8, 128], strides = [1, 1]} : vector<8x512xf32> to vector<8x128xf32>
    %299 = math.tanh %298 : vector<8x128xf32>
    %300 = vector.extract_strided_slice %285 {offsets = [0, 384], sizes = [8, 128], strides = [1, 1]} : vector<8x512xf32> to vector<8x128xf32>
    %301 = arith.negf %300 : vector<8x128xf32>
    %302 = math.exp %301 : vector<8x128xf32>
    %cst_136 = arith.constant 1.000000e+00 : f32
    %303 = vector.broadcast %cst_136 : f32 to vector<8x128xf32>
    %304 = arith.addf %303, %302 : vector<8x128xf32>
    %305 = arith.divf %303, %304 : vector<8x128xf32>
    %c0_137 = arith.constant 0 : index
    %c0_138 = arith.constant 0 : index
    %306 = vector.load %arg14[%c0_137, %c0_138] : memref<8x128xf32, #tpu.memory_space<vmem>>, vector<8x128xf32>
    %307 = arith.mulf %297, %306 : vector<8x128xf32>
    %308 = arith.mulf %291, %299 : vector<8x128xf32>
    %309 = arith.addf %307, %308 : vector<8x128xf32>
    %310 = math.tanh %309 : vector<8x128xf32>
    %311 = arith.mulf %305, %310 : vector<8x128xf32>
    %c0_139 = arith.constant 0 : index
    %c0_140 = arith.constant 0 : index
    %312 = vector.load %arg14[%c0_139, %c0_140] : memref<8x128xf32, #tpu.memory_space<vmem>>, vector<8x128xf32>
    tpu.vector_store %arg14[%c0_139, %c0_140], %309 {strides = array<i32>} : memref<8x128xf32, #tpu.memory_space<vmem>>, vector<8x128xf32>,
    %c0_141 = arith.constant 0 : index
    %c0_142 = arith.constant 0 : index
    %313 = vector.load %arg13[%c0_141, %c0_142] : memref<8x128xf32, #tpu.memory_space<vmem>>, vector<8x128xf32>
    tpu.vector_store %arg13[%c0_141, %c0_142], %311 {strides = array<i32>} : memref<8x128xf32, #tpu.memory_space<vmem>>, vector<8x128xf32>,
    %314 = arith.index_cast %c7_i32 : i32 to index
    %c0_143 = arith.constant 0 : index
    %c0_144 = arith.constant 0 : index
    %315 = vector.load %arg11[%314, %c0_143, %c0_144] : memref<8x8x128xf32, #tpu.memory_space<vmem>>, vector<1x8x128xf32>
    %316 = vector.shape_cast %315 : vector<1x8x128xf32> to vector<8x128xf32>
    %317 = vector.shape_cast %311 : vector<8x128xf32> to vector<1x8x128xf32>
    tpu.vector_store %arg11[%314, %c0_143, %c0_144], %317 {strides = array<i32>} : memref<8x8x128xf32, #tpu.memory_space<vmem>>, vector<1x8x128xf32>,
    %c8_i32 = arith.constant 8 : i32
    %c0_145 = arith.constant 0 : index
    %c0_146 = arith.constant 0 : index
    %318 = vector.load %arg5[%c0_145, %c0_146] : memref<128x512xf32, #tpu.memory_space<vmem>>, vector<128x512xf32>
    %c0_147 = arith.constant 0 : index
    %c0_148 = arith.constant 0 : index
    %319 = vector.load %arg6[%c0_147, %c0_148] : memref<128x512xf32, #tpu.memory_space<vmem>>, vector<128x512xf32>
    %c0_149 = arith.constant 0 : index
    %c0_150 = arith.constant 0 : index
    %320 = vector.load %arg7[%c0_149, %c0_150] : memref<1x512xf32, #tpu.memory_space<vmem>>, vector<1x512xf32>
    %c0_151 = arith.constant 0 : index
    %c0_152 = arith.constant 0 : index
    %c0_153 = arith.constant 0 : index
    %321 = vector.load %arg11[%c0_151, %c0_152, %c0_153] : memref<8x8x128xf32, #tpu.memory_space<vmem>>, vector<8x8x128xf32>
    %322 = vector.shape_cast %321 : vector<8x8x128xf32> to vector<64x128xf32>
    %cst_154 = arith.constant dense<0.000000e+00> : vector<64x512xf32>
    %323 = tpu.matmul %322, %318, %cst_154 {dimension_numbers = #tpu.dot_dimension_numbers<[1], [0], [0], [1], [0, 0, 1, 1], [], []>} : vector<64x128xf32>, vector<128x512xf32>, vector<64x512xf32> -> vector<64x512xf32>
    %324 = vector.broadcast %320 : vector<1x512xf32> to vector<64x512xf32>
    %325 = arith.addf %323, %324 : vector<64x512xf32>
    %326 = vector.shape_cast %325 : vector<64x512xf32> to vector<8x8x512xf32>
    %c0_155 = arith.constant 0 : index
    %c0_156 = arith.constant 0 : index
    %c0_157 = arith.constant 0 : index
    %327 = vector.load %arg12[%c0_155, %c0_156, %c0_157] : memref<8x8x512xf32, #tpu.memory_space<vmem>>, vector<8x8x512xf32>
    tpu.vector_store %arg12[%c0_155, %c0_156, %c0_157], %326 {strides = array<i32>} : memref<8x8x512xf32, #tpu.memory_space<vmem>>, vector<8x8x512xf32>,
    %cst_158 = arith.constant 0.000000e+00 : f32
    %328 = vector.broadcast %cst_158 : f32 to vector<8x128xf32>
    %c0_159 = arith.constant 0 : index
    %c0_160 = arith.constant 0 : index
    %329 = vector.load %arg13[%c0_159, %c0_160] : memref<8x128xf32, #tpu.memory_space<vmem>>, vector<8x128xf32>
    tpu.vector_store %arg13[%c0_159, %c0_160], %328 {strides = array<i32>} : memref<8x128xf32, #tpu.memory_space<vmem>>, vector<8x128xf32>,
    %cst_161 = arith.constant 0.000000e+00 : f32
    %330 = vector.broadcast %cst_161 : f32 to vector<8x128xf32>
    %c0_162 = arith.constant 0 : index
    %c0_163 = arith.constant 0 : index
    %331 = vector.load %arg14[%c0_162, %c0_163] : memref<8x128xf32, #tpu.memory_space<vmem>>, vector<8x128xf32>
    tpu.vector_store %arg14[%c0_162, %c0_163], %330 {strides = array<i32>} : memref<8x128xf32, #tpu.memory_space<vmem>>, vector<8x128xf32>,
    %c0_i32_164 = arith.constant 0 : i32
    %c0_165 = arith.constant 0 : index
    %c0_166 = arith.constant 0 : index
    %332 = vector.load %arg13[%c0_165, %c0_166] : memref<8x128xf32, #tpu.memory_space<vmem>>, vector<8x128xf32>
    %333 = arith.index_cast %c0_i32_164 : i32 to index
    %c0_167 = arith.constant 0 : index
    %c0_168 = arith.constant 0 : index
    %334 = vector.load %arg12[%333, %c0_167, %c0_168] : memref<8x8x512xf32, #tpu.memory_space<vmem>>, vector<1x8x512xf32>
    %335 = vector.shape_cast %334 : vector<1x8x512xf32> to vector<8x512xf32>
    %cst_169 = arith.constant dense<0.000000e+00> : vector<8x512xf32>
    %336 = tpu.matmul %332, %319, %cst_169 {dimension_numbers = #tpu.dot_dimension_numbers<[1], [0], [0], [1], [0, 0, 1, 1], [], []>} : vector<8x128xf32>, vector<128x512xf32>, vector<8x512xf32> -> vector<8x512xf32>
    %337 = arith.addf %335, %336 : vector<8x512xf32>
    %338 = vector.extract_strided_slice %337 {offsets = [0, 0], sizes = [8, 128], strides = [1, 1]} : vector<8x512xf32> to vector<8x128xf32>
    %339 = arith.negf %338 : vector<8x128xf32>
    %340 = math.exp %339 : vector<8x128xf32>
    %cst_170 = arith.constant 1.000000e+00 : f32
    %341 = vector.broadcast %cst_170 : f32 to vector<8x128xf32>
    %342 = arith.addf %341, %340 : vector<8x128xf32>
    %343 = arith.divf %341, %342 : vector<8x128xf32>
    %344 = vector.extract_strided_slice %337 {offsets = [0, 128], sizes = [8, 128], strides = [1, 1]} : vector<8x512xf32> to vector<8x128xf32>
    %345 = arith.negf %344 : vector<8x128xf32>
    %346 = math.exp %345 : vector<8x128xf32>
    %cst_171 = arith.constant 1.000000e+00 : f32
    %347 = vector.broadcast %cst_171 : f32 to vector<8x128xf32>
    %348 = arith.addf %347, %346 : vector<8x128xf32>
    %349 = arith.divf %347, %348 : vector<8x128xf32>
    %350 = vector.extract_strided_slice %337 {offsets = [0, 256], sizes = [8, 128], strides = [1, 1]} : vector<8x512xf32> to vector<8x128xf32>
    %351 = math.tanh %350 : vector<8x128xf32>
    %352 = vector.extract_strided_slice %337 {offsets = [0, 384], sizes = [8, 128], strides = [1, 1]} : vector<8x512xf32> to vector<8x128xf32>
    %353 = arith.negf %352 : vector<8x128xf32>
    %354 = math.exp %353 : vector<8x128xf32>
    %cst_172 = arith.constant 1.000000e+00 : f32
    %355 = vector.broadcast %cst_172 : f32 to vector<8x128xf32>
    %356 = arith.addf %355, %354 : vector<8x128xf32>
    %357 = arith.divf %355, %356 : vector<8x128xf32>
    %c0_173 = arith.constant 0 : index
    %c0_174 = arith.constant 0 : index
    %358 = vector.load %arg14[%c0_173, %c0_174] : memref<8x128xf32, #tpu.memory_space<vmem>>, vector<8x128xf32>
    %359 = arith.mulf %349, %358 : vector<8x128xf32>
    %360 = arith.mulf %343, %351 : vector<8x128xf32>
    %361 = arith.addf %359, %360 : vector<8x128xf32>
    %362 = math.tanh %361 : vector<8x128xf32>
    %363 = arith.mulf %357, %362 : vector<8x128xf32>
    %c0_175 = arith.constant 0 : index
    %c0_176 = arith.constant 0 : index
    %364 = vector.load %arg14[%c0_175, %c0_176] : memref<8x128xf32, #tpu.memory_space<vmem>>, vector<8x128xf32>
    tpu.vector_store %arg14[%c0_175, %c0_176], %361 {strides = array<i32>} : memref<8x128xf32, #tpu.memory_space<vmem>>, vector<8x128xf32>,
    %c0_177 = arith.constant 0 : index
    %c0_178 = arith.constant 0 : index
    %365 = vector.load %arg13[%c0_177, %c0_178] : memref<8x128xf32, #tpu.memory_space<vmem>>, vector<8x128xf32>
    tpu.vector_store %arg13[%c0_177, %c0_178], %363 {strides = array<i32>} : memref<8x128xf32, #tpu.memory_space<vmem>>, vector<8x128xf32>,
    %c1_i32_179 = arith.constant 1 : i32
    %c0_180 = arith.constant 0 : index
    %c0_181 = arith.constant 0 : index
    %366 = vector.load %arg13[%c0_180, %c0_181] : memref<8x128xf32, #tpu.memory_space<vmem>>, vector<8x128xf32>
    %367 = arith.index_cast %c1_i32_179 : i32 to index
    %c0_182 = arith.constant 0 : index
    %c0_183 = arith.constant 0 : index
    %368 = vector.load %arg12[%367, %c0_182, %c0_183] : memref<8x8x512xf32, #tpu.memory_space<vmem>>, vector<1x8x512xf32>
    %369 = vector.shape_cast %368 : vector<1x8x512xf32> to vector<8x512xf32>
    %cst_184 = arith.constant dense<0.000000e+00> : vector<8x512xf32>
    %370 = tpu.matmul %366, %319, %cst_184 {dimension_numbers = #tpu.dot_dimension_numbers<[1], [0], [0], [1], [0, 0, 1, 1], [], []>} : vector<8x128xf32>, vector<128x512xf32>, vector<8x512xf32> -> vector<8x512xf32>
    %371 = arith.addf %369, %370 : vector<8x512xf32>
    %372 = vector.extract_strided_slice %371 {offsets = [0, 0], sizes = [8, 128], strides = [1, 1]} : vector<8x512xf32> to vector<8x128xf32>
    %373 = arith.negf %372 : vector<8x128xf32>
    %374 = math.exp %373 : vector<8x128xf32>
    %cst_185 = arith.constant 1.000000e+00 : f32
    %375 = vector.broadcast %cst_185 : f32 to vector<8x128xf32>
    %376 = arith.addf %375, %374 : vector<8x128xf32>
    %377 = arith.divf %375, %376 : vector<8x128xf32>
    %378 = vector.extract_strided_slice %371 {offsets = [0, 128], sizes = [8, 128], strides = [1, 1]} : vector<8x512xf32> to vector<8x128xf32>
    %379 = arith.negf %378 : vector<8x128xf32>
    %380 = math.exp %379 : vector<8x128xf32>
    %cst_186 = arith.constant 1.000000e+00 : f32
    %381 = vector.broadcast %cst_186 : f32 to vector<8x128xf32>
    %382 = arith.addf %381, %380 : vector<8x128xf32>
    %383 = arith.divf %381, %382 : vector<8x128xf32>
    %384 = vector.extract_strided_slice %371 {offsets = [0, 256], sizes = [8, 128], strides = [1, 1]} : vector<8x512xf32> to vector<8x128xf32>
    %385 = math.tanh %384 : vector<8x128xf32>
    %386 = vector.extract_strided_slice %371 {offsets = [0, 384], sizes = [8, 128], strides = [1, 1]} : vector<8x512xf32> to vector<8x128xf32>
    %387 = arith.negf %386 : vector<8x128xf32>
    %388 = math.exp %387 : vector<8x128xf32>
    %cst_187 = arith.constant 1.000000e+00 : f32
    %389 = vector.broadcast %cst_187 : f32 to vector<8x128xf32>
    %390 = arith.addf %389, %388 : vector<8x128xf32>
    %391 = arith.divf %389, %390 : vector<8x128xf32>
    %c0_188 = arith.constant 0 : index
    %c0_189 = arith.constant 0 : index
    %392 = vector.load %arg14[%c0_188, %c0_189] : memref<8x128xf32, #tpu.memory_space<vmem>>, vector<8x128xf32>
    %393 = arith.mulf %383, %392 : vector<8x128xf32>
    %394 = arith.mulf %377, %385 : vector<8x128xf32>
    %395 = arith.addf %393, %394 : vector<8x128xf32>
    %396 = math.tanh %395 : vector<8x128xf32>
    %397 = arith.mulf %391, %396 : vector<8x128xf32>
    %c0_190 = arith.constant 0 : index
    %c0_191 = arith.constant 0 : index
    %398 = vector.load %arg14[%c0_190, %c0_191] : memref<8x128xf32, #tpu.memory_space<vmem>>, vector<8x128xf32>
    tpu.vector_store %arg14[%c0_190, %c0_191], %395 {strides = array<i32>} : memref<8x128xf32, #tpu.memory_space<vmem>>, vector<8x128xf32>,
    %c0_192 = arith.constant 0 : index
    %c0_193 = arith.constant 0 : index
    %399 = vector.load %arg13[%c0_192, %c0_193] : memref<8x128xf32, #tpu.memory_space<vmem>>, vector<8x128xf32>
    tpu.vector_store %arg13[%c0_192, %c0_193], %397 {strides = array<i32>} : memref<8x128xf32, #tpu.memory_space<vmem>>, vector<8x128xf32>,
    %c2_i32_194 = arith.constant 2 : i32
    %c0_195 = arith.constant 0 : index
    %c0_196 = arith.constant 0 : index
    %400 = vector.load %arg13[%c0_195, %c0_196] : memref<8x128xf32, #tpu.memory_space<vmem>>, vector<8x128xf32>
    %401 = arith.index_cast %c2_i32_194 : i32 to index
    %c0_197 = arith.constant 0 : index
    %c0_198 = arith.constant 0 : index
    %402 = vector.load %arg12[%401, %c0_197, %c0_198] : memref<8x8x512xf32, #tpu.memory_space<vmem>>, vector<1x8x512xf32>
    %403 = vector.shape_cast %402 : vector<1x8x512xf32> to vector<8x512xf32>
    %cst_199 = arith.constant dense<0.000000e+00> : vector<8x512xf32>
    %404 = tpu.matmul %400, %319, %cst_199 {dimension_numbers = #tpu.dot_dimension_numbers<[1], [0], [0], [1], [0, 0, 1, 1], [], []>} : vector<8x128xf32>, vector<128x512xf32>, vector<8x512xf32> -> vector<8x512xf32>
    %405 = arith.addf %403, %404 : vector<8x512xf32>
    %406 = vector.extract_strided_slice %405 {offsets = [0, 0], sizes = [8, 128], strides = [1, 1]} : vector<8x512xf32> to vector<8x128xf32>
    %407 = arith.negf %406 : vector<8x128xf32>
    %408 = math.exp %407 : vector<8x128xf32>
    %cst_200 = arith.constant 1.000000e+00 : f32
    %409 = vector.broadcast %cst_200 : f32 to vector<8x128xf32>
    %410 = arith.addf %409, %408 : vector<8x128xf32>
    %411 = arith.divf %409, %410 : vector<8x128xf32>
    %412 = vector.extract_strided_slice %405 {offsets = [0, 128], sizes = [8, 128], strides = [1, 1]} : vector<8x512xf32> to vector<8x128xf32>
    %413 = arith.negf %412 : vector<8x128xf32>
    %414 = math.exp %413 : vector<8x128xf32>
    %cst_201 = arith.constant 1.000000e+00 : f32
    %415 = vector.broadcast %cst_201 : f32 to vector<8x128xf32>
    %416 = arith.addf %415, %414 : vector<8x128xf32>
    %417 = arith.divf %415, %416 : vector<8x128xf32>
    %418 = vector.extract_strided_slice %405 {offsets = [0, 256], sizes = [8, 128], strides = [1, 1]} : vector<8x512xf32> to vector<8x128xf32>
    %419 = math.tanh %418 : vector<8x128xf32>
    %420 = vector.extract_strided_slice %405 {offsets = [0, 384], sizes = [8, 128], strides = [1, 1]} : vector<8x512xf32> to vector<8x128xf32>
    %421 = arith.negf %420 : vector<8x128xf32>
    %422 = math.exp %421 : vector<8x128xf32>
    %cst_202 = arith.constant 1.000000e+00 : f32
    %423 = vector.broadcast %cst_202 : f32 to vector<8x128xf32>
    %424 = arith.addf %423, %422 : vector<8x128xf32>
    %425 = arith.divf %423, %424 : vector<8x128xf32>
    %c0_203 = arith.constant 0 : index
    %c0_204 = arith.constant 0 : index
    %426 = vector.load %arg14[%c0_203, %c0_204] : memref<8x128xf32, #tpu.memory_space<vmem>>, vector<8x128xf32>
    %427 = arith.mulf %417, %426 : vector<8x128xf32>
    %428 = arith.mulf %411, %419 : vector<8x128xf32>
    %429 = arith.addf %427, %428 : vector<8x128xf32>
    %430 = math.tanh %429 : vector<8x128xf32>
    %431 = arith.mulf %425, %430 : vector<8x128xf32>
    %c0_205 = arith.constant 0 : index
    %c0_206 = arith.constant 0 : index
    %432 = vector.load %arg14[%c0_205, %c0_206] : memref<8x128xf32, #tpu.memory_space<vmem>>, vector<8x128xf32>
    tpu.vector_store %arg14[%c0_205, %c0_206], %429 {strides = array<i32>} : memref<8x128xf32, #tpu.memory_space<vmem>>, vector<8x128xf32>,
    %c0_207 = arith.constant 0 : index
    %c0_208 = arith.constant 0 : index
    %433 = vector.load %arg13[%c0_207, %c0_208] : memref<8x128xf32, #tpu.memory_space<vmem>>, vector<8x128xf32>
    tpu.vector_store %arg13[%c0_207, %c0_208], %431 {strides = array<i32>} : memref<8x128xf32, #tpu.memory_space<vmem>>, vector<8x128xf32>,
    %c3_i32_209 = arith.constant 3 : i32
    %c0_210 = arith.constant 0 : index
    %c0_211 = arith.constant 0 : index
    %434 = vector.load %arg13[%c0_210, %c0_211] : memref<8x128xf32, #tpu.memory_space<vmem>>, vector<8x128xf32>
    %435 = arith.index_cast %c3_i32_209 : i32 to index
    %c0_212 = arith.constant 0 : index
    %c0_213 = arith.constant 0 : index
    %436 = vector.load %arg12[%435, %c0_212, %c0_213] : memref<8x8x512xf32, #tpu.memory_space<vmem>>, vector<1x8x512xf32>
    %437 = vector.shape_cast %436 : vector<1x8x512xf32> to vector<8x512xf32>
    %cst_214 = arith.constant dense<0.000000e+00> : vector<8x512xf32>
    %438 = tpu.matmul %434, %319, %cst_214 {dimension_numbers = #tpu.dot_dimension_numbers<[1], [0], [0], [1], [0, 0, 1, 1], [], []>} : vector<8x128xf32>, vector<128x512xf32>, vector<8x512xf32> -> vector<8x512xf32>
    %439 = arith.addf %437, %438 : vector<8x512xf32>
    %440 = vector.extract_strided_slice %439 {offsets = [0, 0], sizes = [8, 128], strides = [1, 1]} : vector<8x512xf32> to vector<8x128xf32>
    %441 = arith.negf %440 : vector<8x128xf32>
    %442 = math.exp %441 : vector<8x128xf32>
    %cst_215 = arith.constant 1.000000e+00 : f32
    %443 = vector.broadcast %cst_215 : f32 to vector<8x128xf32>
    %444 = arith.addf %443, %442 : vector<8x128xf32>
    %445 = arith.divf %443, %444 : vector<8x128xf32>
    %446 = vector.extract_strided_slice %439 {offsets = [0, 128], sizes = [8, 128], strides = [1, 1]} : vector<8x512xf32> to vector<8x128xf32>
    %447 = arith.negf %446 : vector<8x128xf32>
    %448 = math.exp %447 : vector<8x128xf32>
    %cst_216 = arith.constant 1.000000e+00 : f32
    %449 = vector.broadcast %cst_216 : f32 to vector<8x128xf32>
    %450 = arith.addf %449, %448 : vector<8x128xf32>
    %451 = arith.divf %449, %450 : vector<8x128xf32>
    %452 = vector.extract_strided_slice %439 {offsets = [0, 256], sizes = [8, 128], strides = [1, 1]} : vector<8x512xf32> to vector<8x128xf32>
    %453 = math.tanh %452 : vector<8x128xf32>
    %454 = vector.extract_strided_slice %439 {offsets = [0, 384], sizes = [8, 128], strides = [1, 1]} : vector<8x512xf32> to vector<8x128xf32>
    %455 = arith.negf %454 : vector<8x128xf32>
    %456 = math.exp %455 : vector<8x128xf32>
    %cst_217 = arith.constant 1.000000e+00 : f32
    %457 = vector.broadcast %cst_217 : f32 to vector<8x128xf32>
    %458 = arith.addf %457, %456 : vector<8x128xf32>
    %459 = arith.divf %457, %458 : vector<8x128xf32>
    %c0_218 = arith.constant 0 : index
    %c0_219 = arith.constant 0 : index
    %460 = vector.load %arg14[%c0_218, %c0_219] : memref<8x128xf32, #tpu.memory_space<vmem>>, vector<8x128xf32>
    %461 = arith.mulf %451, %460 : vector<8x128xf32>
    %462 = arith.mulf %445, %453 : vector<8x128xf32>
    %463 = arith.addf %461, %462 : vector<8x128xf32>
    %464 = math.tanh %463 : vector<8x128xf32>
    %465 = arith.mulf %459, %464 : vector<8x128xf32>
    %c0_220 = arith.constant 0 : index
    %c0_221 = arith.constant 0 : index
    %466 = vector.load %arg14[%c0_220, %c0_221] : memref<8x128xf32, #tpu.memory_space<vmem>>, vector<8x128xf32>
    tpu.vector_store %arg14[%c0_220, %c0_221], %463 {strides = array<i32>} : memref<8x128xf32, #tpu.memory_space<vmem>>, vector<8x128xf32>,
    %c0_222 = arith.constant 0 : index
    %c0_223 = arith.constant 0 : index
    %467 = vector.load %arg13[%c0_222, %c0_223] : memref<8x128xf32, #tpu.memory_space<vmem>>, vector<8x128xf32>
    tpu.vector_store %arg13[%c0_222, %c0_223], %465 {strides = array<i32>} : memref<8x128xf32, #tpu.memory_space<vmem>>, vector<8x128xf32>,
    %c4_i32_224 = arith.constant 4 : i32
    %c0_225 = arith.constant 0 : index
    %c0_226 = arith.constant 0 : index
    %468 = vector.load %arg13[%c0_225, %c0_226] : memref<8x128xf32, #tpu.memory_space<vmem>>, vector<8x128xf32>
    %469 = arith.index_cast %c4_i32_224 : i32 to index
    %c0_227 = arith.constant 0 : index
    %c0_228 = arith.constant 0 : index
    %470 = vector.load %arg12[%469, %c0_227, %c0_228] : memref<8x8x512xf32, #tpu.memory_space<vmem>>, vector<1x8x512xf32>
    %471 = vector.shape_cast %470 : vector<1x8x512xf32> to vector<8x512xf32>
    %cst_229 = arith.constant dense<0.000000e+00> : vector<8x512xf32>
    %472 = tpu.matmul %468, %319, %cst_229 {dimension_numbers = #tpu.dot_dimension_numbers<[1], [0], [0], [1], [0, 0, 1, 1], [], []>} : vector<8x128xf32>, vector<128x512xf32>, vector<8x512xf32> -> vector<8x512xf32>
    %473 = arith.addf %471, %472 : vector<8x512xf32>
    %474 = vector.extract_strided_slice %473 {offsets = [0, 0], sizes = [8, 128], strides = [1, 1]} : vector<8x512xf32> to vector<8x128xf32>
    %475 = arith.negf %474 : vector<8x128xf32>
    %476 = math.exp %475 : vector<8x128xf32>
    %cst_230 = arith.constant 1.000000e+00 : f32
    %477 = vector.broadcast %cst_230 : f32 to vector<8x128xf32>
    %478 = arith.addf %477, %476 : vector<8x128xf32>
    %479 = arith.divf %477, %478 : vector<8x128xf32>
    %480 = vector.extract_strided_slice %473 {offsets = [0, 128], sizes = [8, 128], strides = [1, 1]} : vector<8x512xf32> to vector<8x128xf32>
    %481 = arith.negf %480 : vector<8x128xf32>
    %482 = math.exp %481 : vector<8x128xf32>
    %cst_231 = arith.constant 1.000000e+00 : f32
    %483 = vector.broadcast %cst_231 : f32 to vector<8x128xf32>
    %484 = arith.addf %483, %482 : vector<8x128xf32>
    %485 = arith.divf %483, %484 : vector<8x128xf32>
    %486 = vector.extract_strided_slice %473 {offsets = [0, 256], sizes = [8, 128], strides = [1, 1]} : vector<8x512xf32> to vector<8x128xf32>
    %487 = math.tanh %486 : vector<8x128xf32>
    %488 = vector.extract_strided_slice %473 {offsets = [0, 384], sizes = [8, 128], strides = [1, 1]} : vector<8x512xf32> to vector<8x128xf32>
    %489 = arith.negf %488 : vector<8x128xf32>
    %490 = math.exp %489 : vector<8x128xf32>
    %cst_232 = arith.constant 1.000000e+00 : f32
    %491 = vector.broadcast %cst_232 : f32 to vector<8x128xf32>
    %492 = arith.addf %491, %490 : vector<8x128xf32>
    %493 = arith.divf %491, %492 : vector<8x128xf32>
    %c0_233 = arith.constant 0 : index
    %c0_234 = arith.constant 0 : index
    %494 = vector.load %arg14[%c0_233, %c0_234] : memref<8x128xf32, #tpu.memory_space<vmem>>, vector<8x128xf32>
    %495 = arith.mulf %485, %494 : vector<8x128xf32>
    %496 = arith.mulf %479, %487 : vector<8x128xf32>
    %497 = arith.addf %495, %496 : vector<8x128xf32>
    %498 = math.tanh %497 : vector<8x128xf32>
    %499 = arith.mulf %493, %498 : vector<8x128xf32>
    %c0_235 = arith.constant 0 : index
    %c0_236 = arith.constant 0 : index
    %500 = vector.load %arg14[%c0_235, %c0_236] : memref<8x128xf32, #tpu.memory_space<vmem>>, vector<8x128xf32>
    tpu.vector_store %arg14[%c0_235, %c0_236], %497 {strides = array<i32>} : memref<8x128xf32, #tpu.memory_space<vmem>>, vector<8x128xf32>,
    %c0_237 = arith.constant 0 : index
    %c0_238 = arith.constant 0 : index
    %501 = vector.load %arg13[%c0_237, %c0_238] : memref<8x128xf32, #tpu.memory_space<vmem>>, vector<8x128xf32>
    tpu.vector_store %arg13[%c0_237, %c0_238], %499 {strides = array<i32>} : memref<8x128xf32, #tpu.memory_space<vmem>>, vector<8x128xf32>,
    %c5_i32_239 = arith.constant 5 : i32
    %c0_240 = arith.constant 0 : index
    %c0_241 = arith.constant 0 : index
    %502 = vector.load %arg13[%c0_240, %c0_241] : memref<8x128xf32, #tpu.memory_space<vmem>>, vector<8x128xf32>
    %503 = arith.index_cast %c5_i32_239 : i32 to index
    %c0_242 = arith.constant 0 : index
    %c0_243 = arith.constant 0 : index
    %504 = vector.load %arg12[%503, %c0_242, %c0_243] : memref<8x8x512xf32, #tpu.memory_space<vmem>>, vector<1x8x512xf32>
    %505 = vector.shape_cast %504 : vector<1x8x512xf32> to vector<8x512xf32>
    %cst_244 = arith.constant dense<0.000000e+00> : vector<8x512xf32>
    %506 = tpu.matmul %502, %319, %cst_244 {dimension_numbers = #tpu.dot_dimension_numbers<[1], [0], [0], [1], [0, 0, 1, 1], [], []>} : vector<8x128xf32>, vector<128x512xf32>, vector<8x512xf32> -> vector<8x512xf32>
    %507 = arith.addf %505, %506 : vector<8x512xf32>
    %508 = vector.extract_strided_slice %507 {offsets = [0, 0], sizes = [8, 128], strides = [1, 1]} : vector<8x512xf32> to vector<8x128xf32>
    %509 = arith.negf %508 : vector<8x128xf32>
    %510 = math.exp %509 : vector<8x128xf32>
    %cst_245 = arith.constant 1.000000e+00 : f32
    %511 = vector.broadcast %cst_245 : f32 to vector<8x128xf32>
    %512 = arith.addf %511, %510 : vector<8x128xf32>
    %513 = arith.divf %511, %512 : vector<8x128xf32>
    %514 = vector.extract_strided_slice %507 {offsets = [0, 128], sizes = [8, 128], strides = [1, 1]} : vector<8x512xf32> to vector<8x128xf32>
    %515 = arith.negf %514 : vector<8x128xf32>
    %516 = math.exp %515 : vector<8x128xf32>
    %cst_246 = arith.constant 1.000000e+00 : f32
    %517 = vector.broadcast %cst_246 : f32 to vector<8x128xf32>
    %518 = arith.addf %517, %516 : vector<8x128xf32>
    %519 = arith.divf %517, %518 : vector<8x128xf32>
    %520 = vector.extract_strided_slice %507 {offsets = [0, 256], sizes = [8, 128], strides = [1, 1]} : vector<8x512xf32> to vector<8x128xf32>
    %521 = math.tanh %520 : vector<8x128xf32>
    %522 = vector.extract_strided_slice %507 {offsets = [0, 384], sizes = [8, 128], strides = [1, 1]} : vector<8x512xf32> to vector<8x128xf32>
    %523 = arith.negf %522 : vector<8x128xf32>
    %524 = math.exp %523 : vector<8x128xf32>
    %cst_247 = arith.constant 1.000000e+00 : f32
    %525 = vector.broadcast %cst_247 : f32 to vector<8x128xf32>
    %526 = arith.addf %525, %524 : vector<8x128xf32>
    %527 = arith.divf %525, %526 : vector<8x128xf32>
    %c0_248 = arith.constant 0 : index
    %c0_249 = arith.constant 0 : index
    %528 = vector.load %arg14[%c0_248, %c0_249] : memref<8x128xf32, #tpu.memory_space<vmem>>, vector<8x128xf32>
    %529 = arith.mulf %519, %528 : vector<8x128xf32>
    %530 = arith.mulf %513, %521 : vector<8x128xf32>
    %531 = arith.addf %529, %530 : vector<8x128xf32>
    %532 = math.tanh %531 : vector<8x128xf32>
    %533 = arith.mulf %527, %532 : vector<8x128xf32>
    %c0_250 = arith.constant 0 : index
    %c0_251 = arith.constant 0 : index
    %534 = vector.load %arg14[%c0_250, %c0_251] : memref<8x128xf32, #tpu.memory_space<vmem>>, vector<8x128xf32>
    tpu.vector_store %arg14[%c0_250, %c0_251], %531 {strides = array<i32>} : memref<8x128xf32, #tpu.memory_space<vmem>>, vector<8x128xf32>,
    %c0_252 = arith.constant 0 : index
    %c0_253 = arith.constant 0 : index
    %535 = vector.load %arg13[%c0_252, %c0_253] : memref<8x128xf32, #tpu.memory_space<vmem>>, vector<8x128xf32>
    tpu.vector_store %arg13[%c0_252, %c0_253], %533 {strides = array<i32>} : memref<8x128xf32, #tpu.memory_space<vmem>>, vector<8x128xf32>,
    %c6_i32_254 = arith.constant 6 : i32
    %c0_255 = arith.constant 0 : index
    %c0_256 = arith.constant 0 : index
    %536 = vector.load %arg13[%c0_255, %c0_256] : memref<8x128xf32, #tpu.memory_space<vmem>>, vector<8x128xf32>
    %537 = arith.index_cast %c6_i32_254 : i32 to index
    %c0_257 = arith.constant 0 : index
    %c0_258 = arith.constant 0 : index
    %538 = vector.load %arg12[%537, %c0_257, %c0_258] : memref<8x8x512xf32, #tpu.memory_space<vmem>>, vector<1x8x512xf32>
    %539 = vector.shape_cast %538 : vector<1x8x512xf32> to vector<8x512xf32>
    %cst_259 = arith.constant dense<0.000000e+00> : vector<8x512xf32>
    %540 = tpu.matmul %536, %319, %cst_259 {dimension_numbers = #tpu.dot_dimension_numbers<[1], [0], [0], [1], [0, 0, 1, 1], [], []>} : vector<8x128xf32>, vector<128x512xf32>, vector<8x512xf32> -> vector<8x512xf32>
    %541 = arith.addf %539, %540 : vector<8x512xf32>
    %542 = vector.extract_strided_slice %541 {offsets = [0, 0], sizes = [8, 128], strides = [1, 1]} : vector<8x512xf32> to vector<8x128xf32>
    %543 = arith.negf %542 : vector<8x128xf32>
    %544 = math.exp %543 : vector<8x128xf32>
    %cst_260 = arith.constant 1.000000e+00 : f32
    %545 = vector.broadcast %cst_260 : f32 to vector<8x128xf32>
    %546 = arith.addf %545, %544 : vector<8x128xf32>
    %547 = arith.divf %545, %546 : vector<8x128xf32>
    %548 = vector.extract_strided_slice %541 {offsets = [0, 128], sizes = [8, 128], strides = [1, 1]} : vector<8x512xf32> to vector<8x128xf32>
    %549 = arith.negf %548 : vector<8x128xf32>
    %550 = math.exp %549 : vector<8x128xf32>
    %cst_261 = arith.constant 1.000000e+00 : f32
    %551 = vector.broadcast %cst_261 : f32 to vector<8x128xf32>
    %552 = arith.addf %551, %550 : vector<8x128xf32>
    %553 = arith.divf %551, %552 : vector<8x128xf32>
    %554 = vector.extract_strided_slice %541 {offsets = [0, 256], sizes = [8, 128], strides = [1, 1]} : vector<8x512xf32> to vector<8x128xf32>
    %555 = math.tanh %554 : vector<8x128xf32>
    %556 = vector.extract_strided_slice %541 {offsets = [0, 384], sizes = [8, 128], strides = [1, 1]} : vector<8x512xf32> to vector<8x128xf32>
    %557 = arith.negf %556 : vector<8x128xf32>
    %558 = math.exp %557 : vector<8x128xf32>
    %cst_262 = arith.constant 1.000000e+00 : f32
    %559 = vector.broadcast %cst_262 : f32 to vector<8x128xf32>
    %560 = arith.addf %559, %558 : vector<8x128xf32>
    %561 = arith.divf %559, %560 : vector<8x128xf32>
    %c0_263 = arith.constant 0 : index
    %c0_264 = arith.constant 0 : index
    %562 = vector.load %arg14[%c0_263, %c0_264] : memref<8x128xf32, #tpu.memory_space<vmem>>, vector<8x128xf32>
    %563 = arith.mulf %553, %562 : vector<8x128xf32>
    %564 = arith.mulf %547, %555 : vector<8x128xf32>
    %565 = arith.addf %563, %564 : vector<8x128xf32>
    %566 = math.tanh %565 : vector<8x128xf32>
    %567 = arith.mulf %561, %566 : vector<8x128xf32>
    %c0_265 = arith.constant 0 : index
    %c0_266 = arith.constant 0 : index
    %568 = vector.load %arg14[%c0_265, %c0_266] : memref<8x128xf32, #tpu.memory_space<vmem>>, vector<8x128xf32>
    tpu.vector_store %arg14[%c0_265, %c0_266], %565 {strides = array<i32>} : memref<8x128xf32, #tpu.memory_space<vmem>>, vector<8x128xf32>,
    %c0_267 = arith.constant 0 : index
    %c0_268 = arith.constant 0 : index
    %569 = vector.load %arg13[%c0_267, %c0_268] : memref<8x128xf32, #tpu.memory_space<vmem>>, vector<8x128xf32>
    tpu.vector_store %arg13[%c0_267, %c0_268], %567 {strides = array<i32>} : memref<8x128xf32, #tpu.memory_space<vmem>>, vector<8x128xf32>,
    %c7_i32_269 = arith.constant 7 : i32
    %c0_270 = arith.constant 0 : index
    %c0_271 = arith.constant 0 : index
    %570 = vector.load %arg13[%c0_270, %c0_271] : memref<8x128xf32, #tpu.memory_space<vmem>>, vector<8x128xf32>
    %571 = arith.index_cast %c7_i32_269 : i32 to index
    %c0_272 = arith.constant 0 : index
    %c0_273 = arith.constant 0 : index
    %572 = vector.load %arg12[%571, %c0_272, %c0_273] : memref<8x8x512xf32, #tpu.memory_space<vmem>>, vector<1x8x512xf32>
    %573 = vector.shape_cast %572 : vector<1x8x512xf32> to vector<8x512xf32>
    %cst_274 = arith.constant dense<0.000000e+00> : vector<8x512xf32>
    %574 = tpu.matmul %570, %319, %cst_274 {dimension_numbers = #tpu.dot_dimension_numbers<[1], [0], [0], [1], [0, 0, 1, 1], [], []>} : vector<8x128xf32>, vector<128x512xf32>, vector<8x512xf32> -> vector<8x512xf32>
    %575 = arith.addf %573, %574 : vector<8x512xf32>
    %576 = vector.extract_strided_slice %575 {offsets = [0, 0], sizes = [8, 128], strides = [1, 1]} : vector<8x512xf32> to vector<8x128xf32>
    %577 = arith.negf %576 : vector<8x128xf32>
    %578 = math.exp %577 : vector<8x128xf32>
    %cst_275 = arith.constant 1.000000e+00 : f32
    %579 = vector.broadcast %cst_275 : f32 to vector<8x128xf32>
    %580 = arith.addf %579, %578 : vector<8x128xf32>
    %581 = arith.divf %579, %580 : vector<8x128xf32>
    %582 = vector.extract_strided_slice %575 {offsets = [0, 128], sizes = [8, 128], strides = [1, 1]} : vector<8x512xf32> to vector<8x128xf32>
    %583 = arith.negf %582 : vector<8x128xf32>
    %584 = math.exp %583 : vector<8x128xf32>
    %cst_276 = arith.constant 1.000000e+00 : f32
    %585 = vector.broadcast %cst_276 : f32 to vector<8x128xf32>
    %586 = arith.addf %585, %584 : vector<8x128xf32>
    %587 = arith.divf %585, %586 : vector<8x128xf32>
    %588 = vector.extract_strided_slice %575 {offsets = [0, 256], sizes = [8, 128], strides = [1, 1]} : vector<8x512xf32> to vector<8x128xf32>
    %589 = math.tanh %588 : vector<8x128xf32>
    %590 = vector.extract_strided_slice %575 {offsets = [0, 384], sizes = [8, 128], strides = [1, 1]} : vector<8x512xf32> to vector<8x128xf32>
    %591 = arith.negf %590 : vector<8x128xf32>
    %592 = math.exp %591 : vector<8x128xf32>
    %cst_277 = arith.constant 1.000000e+00 : f32
    %593 = vector.broadcast %cst_277 : f32 to vector<8x128xf32>
    %594 = arith.addf %593, %592 : vector<8x128xf32>
    %595 = arith.divf %593, %594 : vector<8x128xf32>
    %c0_278 = arith.constant 0 : index
    %c0_279 = arith.constant 0 : index
    %596 = vector.load %arg14[%c0_278, %c0_279] : memref<8x128xf32, #tpu.memory_space<vmem>>, vector<8x128xf32>
    %597 = arith.mulf %587, %596 : vector<8x128xf32>
    %598 = arith.mulf %581, %589 : vector<8x128xf32>
    %599 = arith.addf %597, %598 : vector<8x128xf32>
    %600 = math.tanh %599 : vector<8x128xf32>
    %601 = arith.mulf %595, %600 : vector<8x128xf32>
    %c0_280 = arith.constant 0 : index
    %c0_281 = arith.constant 0 : index
    %602 = vector.load %arg14[%c0_280, %c0_281] : memref<8x128xf32, #tpu.memory_space<vmem>>, vector<8x128xf32>
    tpu.vector_store %arg14[%c0_280, %c0_281], %599 {strides = array<i32>} : memref<8x128xf32, #tpu.memory_space<vmem>>, vector<8x128xf32>,
    %c0_282 = arith.constant 0 : index
    %c0_283 = arith.constant 0 : index
    %603 = vector.load %arg13[%c0_282, %c0_283] : memref<8x128xf32, #tpu.memory_space<vmem>>, vector<8x128xf32>
    tpu.vector_store %arg13[%c0_282, %c0_283], %601 {strides = array<i32>} : memref<8x128xf32, #tpu.memory_space<vmem>>, vector<8x128xf32>,
    %c8_i32_284 = arith.constant 8 : i32
    %c0_285 = arith.constant 0 : index
    %c0_286 = arith.constant 0 : index
    %604 = vector.load %arg13[%c0_285, %c0_286] : memref<8x128xf32, #tpu.memory_space<vmem>>, vector<8x128xf32>
    %c0_287 = arith.constant 0 : index
    %c0_288 = arith.constant 0 : index
    %605 = vector.load %arg8[%c0_287, %c0_288] : memref<128x128xf32, #tpu.memory_space<vmem>>, vector<128x128xf32>
    %cst_289 = arith.constant dense<0.000000e+00> : vector<8x128xf32>
    %606 = tpu.matmul %604, %605, %cst_289 {dimension_numbers = #tpu.dot_dimension_numbers<[1], [0], [0], [1], [0, 0, 1, 1], [], []>} : vector<8x128xf32>, vector<128x128xf32>, vector<8x128xf32> -> vector<8x128xf32>
    %c0_290 = arith.constant 0 : index
    %c0_291 = arith.constant 0 : index
    %607 = vector.load %arg9[%c0_290, %c0_291] : memref<1x128xf32, #tpu.memory_space<vmem>>, vector<1x128xf32>
    %608 = vector.broadcast %607 : vector<1x128xf32> to vector<8x128xf32>
    %609 = arith.addf %606, %608 : vector<8x128xf32>
    %c0_292 = arith.constant 0 : index
    %c0_293 = arith.constant 0 : index
    %610 = vector.load %arg10[%c0_292, %c0_293] : memref<8x128xf32, #tpu.memory_space<vmem>>, vector<8x128xf32>
    tpu.vector_store %arg10[%c0_292, %c0_293], %609 {strides = array<i32>} : memref<8x128xf32, #tpu.memory_space<vmem>>, vector<8x128xf32>,
    return
  }
  func.func @transform_0(%arg0: i32) -> (i32, i32, i32) {
    %c0_i32 = arith.constant 0 : i32
    %c0_i32_0 = arith.constant 0 : i32
    %c0_i32_1 = arith.constant 0 : i32
    return %c0_i32, %arg0, %c0_i32_0 : i32, i32, i32
  }
  func.func @transform_1(%arg0: i32) -> (i32, i32) {
    %c0_i32 = arith.constant 0 : i32
    %c0_i32_0 = arith.constant 0 : i32
    %c0_i32_1 = arith.constant 0 : i32
    return %c0_i32, %c0_i32_0 : i32, i32
  }
  func.func @transform_2(%arg0: i32) -> (i32, i32) {
    %c0_i32 = arith.constant 0 : i32
    %c0_i32_0 = arith.constant 0 : i32
    %c0_i32_1 = arith.constant 0 : i32
    return %c0_i32, %c0_i32_0 : i32, i32
  }
  func.func @transform_3(%arg0: i32) -> (i32, i32) {
    %c0_i32 = arith.constant 0 : i32
    %c0_i32_0 = arith.constant 0 : i32
    %c0_i32_1 = arith.constant 0 : i32
    return %c0_i32, %c0_i32_0 : i32, i32
  }
  func.func @transform_4(%arg0: i32) -> (i32, i32) {
    %c0_i32 = arith.constant 0 : i32
    %c0_i32_0 = arith.constant 0 : i32
    %c0_i32_1 = arith.constant 0 : i32
    return %c0_i32, %c0_i32_0 : i32, i32
  }
  func.func @transform_5(%arg0: i32) -> (i32, i32) {
    %c0_i32 = arith.constant 0 : i32
    %c0_i32_0 = arith.constant 0 : i32
    %c0_i32_1 = arith.constant 0 : i32
    return %c0_i32, %c0_i32_0 : i32, i32
  }
  func.func @transform_6(%arg0: i32) -> (i32, i32) {
    %c0_i32 = arith.constant 0 : i32
    %c0_i32_0 = arith.constant 0 : i32
    %c0_i32_1 = arith.constant 0 : i32
    return %c0_i32, %c0_i32_0 : i32, i32
  }
  func.func @transform_7(%arg0: i32) -> (i32, i32) {
    %c0_i32 = arith.constant 0 : i32
    %c0_i32_0 = arith.constant 0 : i32
    %c0_i32_1 = arith.constant 0 : i32
    return %c0_i32, %c0_i32_0 : i32, i32
  }
  func.func @transform_8(%arg0: i32) -> (i32, i32) {
    %c0_i32 = arith.constant 0 : i32
    %c0_i32_0 = arith.constant 0 : i32
    %c0_i32_1 = arith.constant 0 : i32
    return %c0_i32, %c0_i32_0 : i32, i32
  }
  func.func @transform_9(%arg0: i32) -> (i32, i32) {
    %c0_i32 = arith.constant 0 : i32
    %c0_i32_0 = arith.constant 0 : i32
    return %arg0, %c0_i32 : i32, i32
  }
}

</mosaic_0001>

<bundles_post_ra>
// kernel: tpu_custom_call.1
= control target key start
LH: loop header
LB: loop body
LE: loop exit
PB: predicated region body
PF: predicated region fallthrough
CT: control target
= control target key end

     0   :  { %14 = vsyncpa [#allocation7], 0  ;;  %s6674_s0 = inlined_call_operand.hbm [shape: f32[8,8,128], index: 0, kind: input, shape index: {}]   ;;  %s6675_s1 = inlined_call_operand.hbm [shape: f32[128,512], index: 1, kind: input, shape index: {}]   ;;  %s6676_s2 = inlined_call_operand.hbm [shape: f32[128,512], index: 2, kind: input, shape index: {}]   ;;  %s6677_s3 = inlined_call_operand.vmem [shape: f32[1,512], index: 3, kind: input, shape index: {}]   ;;  %s6678_s4 = inlined_call_operand.hbm [shape: f32[128,512], index: 4, kind: input, shape index: {}]   ;;  %s6679_s5 = inlined_call_operand.hbm [shape: f32[128,512], index: 5, kind: input, shape index: {}]   ;;  %s6680_s6 = inlined_call_operand.vmem [shape: f32[1,512], index: 6, kind: input, shape index: {}]   ;;  %s6681_s7 = inlined_call_operand.hbm [shape: f32[128,128], index: 7, kind: input, shape index: {}]   ;;  %s6682_s8 = inlined_call_operand.vmem [shape: f32[1,128], index: 8, kind: input, shape index: {}]   ;;  %s6683_s9 = inlined_call_operand.hbm [shape: f32[8,128], index: 9, kind: output, shape index: {}]  }
   0x1   :  { %15 = vsyncpa [#allocation10], 0 }
   0x2   :  { %16 = vsyncpa [#allocation13], 0 }
   0x3   :  { %17 = vsyncpa [#allocation16], 0 }
   0x4   :  { %18 = vsyncpa [#allocation8], 0  ;;  %s4582_s30 = smov [#allocation9]  }
   0x5   :  { %s36_s10 = sshll.u32 %s4582_s30, 4  ;;  %s37_s10 = int_to_ptr.vmem [resolvable:$true] %s36_s10 }
   0x6   :  { %s4440_s11 = scalar_lea.vmem %s37_s10, 8192  ;;  %p4445_p1 = scmp.lt.s32.totalorder %s37_s10, %s37_s10 }
   0x7   :  { %p4441_p0 = scmp.ne.s32.totalorder %s37_s10, %s4440_s11  ;;  %p4446_p2 = scmp.lt.s32.totalorder %s4440_s11, %s4440_s11 }
   0x9   :  { %p4447_p3 = por %p4446_p2, %p4445_p1 }
   0xb   :  { %p4448_p4 = pnand %p4447_p3, %p4441_p0 }
   0xd   :  { %4451 = shalt.err (!%p4448_p4)
}
   0xe   :  { %s4583_s12 = smov 512   ;;  %s4584_s13 = smov 32  }
   0xf   :  { %42 = dma.hbm_to_vmem [thread:$0]  %s6675_s1, 8192, %s37_s10, [#allocation10], %s4583_s12, %s4583_s12, %s4584_s13  }
  0x10   :  { %s4585_s16 = smov [#allocation12]   ;;  %s4586_s18 = smov [#allocation6]  }
  0x11   :  { %s62_s17 = sshll.u32 %s4585_s16, 4  ;;  %s24_s19 = sshll.u32 %s4586_s18, 4  ;;  %s63_s17 = int_to_ptr.vmem [resolvable:$true] %s62_s17  ;;  %s25_s19 = int_to_ptr.vmem [resolvable:$true] %s24_s19 }
  0x12   :  { %s4460_s20 = scalar_lea.vmem %s63_s17, 8192  ;;  %p4465_p6 = scmp.lt.s32.totalorder %s63_s17, %s63_s17 }
  0x13   :  { %p4461_p5 = scmp.ne.s32.totalorder %s63_s17, %s4460_s20  ;;  %p4466_p7 = scmp.lt.s32.totalorder %s4460_s20, %s4460_s20 }
  0x15   :  { %p4467_p8 = por %p4466_p7, %p4465_p6 }
  0x17   :  { %p4468_p9 = pnand %p4467_p8, %p4461_p5 }
  0x19   :  { %4471 = shalt.err (!%p4468_p9)
}
  0x1a   :  { %68 = dma.hbm_to_vmem [thread:$0]  %s6678_s4, 8192, %s63_s17, [#allocation13], %s4583_s12, %s4583_s12, %s4584_s13  }
  0x1b   :  { %s4480_s1 = scalar_lea.vmem %s25_s19, 1024  ;;  %p4485_p11 = scmp.lt.s32.totalorder %s25_s19, %s25_s19 }
  0x1c   :  { %p4481_p10 = scmp.ne.s32.totalorder %s25_s19, %s4480_s1  ;;  %p4486_p12 = scmp.lt.s32.totalorder %s4480_s1, %s4480_s1 }
  0x1e   :  { %p4487_p13 = por %p4486_p12, %p4485_p11 }
  0x20   :  { %p4488_p0 = pnand %p4487_p13, %p4481_p10 }
  0x22   :  { %4491 = shalt.err (!%p4488_p0)
}
  0x23   :  { %s4587_s23 = smov 128   ;;  %s4588_s24 = smov 8  }
  0x24   :  { %30 = dma.hbm_to_vmem [thread:$0]  %s6674_s0, 1024, %s25_s19, [#allocation7], %s4587_s23, %s4587_s23, %s4588_s24  }
  0x25   :  { %s4589_s27 = smov [#allocation11]   ;;  %s4590_s4 = smov [#allocation14]  }
  0x26   :  { %s48_s28 = sshll.u32 %s4589_s27, 4  ;;  %s74_s29 = sshll.u32 %s4590_s4, 4  ;;  %s49_s28 = int_to_ptr.vmem [resolvable:$true] %s48_s28  ;;  %s75_s29 = int_to_ptr.vmem [resolvable:$true] %s74_s29 }
  0x27   :  { %s4500_s30 = scalar_lea.vmem %s49_s28, 8192  ;;  %p4505_p2 = scmp.lt.s32.totalorder %s49_s28, %s49_s28 }
  0x28   :  { %p4501_p1 = scmp.ne.s32.totalorder %s49_s28, %s4500_s30  ;;  %p4506_p3 = scmp.lt.s32.totalorder %s4500_s30, %s4500_s30 }
  0x2a   :  { %p4507_p4 = por %p4506_p3, %p4505_p2 }
  0x2c   :  { %p4508_p5 = pnand %p4507_p4, %p4501_p1 }
  0x2e   :  { %4511 = shalt.err (!%p4508_p5)
}
  0x2f   :  { %54 = dma.hbm_to_vmem [thread:$0]  %s6676_s2, 8192, %s49_s28, [#allocation10], %s4583_s12, %s4583_s12, %s4584_s13  }
  0x30   :  { %s4520_s0 = scalar_lea.vmem %s75_s29, 8192  ;;  %p4525_p7 = scmp.lt.s32.totalorder %s75_s29, %s75_s29 }
  0x31   :  { %p4521_p6 = scmp.ne.s32.totalorder %s75_s29, %s4520_s0  ;;  %p4526_p8 = scmp.lt.s32.totalorder %s4520_s0, %s4520_s0 }
  0x33   :  { %p4527_p9 = por %p4526_p8, %p4525_p7 }
  0x35   :  { %p4528_p10 = pnand %p4527_p9, %p4521_p6 }
  0x37   :  { %4531 = shalt.err (!%p4528_p10)
}
  0x38   :  { %80 = dma.hbm_to_vmem [thread:$0]  %s6679_s5, 8192, %s75_s29, [#allocation13], %s4583_s12, %s4583_s12, %s4584_s13  }
  0x39   :  { %s4591_s16 = smov [#allocation15]  }
  0x3a   :  { %s88_s17 = sshll.u32 %s4591_s16, 4  ;;  %s89_s17 = int_to_ptr.vmem [resolvable:$true] %s88_s17 }
  0x3b   :  { %s4540_s18 = scalar_lea.vmem %s89_s17, 2048  ;;  %p4545_p12 = scmp.lt.s32.totalorder %s89_s17, %s89_s17 }
  0x3c   :  { %p4541_p11 = scmp.ne.s32.totalorder %s89_s17, %s4540_s18  ;;  %p4546_p13 = scmp.lt.s32.totalorder %s4540_s18, %s4540_s18 }
  0x3e   :  { %p4547_p0 = por %p4546_p13, %p4545_p12 }
  0x40   :  { %p4548_p1 = pnand %p4547_p0, %p4541_p11 }
  0x42   :  { %4551 = shalt.err (!%p4548_p1)
}
  0x43   :  { %94 = dma.hbm_to_vmem [thread:$0]  %s6681_s7, 2048, %s89_s17, [#allocation16], %s4587_s23, %s4587_s23, %s4588_s24  }
  0x44   :  { %4572 = dma.done.wait [#allocation7], 1024  }
  0x45   :  { %4573 = vsyncadd [#allocation7], 4294966272 }
  0x46   :  { %4574 = dma.done.wait [#allocation10], 16384  }
  0x47   :  { %4575 = vsyncadd [#allocation10], 4294950912 }
  0x48   :  { %4576 = dma.done.wait [#allocation13], 16384  }
  0x49   :  { %4577 = vsyncadd [#allocation13], 4294950912 }
  0x4a   :  { %4578 = dma.done.wait [#allocation16], 2048  }
  0x4b   :  { %4579 = vsyncadd [#allocation16], 4294965248  ;;  %v6684_v0 = vmov 0.0   ;;  %v176_v1 = vld [vmem:[#allocation9 + $0x1e8] sm:$0xff]  ;;  %v178_v2 = vld [vmem:[#allocation9 + $0x1f8] sm:$0xff]  ;;  %vm4593_vm0 = vmmov 0  }
  0x4c   :  { %337 = vmatprep.mubr.f32.mxu0 %v6684_v0  ;;  %450 = vmatprep.mubr.f32.mxu1 %v6684_v0  ;;  %v175_v3 = vld [vmem:[#allocation9 + $0x1e0] sm:$0xff]  ;;  %v177_v4 = vld [vmem:[#allocation9 + $0x1f0] sm:$0xff]  ;;  %v172_v5 = vld [vmem:[#allocation9 + $0x1c8] sm:$0xff]  ;;  %s4594_s20 = smov [#allocation17]  }
  0x4d   :  { %273 = vmatprep.subr.mxu0 %v176_v1  ;;  %386 = vmatprep.subr.mxu1 %v178_v2  ;;  %v174_v6 = vld [vmem:[#allocation9 + $0x1d8] sm:$0xff]  ;;  %v171_v7 = vld [vmem:[#allocation9 + $0x1c0] sm:$0xff]  ;;  %v173_v8 = vld [vmem:[#allocation9 + $0x1d0] sm:$0xff]  ;;  %s3922_s21 = sshll.u32 %s4594_s20, 4  ;;  %s3923_s21 = int_to_ptr.vmem [resolvable:$true] %s3922_s21 }
  0x4e   :  { %274 = vmatpush1.msra.mxu0 %v175_v3  ;;  %387 = vmatpush1.msra.mxu1 %v177_v4  ;;  %v168_v9 = vld [vmem:[#allocation9 + $0x1a8] sm:$0xff]  ;;  %v170_v10 = vld [vmem:[#allocation9 + $0x1b8] sm:$0xff]  ;;  %v167_v11 = vld [vmem:[#allocation9 + $0x1a0] sm:$0xff]  ;;  %s4552_s22 = scalar_lea.vmem %s3923_s21, 128  ;;  %p4557_p3 = scmp.lt.s32.totalorder %s3923_s21, %s3923_s21 }
  0x4f   :  { %275 = vmatprep.subr.mxu0 %v172_v5  ;;  %388 = vmatprep.subr.mxu1 %v174_v6  ;;  %v169_v12 = vld [vmem:[#allocation9 + $0x1b0] sm:$0xff]  ;;  %v164_v13 = vld [vmem:[#allocation9 + $0x188] sm:$0xff]  ;;  %v166_v14 = vld [vmem:[#allocation9 + $0x198] sm:$0xff]  ;;  %p4553_p2 = scmp.ne.s32.totalorder %s3923_s21, %s4552_s22  ;;  %p4558_p4 = scmp.lt.s32.totalorder %s4552_s22, %s4552_s22 }
  0x50   :  { %276 = vmatpush1.msra.mxu0 %v171_v7  ;;  %389 = vmatpush1.msra.mxu1 %v173_v8  ;;  %v163_v15 = vld [vmem:[#allocation9 + $0x180] sm:$0xff]  ;;  %v165_v16 = vld [vmem:[#allocation9 + $0x190] sm:$0xff]  ;;  %v160_v17 = vld [vmem:[#allocation9 + $0x168] sm:$0xff] }
  0x51   :  { %277 = vmatprep.subr.mxu0 %v168_v9  ;;  %390 = vmatprep.subr.mxu1 %v170_v10  ;;  %v162_v18 = vld [vmem:[#allocation9 + $0x178] sm:$0xff]  ;;  %v159_v19 = vld [vmem:[#allocation9 + $0x160] sm:$0xff]  ;;  %v161_v20 = vld [vmem:[#allocation9 + $0x170] sm:$0xff]  ;;  %p4559_p5 = por %p4558_p4, %p4557_p3 }
  0x52   :  { %278 = vmatpush1.msra.mxu0 %v167_v11  ;;  %391 = vmatpush1.msra.mxu1 %v169_v12  ;;  %v156_v21 = vld [vmem:[#allocation9 + $0x148] sm:$0xff]  ;;  %v158_v22 = vld [vmem:[#allocation9 + $0x158] sm:$0xff]  ;;  %v155_v23 = vld [vmem:[#allocation9 + $0x140] sm:$0xff] }
  0x53   :  { %279 = vmatprep.subr.mxu0 %v164_v13  ;;  %392 = vmatprep.subr.mxu1 %v166_v14  ;;  %v157_v24 = vld [vmem:[#allocation9 + $0x150] sm:$0xff]  ;;  %v152_v25 = vld [vmem:[#allocation9 + $0x128] sm:$0xff]  ;;  %v154_v26 = vld [vmem:[#allocation9 + $0x138] sm:$0xff]  ;;  %p4560_p6 = pnand %p4559_p5, %p4553_p2 }
  0x54   :  { %280 = vmatpush1.msra.mxu0 %v163_v15  ;;  %393 = vmatpush1.msra.mxu1 %v165_v16  ;;  %v151_v27 = vld [vmem:[#allocation9 + $0x120] sm:$0xff]  ;;  %v153_v28 = vld [vmem:[#allocation9 + $0x130] sm:$0xff]  ;;  %v148_v29 = vld [vmem:[#allocation9 + $0x108] sm:$0xff] }
  0x55   :  { %281 = vmatprep.subr.mxu0 %v160_v17  ;;  %394 = vmatprep.subr.mxu1 %v162_v18  ;;  %v150_v30 = vld [vmem:[#allocation9 + $0x118] sm:$0xff]  ;;  %v147_v31 = vld [vmem:[#allocation9 + $0x100] sm:$0xff]  ;;  %v149_v32 = vld [vmem:[#allocation9 + $0x110] sm:$0xff] }
  0x56   :  { %282 = vmatpush1.msra.mxu0 %v159_v19  ;;  %395 = vmatpush1.msra.mxu1 %v161_v20  ;;  %v144_v33 = vld [vmem:[#allocation9 + $0xe8] sm:$0xff]  ;;  %v146_v34 = vld [vmem:[#allocation9 + $0xf8] sm:$0xff]  ;;  %v143_v35 = vld [vmem:[#allocation9 + $0xe0] sm:$0xff] }
  0x57   :  { %283 = vmatprep.subr.mxu0 %v156_v21  ;;  %396 = vmatprep.subr.mxu1 %v158_v22  ;;  %v145_v36 = vld [vmem:[#allocation9 + $0xf0] sm:$0xff]  ;;  %v140_v37 = vld [vmem:[#allocation9 + $0xc8] sm:$0xff]  ;;  %v142_v38 = vld [vmem:[#allocation9 + $0xd8] sm:$0xff] }
  0x58   :  { %284 = vmatpush1.msra.mxu0 %v155_v23  ;;  %397 = vmatpush1.msra.mxu1 %v157_v24  ;;  %v139_v39 = vld [vmem:[#allocation9 + $0xc0] sm:$0xff]  ;;  %v141_v40 = vld [vmem:[#allocation9 + $0xd0] sm:$0xff]  ;;  %v136_v41 = vld [vmem:[#allocation9 + $0xa8] sm:$0xff] }
  0x59   :  { %285 = vmatprep.subr.mxu0 %v152_v25  ;;  %398 = vmatprep.subr.mxu1 %v154_v26  ;;  %v138_v42 = vld [vmem:[#allocation9 + $0xb8] sm:$0xff]  ;;  %v135_v43 = vld [vmem:[#allocation9 + $0xa0] sm:$0xff]  ;;  %v137_v44 = vld [vmem:[#allocation9 + $0xb0] sm:$0xff] }
  0x5a   :  { %286 = vmatpush1.msra.mxu0 %v151_v27  ;;  %399 = vmatpush1.msra.mxu1 %v153_v28  ;;  %v132_v45 = vld [vmem:[#allocation9 + $0x88] sm:$0xff]  ;;  %v134_v46 = vld [vmem:[#allocation9 + $0x98] sm:$0xff]  ;;  %v131_v47 = vld [vmem:[#allocation9 + $0x80] sm:$0xff] }
  0x5b   :  { %287 = vmatprep.subr.mxu0 %v148_v29  ;;  %400 = vmatprep.subr.mxu1 %v150_v30  ;;  %v133_v48 = vld [vmem:[#allocation9 + $0x90] sm:$0xff]  ;;  %v128_v49 = vld [vmem:[#allocation9 + $0x68] sm:$0xff]  ;;  %v130_v50 = vld [vmem:[#allocation9 + $0x78] sm:$0xff] }
  0x5c   :  { %288 = vmatpush1.msra.mxu0 %v147_v31  ;;  %401 = vmatpush1.msra.mxu1 %v149_v32  ;;  %v127_v51 = vld [vmem:[#allocation9 + $0x60] sm:$0xff]  ;;  %v129_v52 = vld [vmem:[#allocation9 + $0x70] sm:$0xff]  ;;  %v124_v53 = vld [vmem:[#allocation9 + $0x48] sm:$0xff] }
  0x5d   :  { %289 = vmatprep.subr.mxu0 %v144_v33  ;;  %402 = vmatprep.subr.mxu1 %v146_v34  ;;  %v126_v54 = vld [vmem:[#allocation9 + $0x58] sm:$0xff]  ;;  %v123_v55 = vld [vmem:[#allocation9 + $0x40] sm:$0xff]  ;;  %v125_v56 = vld [vmem:[#allocation9 + $0x50] sm:$0xff] }
  0x5e   :  { %290 = vmatpush1.msra.mxu0 %v143_v35  ;;  %403 = vmatpush1.msra.mxu1 %v145_v36  ;;  %v120_v57 = vld [vmem:[#allocation9 + $0x28] sm:$0xff]  ;;  %v122_v58 = vld [vmem:[#allocation9 + $0x38] sm:$0xff]  ;;  %v119_v59 = vld [vmem:[#allocation9 + $0x20] sm:$0xff] }
  0x5f   :  { %291 = vmatprep.subr.mxu0 %v140_v37  ;;  %404 = vmatprep.subr.mxu1 %v142_v38  ;;  %v121_v60 = vld [vmem:[#allocation9 + $0x30] sm:$0xff]  ;;  %v116_v61 = vld [vmem:[#allocation9 + $0x8] sm:$0xff]  ;;  %v118_v62 = vld [vmem:[#allocation9 + $0x18] sm:$0xff] }
  0x60   :  { %292 = vmatpush1.msra.mxu0 %v139_v39  ;;  %405 = vmatpush1.msra.mxu1 %v141_v40  ;;  %v115_v63 = vld [vmem:[#allocation9] sm:$0xff]  ;;  %v117_v1 = vld [vmem:[#allocation9 + $0x10] sm:$0xff]  ;;  %v4683_v3 = vld [vmem:[#allocation11 + $0x1e8] sm:$0xff] }
  0x61   :  { %293 = vmatprep.subr.mxu0 %v136_v41  ;;  %406 = vmatprep.subr.mxu1 %v138_v42  ;;  %v244_v2 = vld [vmem:[#allocation6] sm:$0xff]  ;;  %6890 = vst [vmem:[#allocation23_spill] sm:$0xff] %v4683_v3  ;;  %v4685_v4 = vld [vmem:[#allocation11 + $0x1f8] sm:$0xff]  ;;  %v4689_v6 = vld [vmem:[#allocation11 + $0x1f0] sm:$0xff] }
  0x62   :  { %294 = vmatpush1.msra.mxu0 %v135_v43  ;;  %407 = vmatpush1.msra.mxu1 %v137_v44  ;;  %6891 = vst [vmem:[#allocation24_spill] sm:$0xff] %v4685_v4  ;;  %v4687_v5 = vld [vmem:[#allocation11 + $0x1e0] sm:$0xff]  ;;  %v4691_v7 = vld [vmem:[#allocation11 + $0x1c8] sm:$0xff]  ;;  %v4693_v8 = vld [vmem:[#allocation11 + $0x1d8] sm:$0xff] }
  0x63   :  { %295 = vmatprep.subr.mxu0 %v132_v45  ;;  %408 = vmatprep.subr.mxu1 %v134_v46  ;;  %v4699_v9 = vld [vmem:[#allocation11 + $0x1c0] sm:$0xff]  ;;  %v4701_v10 = vld [vmem:[#allocation11 + $0x1d0] sm:$0xff]  ;;  %v245_v11 = vld [vmem:[#allocation6 + $0x8] sm:$0xff] }
  0x64   :  { %296 = vmatpush1.msra.mxu0 %v131_v47  ;;  %409 = vmatpush1.msra.mxu1 %v133_v48  ;;  %v4707_v12 = vld [vmem:[#allocation11 + $0x1a8] sm:$0xff]  ;;  %v4709_v13 = vld [vmem:[#allocation11 + $0x1b8] sm:$0xff]  ;;  %v4713_v14 = vld [vmem:[#allocation11 + $0x1a0] sm:$0xff] }
  0x65   :  { %297 = vmatprep.subr.mxu0 %v128_v49  ;;  %410 = vmatprep.subr.mxu1 %v130_v50  ;;  %v4715_v15 = vld [vmem:[#allocation11 + $0x1b0] sm:$0xff]  ;;  %v4717_v16 = vld [vmem:[#allocation11 + $0x188] sm:$0xff]  ;;  %v4719_v17 = vld [vmem:[#allocation11 + $0x198] sm:$0xff] }
  0x66   :  { %298 = vmatpush1.msra.mxu0 %v127_v51  ;;  %411 = vmatpush1.msra.mxu1 %v129_v52  ;;  %v4725_v18 = vld [vmem:[#allocation11 + $0x180] sm:$0xff]  ;;  %v4727_v19 = vld [vmem:[#allocation11 + $0x190] sm:$0xff]  ;;  %v4733_v21 = vld [vmem:[#allocation11 + $0x168] sm:$0xff] }
  0x67   :  { %299 = vmatprep.subr.mxu0 %v124_v53  ;;  %412 = vmatprep.subr.mxu1 %v126_v54  ;;  %v246_v20 = vld [vmem:[#allocation6 + $0x10] sm:$0xff]  ;;  %v4735_v22 = vld [vmem:[#allocation11 + $0x178] sm:$0xff]  ;;  %v4739_v23 = vld [vmem:[#allocation11 + $0x160] sm:$0xff] }
  0x68   :  { %300 = vmatpush1.msra.mxu0 %v123_v55  ;;  %413 = vmatpush1.msra.mxu1 %v125_v56  ;;  %v4741_v24 = vld [vmem:[#allocation11 + $0x170] sm:$0xff]  ;;  %v4743_v25 = vld [vmem:[#allocation11 + $0x148] sm:$0xff]  ;;  %v4745_v26 = vld [vmem:[#allocation11 + $0x158] sm:$0xff] }
  0x69   :  { %301 = vmatprep.subr.mxu0 %v120_v57  ;;  %414 = vmatprep.subr.mxu1 %v122_v58  ;;  %v4751_v27 = vld [vmem:[#allocation11 + $0x140] sm:$0xff]  ;;  %v4753_v28 = vld [vmem:[#allocation11 + $0x150] sm:$0xff]  ;;  %v247_v29 = vld [vmem:[#allocation6 + $0x18] sm:$0xff] }
  0x6a   :  { %302 = vmatpush1.msra.mxu0 %v119_v59  ;;  %415 = vmatpush1.msra.mxu1 %v121_v60  ;;  %v4759_v30 = vld [vmem:[#allocation11 + $0x128] sm:$0xff]  ;;  %v4761_v31 = vld [vmem:[#allocation11 + $0x138] sm:$0xff]  ;;  %v4765_v32 = vld [vmem:[#allocation11 + $0x120] sm:$0xff] }
  0x6b   :  { %303 = vmatprep.subr.mxu0 %v116_v61  ;;  %416 = vmatprep.subr.mxu1 %v118_v62  ;;  %v4767_v33 = vld [vmem:[#allocation11 + $0x130] sm:$0xff]  ;;  %v4769_v34 = vld [vmem:[#allocation11 + $0x108] sm:$0xff]  ;;  %v4771_v35 = vld [vmem:[#allocation11 + $0x118] sm:$0xff] }
  0x6c   :  { %304 = vmatpush1.msra.mxu0 %v115_v63  ;;  %417 = vmatpush1.msra.mxu1 %v117_v1  ;;  %v4777_v36 = vld [vmem:[#allocation11 + $0x100] sm:$0xff]  ;;  %v4779_v37 = vld [vmem:[#allocation11 + $0x110] sm:$0xff]  ;;  %v4785_v39 = vld [vmem:[#allocation11 + $0xe8] sm:$0xff] }
  0x6d   :  { %338 = vmatmul.mubr.f32.vlgmr.msra.gmra.mxu0 %v244_v2  ;;  %451 = vmatmul.mubr.f32.vlgmr.msra.gmra.mxu1 %v244_v2  ;;  %v248_v38 = vld [vmem:[#allocation6 + $0x20] sm:$0xff]  ;;  %v4787_v40 = vld [vmem:[#allocation11 + $0xf8] sm:$0xff]  ;;  %v4793_v42 = vld [vmem:[#allocation11 + $0xf0] sm:$0xff] }
  0x6e   :  { %538 = vmatprep.subr.mxu0 %v4683_v3  ;;  %609 = vmatprep.subr.mxu1 %v4685_v4  ;;  %v4791_v41 = vld [vmem:[#allocation11 + $0xe0] sm:$0xff]  ;;  %v4795_v43 = vld [vmem:[#allocation11 + $0xc8] sm:$0xff]  ;;  %v4797_v44 = vld [vmem:[#allocation11 + $0xd8] sm:$0xff] }
  0x6f   :  { %539 = vmatpush1.msra.mxu0 %v4687_v5  ;;  %610 = vmatpush1.msra.mxu1 %v4689_v6  ;;  %v4803_v45 = vld [vmem:[#allocation11 + $0xc0] sm:$0xff]  ;;  %v4805_v46 = vld [vmem:[#allocation11 + $0xd0] sm:$0xff]  ;;  %v249_v47 = vld [vmem:[#allocation6 + $0x28] sm:$0xff] }
  0x70   :  { %540 = vmatprep.subr.mxu0 %v4691_v7  ;;  %611 = vmatprep.subr.mxu1 %v4693_v8  ;;  %v4811_v48 = vld [vmem:[#allocation11 + $0xa8] sm:$0xff]  ;;  %v4813_v49 = vld [vmem:[#allocation11 + $0xb8] sm:$0xff]  ;;  %v4817_v50 = vld [vmem:[#allocation11 + $0xa0] sm:$0xff] }
  0x71   :  { %343 = vmatprep.mubr.f32.mxu0 %v6684_v0  ;;  %456 = vmatprep.mubr.f32.mxu1 %v6684_v0  ;;  %v4819_v51 = vld [vmem:[#allocation11 + $0xb0] sm:$0xff]  ;;  %v4821_v52 = vld [vmem:[#allocation11 + $0x88] sm:$0xff]  ;;  %v4823_v53 = vld [vmem:[#allocation11 + $0x98] sm:$0xff] }
  0x72   :  { %541 = vmatpush1.msra.mxu0 %v4699_v9  ;;  %612 = vmatpush1.msra.mxu1 %v4701_v10  ;;  %6892 = vst [vmem:[#allocation25_spill] sm:$0xff] %v4819_v51  ;;  %6893 = vst [vmem:[#allocation26_spill] sm:$0xff] %v4821_v52  ;;  %v4829_v54 = vld [vmem:[#allocation11 + $0x80] sm:$0xff]  ;;  %v4831_v55 = vld [vmem:[#allocation11 + $0x90] sm:$0xff] }
  0x73   :  { %344 = vmatmul.mubr.f32.gmra.mxu0 %v245_v11  ;;  %457 = vmatmul.mubr.f32.gmra.mxu1 %v245_v11  ;;  %6894 = vst [vmem:[#allocation27_spill] sm:$0xff] %v4823_v53  ;;  %6895 = vst [vmem:[#allocation28_spill] sm:$0xff] %v4829_v54  ;;  %v250_v56 = vld [vmem:[#allocation6 + $0x30] sm:$0xff]  ;;  %v4837_v57 = vld [vmem:[#allocation11 + $0x68] sm:$0xff] }
  0x74   :  { %542 = vmatprep.subr.mxu0 %v4707_v12  ;;  %613 = vmatprep.subr.mxu1 %v4709_v13  ;;  %6896 = vst [vmem:[#allocation29_spill] sm:$0xff] %v4831_v55  ;;  %6897 = vst [vmem:[#allocation30_spill] sm:$0xff] %v4837_v57  ;;  %v4839_v58 = vld [vmem:[#allocation11 + $0x78] sm:$0xff]  ;;  %v4843_v59 = vld [vmem:[#allocation11 + $0x60] sm:$0xff] }
  0x75   :  { %543 = vmatpush1.msra.mxu0 %v4713_v14  ;;  %614 = vmatpush1.msra.mxu1 %v4715_v15  ;;  %6898 = vst [vmem:[#allocation31_spill] sm:$0xff] %v4839_v58  ;;  %6899 = vst [vmem:[#allocation32_spill] sm:$0xff] %v4843_v59  ;;  %v4845_v60 = vld [vmem:[#allocation11 + $0x70] sm:$0xff]  ;;  %v4847_v61 = vld [vmem:[#allocation11 + $0x48] sm:$0xff] }
  0x76   :  { %544 = vmatprep.subr.mxu0 %v4717_v16  ;;  %615 = vmatprep.subr.mxu1 %v4719_v17  ;;  %6900 = vst [vmem:[#allocation33_spill] sm:$0xff] %v4845_v60  ;;  %6901 = vst [vmem:[#allocation34_spill] sm:$0xff] %v4847_v61  ;;  %v4849_v62 = vld [vmem:[#allocation11 + $0x58] sm:$0xff]  ;;  %v4855_v63 = vld [vmem:[#allocation11 + $0x40] sm:$0xff] }
  0x77   :  { %349 = vmatprep.mubr.f32.mxu0 %v6684_v0  ;;  %462 = vmatprep.mubr.f32.mxu1 %v6684_v0  ;;  %6902 = vst [vmem:[#allocation35_spill] sm:$0xff] %v4849_v62  ;;  %6903 = vst [vmem:[#allocation36_spill] sm:$0xff] %v4855_v63  ;;  %v4857_v1 = vld [vmem:[#allocation11 + $0x50] sm:$0xff]  ;;  %v251_v2 = vld [vmem:[#allocation6 + $0x38] sm:$0xff] }
  0x78   :  { %545 = vmatpush1.msra.mxu0 %v4725_v18  ;;  %616 = vmatpush1.msra.mxu1 %v4727_v19  ;;  %6904 = vst [vmem:[#allocation37_spill] sm:$0xff] %v4857_v1  ;;  %v4863_v11 = vld [vmem:[#allocation11 + $0x28] sm:$0xff] }
  0x79   :  { %350 = vmatmul.mubr.f32.gmra.mxu0 %v246_v20  ;;  %463 = vmatmul.mubr.f32.gmra.mxu1 %v246_v20  ;;  %6905 = vst [vmem:[#allocation38_spill] sm:$0xff] %v4863_v11  ;;  %v4865_v20 = vld [vmem:[#allocation11 + $0x38] sm:$0xff] }
  0x7a   :  { %546 = vmatprep.subr.mxu0 %v4733_v21  ;;  %617 = vmatprep.subr.mxu1 %v4735_v22  ;;  %6906 = vst [vmem:[#allocation39_spill] sm:$0xff] %v4865_v20 }
  0x7b   :  { %547 = vmatpush1.msra.mxu0 %v4739_v23  ;;  %618 = vmatpush1.msra.mxu1 %v4741_v24 }
  0x7c   :  { %548 = vmatprep.subr.mxu0 %v4743_v25  ;;  %619 = vmatprep.subr.mxu1 %v4745_v26 }
  0x7d   :  { %355 = vmatprep.mubr.f32.mxu0 %v6684_v0  ;;  %468 = vmatprep.mubr.f32.mxu1 %v6684_v0 }
  0x7e   :  { %549 = vmatpush1.msra.mxu0 %v4751_v27  ;;  %620 = vmatpush1.msra.mxu1 %v4753_v28 }
  0x7f   :  { %356 = vmatmul.mubr.f32.gmra.mxu0 %v247_v29  ;;  %469 = vmatmul.mubr.f32.gmra.mxu1 %v247_v29  ;;  %v4869_v29 = vld [vmem:[#allocation11 + $0x20] sm:$0xff] }
  0x80   :  { %550 = vmatprep.subr.mxu0 %v4759_v30  ;;  %621 = vmatprep.subr.mxu1 %v4761_v31  ;;  %6907 = vst [vmem:[#allocation40_spill] sm:$0xff] %v4869_v29 }
  0x81   :  { %551 = vmatpush1.msra.mxu0 %v4765_v32  ;;  %622 = vmatpush1.msra.mxu1 %v4767_v33 }
  0x82   :  { %552 = vmatprep.subr.mxu0 %v4769_v34  ;;  %623 = vmatprep.subr.mxu1 %v4771_v35 }
  0x83   :  { %361 = vmatprep.mubr.f32.mxu0 %v6684_v0  ;;  %474 = vmatprep.mubr.f32.mxu1 %v6684_v0 }
  0x84   :  { %553 = vmatpush1.msra.mxu0 %v4777_v36  ;;  %624 = vmatpush1.msra.mxu1 %v4779_v37 }
  0x85   :  { %362 = vmatmul.mubr.f32.gmra.mxu0 %v248_v38  ;;  %475 = vmatmul.mubr.f32.gmra.mxu1 %v248_v38  ;;  %v4871_v38 = vld [vmem:[#allocation11 + $0x30] sm:$0xff] }
  0x86   :  { %554 = vmatprep.subr.mxu0 %v4785_v39  ;;  %625 = vmatprep.subr.mxu1 %v4787_v40  ;;  %6908 = vst [vmem:[#allocation41_spill] sm:$0xff] %v4871_v38 }
  0x87   :  { %555 = vmatpush1.msra.mxu0 %v4791_v41  ;;  %626 = vmatpush1.msra.mxu1 %v4793_v42 }
  0x88   :  { %556 = vmatprep.subr.mxu0 %v4795_v43  ;;  %627 = vmatprep.subr.mxu1 %v4797_v44 }
  0x89   :  { %367 = vmatprep.mubr.f32.mxu0 %v6684_v0  ;;  %480 = vmatprep.mubr.f32.mxu1 %v6684_v0 }
  0x8a   :  { %557 = vmatpush1.msra.mxu0 %v4803_v45  ;;  %628 = vmatpush1.msra.mxu1 %v4805_v46 }
  0x8b   :  { %368 = vmatmul.mubr.f32.gmra.mxu0 %v249_v47  ;;  %481 = vmatmul.mubr.f32.gmra.mxu1 %v249_v47  ;;  %v4873_v47 = vld [vmem:[#allocation11 + $0x8] sm:$0xff] }
  0x8c   :  { %558 = vmatprep.subr.mxu0 %v4811_v48  ;;  %629 = vmatprep.subr.mxu1 %v4813_v49  ;;  %6909 = vst [vmem:[#allocation42_spill] sm:$0xff] %v4873_v47 }
  0x8d   :  { %559 = vmatpush1.msra.mxu0 %v4817_v50  ;;  %630 = vmatpush1.msra.mxu1 %v4819_v51 }
  0x8e   :  { %560 = vmatprep.subr.mxu0 %v4821_v52  ;;  %631 = vmatprep.subr.mxu1 %v4823_v53 }
  0x8f   :  { %373 = vmatprep.mubr.f32.mxu0 %v6684_v0  ;;  %486 = vmatprep.mubr.f32.mxu1 %v6684_v0 }
  0x90   :  { %561 = vmatpush1.msra.mxu0 %v4829_v54  ;;  %632 = vmatpush1.msra.mxu1 %v4831_v55 }
  0x91   :  { %374 = vmatmul.mubr.f32.gmra.mxu0 %v250_v56  ;;  %487 = vmatmul.mubr.f32.gmra.mxu1 %v250_v56  ;;  %v4875_v56 = vld [vmem:[#allocation11 + $0x18] sm:$0xff] }
  0x92   :  { %562 = vmatprep.subr.mxu0 %v4837_v57  ;;  %633 = vmatprep.subr.mxu1 %v4839_v58  ;;  %6910 = vst [vmem:[#allocation43_spill] sm:$0xff] %v4875_v56 }
  0x93   :  { %563 = vmatpush1.msra.mxu0 %v4843_v59  ;;  %634 = vmatpush1.msra.mxu1 %v4845_v60 }
  0x94   :  { %564 = vmatprep.subr.mxu0 %v4847_v61  ;;  %635 = vmatprep.subr.mxu1 %v4849_v62 }
  0x95   :  { %379 = vmatprep.mubr.f32.mxu0 %v6684_v0  ;;  %492 = vmatprep.mubr.f32.mxu1 %v6684_v0  ;;  %v4879_v0 = vld [vmem:[#allocation11] sm:$0xff] }
  0x96   :  { %565 = vmatpush1.msra.mxu0 %v4855_v63  ;;  %636 = vmatpush1.msra.mxu1 %v4857_v1  ;;  %6911 = vst [vmem:[#allocation44_spill] sm:$0xff] %v4879_v0  ;;  %v4883_v1 = vld [vmem:[#allocation11 + $0x10] sm:$0xff] }
  0x97   :  { %380 = vmatmul.mubr.f32.gmra.mxu0 %v251_v2  ;;  %493 = vmatmul.mubr.f32.gmra.mxu1 %v251_v2  ;;  %6912 = vst [vmem:[#allocation45_spill] sm:$0xff] %v4883_v1  ;;  %v6913_v2 = vmov 0.0  }
  0x98   :  { %566 = vmatprep.subr.mxu0 %v4863_v11  ;;  %637 = vmatprep.subr.mxu1 %v4865_v20 }
  0x99   :  { %567 = vmatpush1.msra.mxu0 %v4869_v29  ;;  %638 = vmatpush1.msra.mxu1 %v4871_v38 }
  0x9a   :  { %568 = vmatprep.subr.mxu0 %v4873_v47  ;;  %639 = vmatprep.subr.mxu1 %v4875_v56 }
  0x9b   :  { %569 = vmatpush1.msra.mxu0 %v4879_v0  ;;  %602 = vmatprep.mubr.f32.mxu0 %v6913_v2 }
  0x9c   :  { %640 = vmatpush1.msra.mxu1 %v4883_v1  ;;  %673 = vmatprep.mubr.f32.mxu1 %v6913_v2 }
  0x9d   :  { %603 = vmatmul.mubr.f32.vlgmr.msra.gmra.mxu0 %v6913_v2  ;;  %674 = vmatmul.mubr.f32.vlgmr.msra.gmra.mxu1 %v6913_v2 }
  0x9e   :  { %718 = vmatprep.subr.mxu0 %v4683_v3  ;;  %789 = vmatprep.subr.mxu1 %v4685_v4 }
  0x9f   :  { %719 = vmatpush1.msra.mxu0 %v4687_v5  ;;  %790 = vmatpush1.msra.mxu1 %v4689_v6 }
  0xa0   :  { %720 = vmatprep.subr.mxu0 %v4691_v7  ;;  %791 = vmatprep.subr.mxu1 %v4693_v8 }
  0xa1   :  { %721 = vmatpush1.msra.mxu0 %v4699_v9  ;;  %792 = vmatpush1.msra.mxu1 %v4701_v10 }
  0xa2   :  { %722 = vmatprep.subr.mxu0 %v4707_v12  ;;  %793 = vmatprep.subr.mxu1 %v4709_v13 }
  0xa3   :  { %723 = vmatpush1.msra.mxu0 %v4713_v14  ;;  %794 = vmatpush1.msra.mxu1 %v4715_v15 }
  0xa4   :  { %724 = vmatprep.subr.mxu0 %v4717_v16  ;;  %795 = vmatprep.subr.mxu1 %v4719_v17 }
  0xa5   :  { %725 = vmatpush1.msra.mxu0 %v4725_v18  ;;  %796 = vmatpush1.msra.mxu1 %v4727_v19 }
  0xa6   :  { %726 = vmatprep.subr.mxu0 %v4733_v21  ;;  %797 = vmatprep.subr.mxu1 %v4735_v22 }
  0xa7   :  { %727 = vmatpush1.msra.mxu0 %v4739_v23  ;;  %798 = vmatpush1.msra.mxu1 %v4741_v24 }
  0xa8   :  { %728 = vmatprep.subr.mxu0 %v4743_v25  ;;  %799 = vmatprep.subr.mxu1 %v4745_v26 }
  0xa9   :  { %729 = vmatpush1.msra.mxu0 %v4751_v27  ;;  %800 = vmatpush1.msra.mxu1 %v4753_v28 }
  0xaa   :  { %730 = vmatprep.subr.mxu0 %v4759_v30  ;;  %801 = vmatprep.subr.mxu1 %v4761_v31 }
  0xab   :  { %731 = vmatpush1.msra.mxu0 %v4765_v32  ;;  %802 = vmatpush1.msra.mxu1 %v4767_v33 }
  0xac   :  { %732 = vmatprep.subr.mxu0 %v4769_v34  ;;  %803 = vmatprep.subr.mxu1 %v4771_v35 }
  0xad   :  { %733 = vmatpush1.msra.mxu0 %v4777_v36  ;;  %804 = vmatpush1.msra.mxu1 %v4779_v37 }
  0xae   :  { %734 = vmatprep.subr.mxu0 %v4785_v39  ;;  %805 = vmatprep.subr.mxu1 %v4787_v40 }
  0xaf   :  { %735 = vmatpush1.msra.mxu0 %v4791_v41  ;;  %806 = vmatpush1.msra.mxu1 %v4793_v42 }
  0xb0   :  { %736 = vmatprep.subr.mxu0 %v4795_v43  ;;  %807 = vmatprep.subr.mxu1 %v4797_v44 }
  0xb1   :  { %737 = vmatpush1.msra.mxu0 %v4803_v45  ;;  %808 = vmatpush1.msra.mxu1 %v4805_v46 }
  0xb2   :  { %738 = vmatprep.subr.mxu0 %v4811_v48  ;;  %809 = vmatprep.subr.mxu1 %v4813_v49 }
  0xb3   :  { %739 = vmatpush1.msra.mxu0 %v4817_v50  ;;  %810 = vmatpush1.msra.mxu1 %v4819_v51 }
  0xb4   :  { %740 = vmatprep.subr.mxu0 %v4821_v52  ;;  %811 = vmatprep.subr.mxu1 %v4823_v53  ;;  %v6914_v52 = vld [vmem:[#allocation37_spill] sm:$0xff] }
  0xb5   :  { %741 = vmatpush1.msra.mxu0 %v4829_v54  ;;  %812 = vmatpush1.msra.mxu1 %v4831_v55 }
  0xb6   :  { %742 = vmatprep.subr.mxu0 %v4837_v57  ;;  %813 = vmatprep.subr.mxu1 %v4839_v58 }
  0xb7   :  { %743 = vmatpush1.msra.mxu0 %v4843_v59  ;;  %814 = vmatpush1.msra.mxu1 %v4845_v60 }
  0xb8   :  { %744 = vmatprep.subr.mxu0 %v4847_v61  ;;  %815 = vmatprep.subr.mxu1 %v4849_v62 }
  0xb9   :  { %745 = vmatpush1.msra.mxu0 %v4855_v63  ;;  %816 = vmatpush1.msra.mxu1 %v6914_v52 }
  0xba   :  { %746 = vmatprep.subr.mxu0 %v4863_v11  ;;  %817 = vmatprep.subr.mxu1 %v4865_v20  ;;  %v253_v20 = vlaneseq }
  0xbb   :  { %747 = vmatpush1.msra.mxu0 %v4869_v29  ;;  %818 = vmatpush1.msra.mxu1 %v4871_v38 }
  0xbc   :  { %748 = vmatprep.subr.mxu0 %v4873_v47  ;;  %819 = vmatprep.subr.mxu1 %v4875_v56  ;;  %v4961_v29 = vshrl.u32 %v253_v20, 7 }
  0xbd   :  { %749 = vmatpush1.msra.mxu0 %v4879_v0  ;;  %782 = vmatprep.mubr.f32.mxu0 %v6913_v2 }
  0xbe   :  { %820 = vmatpush1.msra.mxu1 %v4883_v1  ;;  %853 = vmatprep.mubr.f32.mxu1 %v6913_v2  ;;  %6915 = vst [vmem:[#allocation46_spill] sm:$0xff] %v4961_v29  ;;  %v6723_v56 = vsub.s32 0, %v4961_v29  ;;  %v6726_v0 = vsub.s32 2, %v4961_v29  ;;  %v243_v1 = vld [vmem:[%s6677_s3] sm:$0xf]  ;;  %v6734_v20 = vsub.s32 3, %v4961_v29 }
  0xbf   :  { %899 = vmatprep.subr.mxu0 %v4683_v3  ;;  %970 = vmatprep.subr.mxu1 %v4685_v4  ;;  %v6733_v4 = vsub.s32 1, %v4961_v29 }
  0xc0   :  { %v256_v11 = vrot.slane %v243_v1, %v6723_v56  ;;  %v4982_v52 = vrot.slane %v243_v1, %v6726_v0  ;;  %v4988_v60 = vrot.slane %v243_v1, %v6734_v20 }
  0xc1   :  { %v260_v61 = vrot.slane %v243_v1, %v6733_v4 }
 0x12d   :  { %v4963_v38 = vpop.f32.mrf.mxu0  ;;  %v4965_v47 = vpop.f32.mrf.mxu1 }
 0x12f   :  { %v4972_v2 = vpop.f32.mrf.mxu0  ;;  %v4974_v3 = vpop.f32.mrf.mxu1 }
 0x133   :  { %v345_v63 = vpop.f32.mrf.mxu0  ;;  %v458_v62 = vpop.f32.mrf.mxu1 }
 0x134   :  { %v4990_v59 = vadd.f32 %v345_v63, %v256_v11  ;;  %v4993_v58 = vadd.f32 %v458_v62, %v4982_v52 }
 0x135   :  { %v347_v57 = vpop.f32.mrf.mxu0  ;;  %v460_v56 = vpop.f32.mrf.mxu1 }
 0x136   :  { %6916 = vst [vmem:[#allocation47_spill] sm:$0xff] %v4993_v58  ;;  %v4995_v55 = vadd.f32 %v347_v57, %v260_v61  ;;  %v4998_v0 = vadd.f32 %v460_v56, %v4988_v60 }
 0x138   :  { %6917 = vst [vmem:[#allocation48_spill] sm:$0xff] %v4995_v55  ;;  %6918 = vst [vmem:[#allocation49_spill] sm:$0xff] %v4998_v0 }
 0x139   :  { %v351_v54 = vpop.f32.mrf.mxu0  ;;  %v464_v53 = vpop.f32.mrf.mxu1 }
 0x13a   :  { %v5000_v51 = vadd.f32 %v351_v54, %v256_v11  ;;  %v5003_v4 = vadd.f32 %v464_v53, %v4982_v52 }
 0x13b   :  { %v353_v1 = vpop.f32.mrf.mxu0  ;;  %v466_v63 = vpop.f32.mrf.mxu1 }
 0x13c   :  { %6919 = vst [vmem:[#allocation50_spill] sm:$0xff] %v5000_v51  ;;  %6920 = vst [vmem:[#allocation51_spill] sm:$0xff] %v5003_v4  ;;  %v5005_v20 = vadd.f32 %v353_v1, %v260_v61  ;;  %v5008_v62 = vadd.f32 %v466_v63, %v4988_v60 }
 0x13e   :  { %6921 = vst [vmem:[#allocation52_spill] sm:$0xff] %v5005_v20  ;;  %6922 = vst [vmem:[#allocation53_spill] sm:$0xff] %v5008_v62 }
 0x13f   :  { %v357_v29 = vpop.f32.mrf.mxu0  ;;  %v470_v57 = vpop.f32.mrf.mxu1 }
 0x140   :  { %v5010_v58 = vadd.f32 %v357_v29, %v256_v11  ;;  %v5013_v56 = vadd.f32 %v470_v57, %v4982_v52 }
 0x141   :  { %v359_v0 = vpop.f32.mrf.mxu0  ;;  %v472_v54 = vpop.f32.mrf.mxu1 }
 0x142   :  { %6923 = vst [vmem:[#allocation54_spill] sm:$0xff] %v5010_v58  ;;  %6924 = vst [vmem:[#allocation55_spill] sm:$0xff] %v5013_v56  ;;  %v5015_v51 = vadd.f32 %v359_v0, %v260_v61  ;;  %v5018_v53 = vadd.f32 %v472_v54, %v4988_v60 }
 0x144   :  { %6925 = vst [vmem:[#allocation56_spill] sm:$0xff] %v5015_v51  ;;  %6926 = vst [vmem:[#allocation57_spill] sm:$0xff] %v5018_v53 }
 0x145   :  { %v363_v4 = vpop.f32.mrf.mxu0  ;;  %v476_v1 = vpop.f32.mrf.mxu1 }
 0x146   :  { %v5020_v20 = vadd.f32 %v363_v4, %v256_v11  ;;  %v5023_v63 = vadd.f32 %v476_v1, %v4982_v52 }
 0x147   :  { %v365_v62 = vpop.f32.mrf.mxu0  ;;  %v478_v29 = vpop.f32.mrf.mxu1 }
 0x148   :  { %6927 = vst [vmem:[#allocation58_spill] sm:$0xff] %v5020_v20  ;;  %6928 = vst [vmem:[#allocation59_spill] sm:$0xff] %v5023_v63  ;;  %v5025_v58 = vadd.f32 %v365_v62, %v260_v61  ;;  %v5028_v57 = vadd.f32 %v478_v29, %v4988_v60 }
 0x14a   :  { %6929 = vst [vmem:[#allocation60_spill] sm:$0xff] %v5025_v58  ;;  %6930 = vst [vmem:[#allocation61_spill] sm:$0xff] %v5028_v57 }
 0x14b   :  { %v369_v56 = vpop.f32.mrf.mxu0  ;;  %v482_v0 = vpop.f32.mrf.mxu1 }
 0x14c   :  { %v5030_v51 = vadd.f32 %v369_v56, %v256_v11  ;;  %v5033_v54 = vadd.f32 %v482_v0, %v4982_v52 }
 0x14d   :  { %v371_v53 = vpop.f32.mrf.mxu0  ;;  %v484_v4 = vpop.f32.mrf.mxu1 }
 0x14e   :  { %6931 = vst [vmem:[#allocation62_spill] sm:$0xff] %v5030_v51  ;;  %6932 = vst [vmem:[#allocation63_spill] sm:$0xff] %v5033_v54  ;;  %v5035_v20 = vadd.f32 %v371_v53, %v260_v61  ;;  %v5038_v1 = vadd.f32 %v484_v4, %v4988_v60 }
 0x150   :  { %6933 = vst [vmem:[#allocation64_spill] sm:$0xff] %v5035_v20  ;;  %6934 = vst [vmem:[#allocation65_spill] sm:$0xff] %v5038_v1 }
 0x151   :  { %v375_v63 = vpop.f32.mrf.mxu0  ;;  %v488_v62 = vpop.f32.mrf.mxu1 }
 0x152   :  { %v5040_v58 = vadd.f32 %v375_v63, %v256_v11  ;;  %v5043_v29 = vadd.f32 %v488_v62, %v4982_v52 }
 0x153   :  { %v377_v57 = vpop.f32.mrf.mxu0  ;;  %v490_v56 = vpop.f32.mrf.mxu1 }
 0x154   :  { %6935 = vst [vmem:[#allocation66_spill] sm:$0xff] %v5040_v58  ;;  %6936 = vst [vmem:[#allocation67_spill] sm:$0xff] %v5043_v29  ;;  %v5045_v51 = vadd.f32 %v377_v57, %v260_v61  ;;  %v5048_v0 = vadd.f32 %v490_v56, %v4988_v60  ;;  %v340_v57 = vadd.f32 %v4963_v38, %v256_v11 }
 0x155   :  { %v342_v56 = vadd.f32 %v4972_v2, %v260_v61 }
 0x156   :  { %6937 = vst [vmem:[#allocation68_spill] sm:$0xff] %v5045_v51  ;;  %6938 = vst [vmem:[#allocation69_spill] sm:$0xff] %v5048_v0 }
 0x157   :  { %v381_v54 = vpop.f32.mrf.mxu0  ;;  %v494_v53 = vpop.f32.mrf.mxu1 }
 0x158   :  { %v5050_v20 = vadd.f32 %v381_v54, %v256_v11  ;;  %v5053_v4 = vadd.f32 %v494_v53, %v4982_v52 }
 0x159   :  { %v383_v1 = vpop.f32.mrf.mxu0  ;;  %v496_v63 = vpop.f32.mrf.mxu1 }
 0x15a   :  { %6939 = vst [vmem:[#allocation70_spill] sm:$0xff] %v5050_v20  ;;  %6940 = vst [vmem:[#allocation71_spill] sm:$0xff] %v5053_v4  ;;  %v5055_v58 = vadd.f32 %v383_v1, %v260_v61  ;;  %v5058_v62 = vadd.f32 %v496_v63, %v4988_v60  ;;  %v455_v1 = vadd.f32 %v4974_v3, %v4988_v60 }
 0x15b   :  { %v453_v63 = vadd.f32 %v4965_v47, %v4982_v52 }
 0x15c   :  { %6941 = vst [vmem:[#allocation72_spill] sm:$0xff] %v5055_v58  ;;  %6942 = vst [vmem:[#allocation73_spill] sm:$0xff] %v5058_v62 }
 0x15d   :  { %v604_v29 = vpop.f32.mrf.mxu0  ;;  %v675_v20 = vpop.f32.mrf.mxu1 }
 0x15e   :  { %v680_v0 = vadd.f32 %v604_v29, %v340_v57  ;;  %v682_v62 = vadd.f32 %v675_v20, %v453_v63  ;;  %v6944_v20 = vld [vmem:[#allocation25_spill] sm:$0xff]  ;;  %v6949_v63 = vld [vmem:[#allocation30_spill] sm:$0xff] }
 0x15f   :  { %v606_v51 = vpop.f32.mrf.mxu0  ;;  %v677_v4 = vpop.f32.mrf.mxu1 }
 0x160   :  { %v3934_v55 = vmul.f32 -1.442695, %v680_v0  ;;  %v681_v54 = vadd.f32 %v606_v51, %v342_v56  ;;  %v683_v58 = vadd.f32 %v677_v4, %v455_v1  ;;  %v6948_v1 = vld [vmem:[#allocation29_spill] sm:$0xff] }
 0x162   :  { %4048 = vpow2.f32 %v3934_v55  ;;  %v3935_v53 = vmul.f32 -1.442695, %v681_v54  ;;  %v3936_v11 = vmul.f32 -1.442695, %v683_v58  ;;  %v6946_v54 = vld [vmem:[#allocation27_spill] sm:$0xff] }
 0x164   :  { %4050 = vpow2.f32 %v3935_v53  ;;  %v6947_v53 = vld [vmem:[#allocation28_spill] sm:$0xff] }
 0x165   :  { %4052 = vpow2.f32 %v3936_v11  ;;  %v6950_v11 = vld [vmem:[#allocation31_spill] sm:$0xff] }
 0x16f   :  { %v4049_v38 = vpop.eup %4048 }
 0x170   :  { %v687_v61 = vadd.f32 1.0, %v4049_v38  ;;  %v6951_v38 = vld [vmem:[#allocation32_spill] sm:$0xff] }
 0x171   :  { %v4051_v2 = vpop.eup %4050 }
 0x172   :  { %4054 = vrcp.f32 %v687_v61  ;;  %v693_v51 = vadd.f32 1.0, %v4051_v2  ;;  %v4053_v55 = vpop.eup %4052  ;;  %v6952_v61 = vld [vmem:[#allocation33_spill] sm:$0xff]  ;;  %v6953_v2 = vld [vmem:[#allocation34_spill] sm:$0xff] }
 0x173   :  { %4056 = vtanh.f32 %v682_v62  ;;  %v700_v56 = vadd.f32 1.0, %v4053_v55  ;;  %v6945_v62 = vld [vmem:[#allocation26_spill] sm:$0xff]  ;;  %v6955_v55 = vld [vmem:[#allocation36_spill] sm:$0xff] }
 0x174   :  { %4058 = vrcp.f32 %v693_v51  ;;  %v6954_v51 = vld [vmem:[#allocation35_spill] sm:$0xff] }
 0x175   :  { %4060 = vrcp.f32 %v700_v56  ;;  %v6959_v56 = vld [vmem:[#allocation40_spill] sm:$0xff] }
 0x17f   :  { %v4055_v29 = vpop.eup %4054 }
 0x180   :  { %v4057_v0 = vpop.eup %4056 }
 0x181   :  { %v4059_v57 = vpop.eup %4058  ;;  %v705_v60 = vmul.f32 %v4057_v0, %v4055_v29  ;;  %v6956_v29 = vld [vmem:[#allocation37_spill] sm:$0xff]  ;;  %v6957_v0 = vld [vmem:[#allocation38_spill] sm:$0xff] }
 0x182   :  { %v704_v3 = vmul.f32 0.0, %v4059_v57  ;;  %v4061_v52 = vpop.eup %4060  ;;  %v6958_v57 = vld [vmem:[#allocation39_spill] sm:$0xff] }
 0x184   :  { %v5066_v4 = vadd.f32 %v705_v60, %v704_v3  ;;  %v6960_v3 = vld [vmem:[#allocation41_spill] sm:$0xff]  ;;  %v6961_v60 = vld [vmem:[#allocation42_spill] sm:$0xff] }
 0x186   :  { %4062 = vtanh.f32 %v5066_v4 }
 0x193   :  { %v4063_v58 = vpop.eup %4062 }
 0x194   :  { %v5069_v47 = vmul.f32 %v4063_v58, %v4061_v52  ;;  %v6962_v52 = vld [vmem:[#allocation43_spill] sm:$0xff]  ;;  %v6963_v58 = vld [vmem:[#allocation44_spill] sm:$0xff] }
 0x196   :  { %6943 = vst [vmem:[#allocation74_spill] sm:$0xff] %v5069_v47  ;;  %783 = vmatmul.mubr.f32.vlgmr.msra.gmra.mxu0 %v5069_v47  ;;  %854 = vmatmul.mubr.f32.vlgmr.msra.gmra.mxu1 %v5069_v47  ;;  %v6964_v47 = vmov 0.0  }
 0x197   :  { %900 = vmatpush1.msra.mxu0 %v4687_v5  ;;  %971 = vmatpush1.msra.mxu1 %v4689_v6 }
 0x198   :  { %901 = vmatprep.subr.mxu0 %v4691_v7  ;;  %972 = vmatprep.subr.mxu1 %v4693_v8 }
 0x199   :  { %902 = vmatpush1.msra.mxu0 %v4699_v9  ;;  %973 = vmatpush1.msra.mxu1 %v4701_v10 }
 0x19a   :  { %903 = vmatprep.subr.mxu0 %v4707_v12  ;;  %974 = vmatprep.subr.mxu1 %v4709_v13 }
 0x19b   :  { %904 = vmatpush1.msra.mxu0 %v4713_v14  ;;  %975 = vmatpush1.msra.mxu1 %v4715_v15 }
 0x19c   :  { %905 = vmatprep.subr.mxu0 %v4717_v16  ;;  %976 = vmatprep.subr.mxu1 %v4719_v17 }
 0x19d   :  { %906 = vmatpush1.msra.mxu0 %v4725_v18  ;;  %977 = vmatpush1.msra.mxu1 %v4727_v19 }
 0x19e   :  { %907 = vmatprep.subr.mxu0 %v4733_v21  ;;  %978 = vmatprep.subr.mxu1 %v4735_v22 }
 0x19f   :  { %908 = vmatpush1.msra.mxu0 %v4739_v23  ;;  %979 = vmatpush1.msra.mxu1 %v4741_v24 }
 0x1a0   :  { %909 = vmatprep.subr.mxu0 %v4743_v25  ;;  %980 = vmatprep.subr.mxu1 %v4745_v26 }
 0x1a1   :  { %910 = vmatpush1.msra.mxu0 %v4751_v27  ;;  %981 = vmatpush1.msra.mxu1 %v4753_v28 }
 0x1a2   :  { %911 = vmatprep.subr.mxu0 %v4759_v30  ;;  %982 = vmatprep.subr.mxu1 %v4761_v31 }
 0x1a3   :  { %912 = vmatpush1.msra.mxu0 %v4765_v32  ;;  %983 = vmatpush1.msra.mxu1 %v4767_v33 }
 0x1a4   :  { %913 = vmatprep.subr.mxu0 %v4769_v34  ;;  %984 = vmatprep.subr.mxu1 %v4771_v35 }
 0x1a5   :  { %914 = vmatpush1.msra.mxu0 %v4777_v36  ;;  %985 = vmatpush1.msra.mxu1 %v4779_v37 }
 0x1a6   :  { %915 = vmatprep.subr.mxu0 %v4785_v39  ;;  %986 = vmatprep.subr.mxu1 %v4787_v40 }
 0x1a7   :  { %916 = vmatpush1.msra.mxu0 %v4791_v41  ;;  %987 = vmatpush1.msra.mxu1 %v4793_v42 }
 0x1a8   :  { %917 = vmatprep.subr.mxu0 %v4795_v43  ;;  %988 = vmatprep.subr.mxu1 %v4797_v44 }
 0x1a9   :  { %918 = vmatpush1.msra.mxu0 %v4803_v45  ;;  %989 = vmatpush1.msra.mxu1 %v4805_v46 }
 0x1aa   :  { %919 = vmatprep.subr.mxu0 %v4811_v48  ;;  %990 = vmatprep.subr.mxu1 %v4813_v49 }
 0x1ab   :  { %920 = vmatpush1.msra.mxu0 %v4817_v50  ;;  %991 = vmatpush1.msra.mxu1 %v6944_v20 }
 0x1ac   :  { %921 = vmatprep.subr.mxu0 %v6945_v62  ;;  %992 = vmatprep.subr.mxu1 %v6946_v54 }
 0x1ad   :  { %922 = vmatpush1.msra.mxu0 %v6947_v53  ;;  %993 = vmatpush1.msra.mxu1 %v6948_v1 }
 0x1ae   :  { %923 = vmatprep.subr.mxu0 %v6949_v63  ;;  %994 = vmatprep.subr.mxu1 %v6950_v11  ;;  %v6970_v11 = vld [vmem:[#allocation47_spill] sm:$0xff] }
 0x1af   :  { %924 = vmatpush1.msra.mxu0 %v6951_v38  ;;  %995 = vmatpush1.msra.mxu1 %v6952_v61  ;;  %v6969_v38 = vld [vmem:[#allocation49_spill] sm:$0xff] }
 0x1b0   :  { %925 = vmatprep.subr.mxu0 %v6953_v2  ;;  %996 = vmatprep.subr.mxu1 %v6954_v51  ;;  %v6965_v51 = vld [vmem:[#allocation45_spill] sm:$0xff] }
 0x1b1   :  { %926 = vmatpush1.msra.mxu0 %v6955_v55  ;;  %997 = vmatpush1.msra.mxu1 %v6956_v29  ;;  %v6966_v29 = vld [vmem:[#allocation23_spill] sm:$0xff] }
 0x1b2   :  { %927 = vmatprep.subr.mxu0 %v6957_v0  ;;  %998 = vmatprep.subr.mxu1 %v6958_v57  ;;  %v6967_v0 = vld [vmem:[#allocation24_spill] sm:$0xff] }
 0x1b3   :  { %928 = vmatpush1.msra.mxu0 %v6959_v56  ;;  %999 = vmatpush1.msra.mxu1 %v6960_v3 }
 0x1b4   :  { %929 = vmatprep.subr.mxu0 %v6961_v60  ;;  %1000 = vmatprep.subr.mxu1 %v6962_v52  ;;  %v6968_v60 = vld [vmem:[#allocation48_spill] sm:$0xff] }
 0x1b5   :  { %930 = vmatpush1.msra.mxu0 %v6963_v58  ;;  %963 = vmatprep.mubr.f32.mxu0 %v6964_v47 }
 0x1b6   :  { %1001 = vmatpush1.msra.mxu1 %v6965_v51  ;;  %1034 = vmatprep.mubr.f32.mxu1 %v6964_v47 }
 0x1b7   :  { %1080 = vmatprep.subr.mxu0 %v6966_v29  ;;  %1151 = vmatprep.subr.mxu1 %v6967_v0 }
 0x256   :  { %v784_v57 = vpop.f32.mrf.mxu0  ;;  %v855_v52 = vpop.f32.mrf.mxu1 }
 0x257   :  { %v860_v56 = vadd.f32 %v784_v57, %v4990_v59  ;;  %v862_v47 = vadd.f32 %v855_v52, %v6970_v11 }
 0x258   :  { %v786_v3 = vpop.f32.mrf.mxu0  ;;  %v857_v61 = vpop.f32.mrf.mxu1 }
 0x259   :  { %v3937_v55 = vmul.f32 -1.442695, %v860_v56  ;;  %v861_v2 = vadd.f32 %v786_v3, %v6968_v60  ;;  %v863_v51 = vadd.f32 %v857_v61, %v6969_v38 }
 0x25b   :  { %4064 = vpow2.f32 %v3937_v55  ;;  %v3938_v58 = vmul.f32 -1.442695, %v861_v2  ;;  %v3939_v63 = vmul.f32 -1.442695, %v863_v51 }
 0x25d   :  { %4066 = vpow2.f32 %v3938_v58 }
 0x25e   :  { %4068 = vtanh.f32 %v862_v47 }
 0x25f   :  { %4070 = vpow2.f32 %v3939_v63 }
 0x268   :  { %v4065_v29 = vpop.eup %4064 }
 0x269   :  { %v867_v1 = vadd.f32 1.0, %v4065_v29 }
 0x26a   :  { %v4067_v0 = vpop.eup %4066 }
 0x26b   :  { %4072 = vrcp.f32 %v867_v1  ;;  %v873_v59 = vadd.f32 1.0, %v4067_v0  ;;  %v4069_v57 = vpop.eup %4068  ;;  %v6993_v1 = vld [vmem:[#allocation52_spill] sm:$0xff]  ;;  %v6994_v0 = vld [vmem:[#allocation53_spill] sm:$0xff] }
 0x26c   :  { %v4071_v56 = vpop.eup %4070 }
 0x26d   :  { %4074 = vrcp.f32 %v873_v59  ;;  %v880_v60 = vadd.f32 1.0, %v4071_v56 }
 0x26f   :  { %4076 = vrcp.f32 %v880_v60 }
 0x278   :  { %v4073_v55 = vpop.eup %4072 }
 0x279   :  { %v885_v3 = vmul.f32 %v4073_v55, %v4069_v57  ;;  %v6995_v57 = vld [vmem:[#allocation51_spill] sm:$0xff] }
 0x27a   :  { %v4075_v2 = vpop.eup %4074 }
 0x27b   :  { %v884_v58 = vmul.f32 %v4075_v2, %v5066_v4 }
 0x27c   :  { %v4077_v11 = vpop.eup %4076 }
 0x27d   :  { %v5144_v38 = vadd.f32 %v885_v3, %v884_v58 }
 0x27f   :  { %4078 = vtanh.f32 %v5144_v38 }
 0x28c   :  { %v4079_v47 = vpop.eup %4078 }
 0x28d   :  { %v5147_v61 = vmul.f32 %v4079_v47, %v4077_v11 }
 0x28f   :  { %6971 = vst [vmem:[#allocation25_spill] sm:$0xff] %v5147_v61  ;;  %964 = vmatmul.mubr.f32.vlgmr.msra.gmra.mxu0 %v5147_v61  ;;  %1035 = vmatmul.mubr.f32.vlgmr.msra.gmra.mxu1 %v5147_v61  ;;  %v5296_v61 = vld [vmem:[#allocation11 + $0x150] sm:$0xff] }
 0x290   :  { %1081 = vmatpush1.msra.mxu0 %v4687_v5  ;;  %1152 = vmatpush1.msra.mxu1 %v4689_v6  ;;  %v6972_v5 = vld [vmem:[#allocation29_spill] sm:$0xff]  ;;  %v6973_v6 = vld [vmem:[#allocation30_spill] sm:$0xff] }
 0x291   :  { %1082 = vmatprep.subr.mxu0 %v4691_v7  ;;  %1153 = vmatprep.subr.mxu1 %v4693_v8  ;;  %v6974_v7 = vld [vmem:[#allocation31_spill] sm:$0xff]  ;;  %v6975_v8 = vld [vmem:[#allocation32_spill] sm:$0xff] }
 0x292   :  { %1083 = vmatpush1.msra.mxu0 %v4699_v9  ;;  %1154 = vmatpush1.msra.mxu1 %v4701_v10  ;;  %v6976_v9 = vld [vmem:[#allocation33_spill] sm:$0xff]  ;;  %v6977_v10 = vld [vmem:[#allocation34_spill] sm:$0xff] }
 0x293   :  { %1084 = vmatprep.subr.mxu0 %v4707_v12  ;;  %1155 = vmatprep.subr.mxu1 %v4709_v13  ;;  %v6978_v12 = vld [vmem:[#allocation35_spill] sm:$0xff]  ;;  %v6979_v13 = vld [vmem:[#allocation36_spill] sm:$0xff] }
 0x294   :  { %1085 = vmatpush1.msra.mxu0 %v4713_v14  ;;  %1156 = vmatpush1.msra.mxu1 %v4715_v15  ;;  %v6980_v14 = vld [vmem:[#allocation37_spill] sm:$0xff]  ;;  %v6981_v15 = vld [vmem:[#allocation38_spill] sm:$0xff] }
 0x295   :  { %1086 = vmatprep.subr.mxu0 %v4717_v16  ;;  %1157 = vmatprep.subr.mxu1 %v4719_v17  ;;  %v6982_v16 = vld [vmem:[#allocation39_spill] sm:$0xff]  ;;  %v6983_v17 = vld [vmem:[#allocation40_spill] sm:$0xff] }
 0x296   :  { %1087 = vmatpush1.msra.mxu0 %v4725_v18  ;;  %1158 = vmatpush1.msra.mxu1 %v4727_v19  ;;  %v6984_v18 = vld [vmem:[#allocation41_spill] sm:$0xff]  ;;  %v6985_v19 = vld [vmem:[#allocation42_spill] sm:$0xff] }
 0x297   :  { %1088 = vmatprep.subr.mxu0 %v4733_v21  ;;  %1159 = vmatprep.subr.mxu1 %v4735_v22  ;;  %v6986_v21 = vld [vmem:[#allocation43_spill] sm:$0xff]  ;;  %v6987_v22 = vld [vmem:[#allocation44_spill] sm:$0xff] }
 0x298   :  { %1089 = vmatpush1.msra.mxu0 %v4739_v23  ;;  %1160 = vmatpush1.msra.mxu1 %v4741_v24  ;;  %v6988_v23 = vmov 0.0   ;;  %v6989_v24 = vld [vmem:[#allocation45_spill] sm:$0xff] }
 0x299   :  { %1090 = vmatprep.subr.mxu0 %v4743_v25  ;;  %1161 = vmatprep.subr.mxu1 %v4745_v26  ;;  %v5215_v25 = vld [vmem:[#allocation11 + $0x1e8] sm:$0xff]  ;;  %v5218_v26 = vld [vmem:[#allocation11 + $0x1f8] sm:$0xff] }
 0x29a   :  { %1091 = vmatpush1.msra.mxu0 %v4751_v27  ;;  %1162 = vmatpush1.msra.mxu1 %v4753_v28  ;;  %6990 = vst [vmem:[#allocation26_spill] sm:$0xff] %v5215_v25  ;;  %6991 = vst [vmem:[#allocation27_spill] sm:$0xff] %v5218_v26  ;;  %v6992_v28 = vld [vmem:[#allocation50_spill] sm:$0xff] }
 0x29b   :  { %1092 = vmatprep.subr.mxu0 %v4759_v30  ;;  %1163 = vmatprep.subr.mxu1 %v4761_v31 }
 0x29c   :  { %1093 = vmatpush1.msra.mxu0 %v4765_v32  ;;  %1164 = vmatpush1.msra.mxu1 %v4767_v33 }
 0x29d   :  { %1094 = vmatprep.subr.mxu0 %v4769_v34  ;;  %1165 = vmatprep.subr.mxu1 %v4771_v35 }
 0x29e   :  { %1095 = vmatpush1.msra.mxu0 %v4777_v36  ;;  %1166 = vmatpush1.msra.mxu1 %v4779_v37 }
 0x29f   :  { %1096 = vmatprep.subr.mxu0 %v4785_v39  ;;  %1167 = vmatprep.subr.mxu1 %v4787_v40 }
 0x2a0   :  { %1097 = vmatpush1.msra.mxu0 %v4791_v41  ;;  %1168 = vmatpush1.msra.mxu1 %v4793_v42 }
 0x2a1   :  { %1098 = vmatprep.subr.mxu0 %v4795_v43  ;;  %1169 = vmatprep.subr.mxu1 %v4797_v44 }
 0x2a2   :  { %1099 = vmatpush1.msra.mxu0 %v4803_v45  ;;  %1170 = vmatpush1.msra.mxu1 %v4805_v46 }
 0x2a3   :  { %1100 = vmatprep.subr.mxu0 %v4811_v48  ;;  %1171 = vmatprep.subr.mxu1 %v4813_v49 }
 0x2a4   :  { %1101 = vmatpush1.msra.mxu0 %v4817_v50  ;;  %1172 = vmatpush1.msra.mxu1 %v6944_v20 }
 0x2a5   :  { %1102 = vmatprep.subr.mxu0 %v6945_v62  ;;  %1173 = vmatprep.subr.mxu1 %v6946_v54 }
 0x2a6   :  { %1103 = vmatpush1.msra.mxu0 %v6947_v53  ;;  %1174 = vmatpush1.msra.mxu1 %v6972_v5 }
 0x2a7   :  { %1104 = vmatprep.subr.mxu0 %v6973_v6  ;;  %1175 = vmatprep.subr.mxu1 %v6974_v7 }
 0x2a8   :  { %1105 = vmatpush1.msra.mxu0 %v6975_v8  ;;  %1176 = vmatpush1.msra.mxu1 %v6976_v9 }
 0x2a9   :  { %1106 = vmatprep.subr.mxu0 %v6977_v10  ;;  %1177 = vmatprep.subr.mxu1 %v6978_v12 }
 0x2aa   :  { %1107 = vmatpush1.msra.mxu0 %v6979_v13  ;;  %1178 = vmatpush1.msra.mxu1 %v6980_v14 }
 0x2ab   :  { %1108 = vmatprep.subr.mxu0 %v6981_v15  ;;  %1179 = vmatprep.subr.mxu1 %v6982_v16 }
 0x2ac   :  { %1109 = vmatpush1.msra.mxu0 %v6983_v17  ;;  %1180 = vmatpush1.msra.mxu1 %v6984_v18 }
 0x2ad   :  { %1110 = vmatprep.subr.mxu0 %v6985_v19  ;;  %1181 = vmatprep.subr.mxu1 %v6986_v21 }
 0x2ae   :  { %1111 = vmatpush1.msra.mxu0 %v6987_v22  ;;  %1144 = vmatprep.mubr.f32.mxu0 %v6988_v23 }
 0x2af   :  { %1182 = vmatpush1.msra.mxu1 %v6989_v24  ;;  %1215 = vmatprep.mubr.f32.mxu1 %v6988_v23 }
 0x2b0   :  { %1261 = vmatprep.subr.mxu0 %v5215_v25  ;;  %1332 = vmatprep.subr.mxu1 %v5218_v26 }
 0x34f   :  { %v965_v27 = vpop.f32.mrf.mxu0  ;;  %v1036_v51 = vpop.f32.mrf.mxu1 }
 0x350   :  { %v1041_v30 = vadd.f32 %v965_v27, %v6992_v28  ;;  %v1043_v56 = vadd.f32 %v1036_v51, %v6995_v57  ;;  %v5245_v57 = vld [vmem:[#allocation11 + $0x1c0] sm:$0xff] }
 0x351   :  { %v967_v31 = vpop.f32.mrf.mxu0  ;;  %v1038_v29 = vpop.f32.mrf.mxu1 }
 0x352   :  { %v3940_v4 = vmul.f32 -1.442695, %v1041_v30  ;;  %v1042_v63 = vadd.f32 %v967_v31, %v6993_v1  ;;  %v1044_v59 = vadd.f32 %v1038_v29, %v6994_v0  ;;  %v5233_v29 = vld [vmem:[#allocation11 + $0x1e0] sm:$0xff]  ;;  %v5236_v0 = vld [vmem:[#allocation11 + $0x1f0] sm:$0xff] }
 0x354   :  { %4080 = vpow2.f32 %v3940_v4  ;;  %v3941_v52 = vmul.f32 -1.442695, %v1042_v63  ;;  %v3942_v55 = vmul.f32 -1.442695, %v1044_v59  ;;  %v5242_v59 = vld [vmem:[#allocation11 + $0x1d8] sm:$0xff] }
 0x356   :  { %4082 = vpow2.f32 %v3941_v52 }
 0x357   :  { %4084 = vtanh.f32 %v1043_v56  ;;  %v5248_v56 = vld [vmem:[#allocation11 + $0x1d0] sm:$0xff] }
 0x358   :  { %4086 = vpow2.f32 %v3942_v55  ;;  %v5251_v55 = vld [vmem:[#allocation11 + $0x1a8] sm:$0xff] }
 0x361   :  { %v4081_v3 = vpop.eup %4080 }
 0x362   :  { %v1048_v2 = vadd.f32 1.0, %v4081_v3  ;;  %v5254_v3 = vld [vmem:[#allocation11 + $0x1b8] sm:$0xff] }
 0x363   :  { %v4083_v60 = vpop.eup %4082 }
 0x364   :  { %4088 = vrcp.f32 %v1048_v2  ;;  %v1054_v58 = vadd.f32 1.0, %v4083_v60  ;;  %v4085_v11 = vpop.eup %4084  ;;  %v5257_v2 = vld [vmem:[#allocation11 + $0x1a0] sm:$0xff]  ;;  %v5260_v60 = vld [vmem:[#allocation11 + $0x1b0] sm:$0xff] }
 0x365   :  { %v4087_v47 = vpop.eup %4086 }
 0x366   :  { %4090 = vrcp.f32 %v1054_v58  ;;  %v1061_v31 = vadd.f32 1.0, %v4087_v47  ;;  %v5263_v58 = vld [vmem:[#allocation11 + $0x188] sm:$0xff]  ;;  %v5269_v47 = vld [vmem:[#allocation11 + $0x180] sm:$0xff] }
 0x368   :  { %4092 = vrcp.f32 %v1061_v31  ;;  %v5281_v31 = vld [vmem:[#allocation11 + $0x160] sm:$0xff] }
 0x369   :  { %6997 = vst [vmem:[#allocation23_spill] sm:$0xff] %v5281_v31 }
 0x371   :  { %v4089_v27 = vpop.eup %4088 }
 0x372   :  { %v1066_v28 = vmul.f32 %v4089_v27, %v4085_v11  ;;  %v5266_v11 = vld [vmem:[#allocation11 + $0x198] sm:$0xff]  ;;  %v5272_v27 = vld [vmem:[#allocation11 + $0x190] sm:$0xff] }
 0x373   :  { %v4091_v30 = vpop.eup %4090 }
 0x374   :  { %v1065_v4 = vmul.f32 %v4091_v30, %v5144_v38  ;;  %v5239_v38 = vld [vmem:[#allocation11 + $0x1c8] sm:$0xff]  ;;  %v5278_v30 = vld [vmem:[#allocation11 + $0x178] sm:$0xff] }
 0x375   :  { %v4093_v63 = vpop.eup %4092 }
 0x376   :  { %v5226_v1 = vadd.f32 %v1066_v28, %v1065_v4  ;;  %v5275_v28 = vld [vmem:[#allocation11 + $0x168] sm:$0xff]  ;;  %v5284_v4 = vld [vmem:[#allocation11 + $0x170] sm:$0xff] }
 0x377   :  { %6998 = vst [vmem:[#allocation24_spill] sm:$0xff] %v5284_v4 }
 0x378   :  { %4094 = vtanh.f32 %v5226_v1 }
 0x385   :  { %v4095_v51 = vpop.eup %4094 }
 0x386   :  { %v5229_v52 = vmul.f32 %v4095_v51, %v4093_v63  ;;  %v5287_v63 = vld [vmem:[#allocation11 + $0x148] sm:$0xff]  ;;  %v5290_v51 = vld [vmem:[#allocation11 + $0x158] sm:$0xff] }
 0x388   :  { %6996 = vst [vmem:[#allocation28_spill] sm:$0xff] %v5229_v52  ;;  %1145 = vmatmul.mubr.f32.vlgmr.msra.gmra.mxu0 %v5229_v52  ;;  %1216 = vmatmul.mubr.f32.vlgmr.msra.gmra.mxu1 %v5229_v52  ;;  %v5293_v52 = vld [vmem:[#allocation11 + $0x140] sm:$0xff] }
 0x389   :  { %1262 = vmatpush1.msra.mxu0 %v5233_v29  ;;  %1333 = vmatpush1.msra.mxu1 %v5236_v0 }
 0x38a   :  { %1263 = vmatprep.subr.mxu0 %v5239_v38  ;;  %1334 = vmatprep.subr.mxu1 %v5242_v59 }
 0x38b   :  { %1264 = vmatpush1.msra.mxu0 %v5245_v57  ;;  %1335 = vmatpush1.msra.mxu1 %v5248_v56 }
 0x38c   :  { %1265 = vmatprep.subr.mxu0 %v5251_v55  ;;  %1336 = vmatprep.subr.mxu1 %v5254_v3 }
 0x38d   :  { %1266 = vmatpush1.msra.mxu0 %v5257_v2  ;;  %1337 = vmatpush1.msra.mxu1 %v5260_v60 }
 0x38e   :  { %1267 = vmatprep.subr.mxu0 %v5263_v58  ;;  %1338 = vmatprep.subr.mxu1 %v5266_v11 }
 0x38f   :  { %1268 = vmatpush1.msra.mxu0 %v5269_v47  ;;  %1339 = vmatpush1.msra.mxu1 %v5272_v27 }
 0x390   :  { %1269 = vmatprep.subr.mxu0 %v5275_v28  ;;  %1340 = vmatprep.subr.mxu1 %v5278_v30 }
 0x391   :  { %1270 = vmatpush1.msra.mxu0 %v5281_v31  ;;  %1341 = vmatpush1.msra.mxu1 %v5284_v4  ;;  %v5299_v31 = vld [vmem:[#allocation11 + $0x128] sm:$0xff]  ;;  %v5302_v4 = vld [vmem:[#allocation11 + $0x138] sm:$0xff] }
 0x392   :  { %1271 = vmatprep.subr.mxu0 %v5287_v63  ;;  %1342 = vmatprep.subr.mxu1 %v5290_v51 }
 0x393   :  { %1272 = vmatpush1.msra.mxu0 %v5293_v52  ;;  %1343 = vmatpush1.msra.mxu1 %v5296_v61 }
 0x394   :  { %1273 = vmatprep.subr.mxu0 %v5299_v31  ;;  %1344 = vmatprep.subr.mxu1 %v5302_v4 }
 0x395   :  { %1274 = vmatpush1.msra.mxu0 %v4765_v32  ;;  %1345 = vmatpush1.msra.mxu1 %v4767_v33  ;;  %v6999_v33 = vld [vmem:[#allocation54_spill] sm:$0xff] }
 0x396   :  { %1275 = vmatprep.subr.mxu0 %v4769_v34  ;;  %1346 = vmatprep.subr.mxu1 %v4771_v35 }
 0x397   :  { %1276 = vmatpush1.msra.mxu0 %v4777_v36  ;;  %1347 = vmatpush1.msra.mxu1 %v4779_v37  ;;  %v7000_v37 = vld [vmem:[#allocation56_spill] sm:$0xff] }
 0x398   :  { %1277 = vmatprep.subr.mxu0 %v4785_v39  ;;  %1348 = vmatprep.subr.mxu1 %v4787_v40 }
 0x399   :  { %1278 = vmatpush1.msra.mxu0 %v4791_v41  ;;  %1349 = vmatpush1.msra.mxu1 %v4793_v42 }
 0x39a   :  { %1279 = vmatprep.subr.mxu0 %v4795_v43  ;;  %1350 = vmatprep.subr.mxu1 %v4797_v44  ;;  %v7001_v43 = vld [vmem:[#allocation57_spill] sm:$0xff] }
 0x39b   :  { %1280 = vmatpush1.msra.mxu0 %v4803_v45  ;;  %1351 = vmatpush1.msra.mxu1 %v4805_v46  ;;  %v7002_v45 = vld [vmem:[#allocation55_spill] sm:$0xff] }
 0x39c   :  { %1281 = vmatprep.subr.mxu0 %v4811_v48  ;;  %1352 = vmatprep.subr.mxu1 %v4813_v49 }
 0x39d   :  { %1282 = vmatpush1.msra.mxu0 %v4817_v50  ;;  %1353 = vmatpush1.msra.mxu1 %v6944_v20 }
 0x39e   :  { %1283 = vmatprep.subr.mxu0 %v6945_v62  ;;  %1354 = vmatprep.subr.mxu1 %v6946_v54 }
 0x39f   :  { %1284 = vmatpush1.msra.mxu0 %v6947_v53  ;;  %1355 = vmatpush1.msra.mxu1 %v6972_v5 }
 0x3a0   :  { %1285 = vmatprep.subr.mxu0 %v6973_v6  ;;  %1356 = vmatprep.subr.mxu1 %v6974_v7 }
 0x3a1   :  { %1286 = vmatpush1.msra.mxu0 %v6975_v8  ;;  %1357 = vmatpush1.msra.mxu1 %v6976_v9 }
 0x3a2   :  { %1287 = vmatprep.subr.mxu0 %v6977_v10  ;;  %1358 = vmatprep.subr.mxu1 %v6978_v12 }
 0x3a3   :  { %1288 = vmatpush1.msra.mxu0 %v6979_v13  ;;  %1359 = vmatpush1.msra.mxu1 %v6980_v14 }
 0x3a4   :  { %1289 = vmatprep.subr.mxu0 %v6981_v15  ;;  %1360 = vmatprep.subr.mxu1 %v6982_v16  ;;  %v7004_v15 = vld [vmem:[#allocation23_spill] sm:$0xff]  ;;  %v7005_v16 = vld [vmem:[#allocation24_spill] sm:$0xff] }
 0x3a5   :  { %1290 = vmatpush1.msra.mxu0 %v6983_v17  ;;  %1361 = vmatpush1.msra.mxu1 %v6984_v18  ;;  %v5383_v17 = vld [vmem:[#allocation11 + $0x120] sm:$0xff]  ;;  %v5386_v18 = vld [vmem:[#allocation11 + $0x130] sm:$0xff] }
 0x3a6   :  { %1291 = vmatprep.subr.mxu0 %v6985_v19  ;;  %1362 = vmatprep.subr.mxu1 %v6986_v21  ;;  %v5389_v19 = vld [vmem:[#allocation11 + $0x108] sm:$0xff]  ;;  %v5392_v21 = vld [vmem:[#allocation11 + $0x118] sm:$0xff] }
 0x3a7   :  { %1292 = vmatpush1.msra.mxu0 %v6987_v22  ;;  %1325 = vmatprep.mubr.f32.mxu0 %v6988_v23  ;;  %v5395_v22 = vld [vmem:[#allocation11 + $0x100] sm:$0xff] }
 0x3a8   :  { %1363 = vmatpush1.msra.mxu1 %v6989_v24  ;;  %1396 = vmatprep.mubr.f32.mxu1 %v6988_v23  ;;  %v5398_v24 = vld [vmem:[#allocation11 + $0x110] sm:$0xff] }
 0x3a9   :  { %1442 = vmatprep.subr.mxu0 %v5215_v25  ;;  %1513 = vmatprep.subr.mxu1 %v5218_v26 }
 0x448   :  { %v1146_v32 = vpop.f32.mrf.mxu0  ;;  %v1217_v40 = vpop.f32.mrf.mxu1 }
 0x449   :  { %v1222_v34 = vadd.f32 %v1146_v32, %v6999_v33  ;;  %v1224_v46 = vadd.f32 %v1217_v40, %v7002_v45  ;;  %v5404_v32 = vld [vmem:[#allocation11 + $0xf8] sm:$0xff]  ;;  %v5407_v33 = vld [vmem:[#allocation11 + $0xe0] sm:$0xff]  ;;  %v5425_v40 = vld [vmem:[#allocation11 + $0xa8] sm:$0xff] }
 0x44a   :  { %v1148_v35 = vpop.f32.mrf.mxu0  ;;  %v1219_v42 = vpop.f32.mrf.mxu1  ;;  %v5440_v45 = vld [vmem:[#allocation11 + $0x98] sm:$0xff] }
 0x44b   :  { %v3943_v36 = vmul.f32 -1.442695, %v1222_v34  ;;  %v1223_v39 = vadd.f32 %v1148_v35, %v7000_v37  ;;  %v1225_v44 = vadd.f32 %v1219_v42, %v7001_v43  ;;  %v5410_v34 = vld [vmem:[#allocation11 + $0xf0] sm:$0xff]  ;;  %v5413_v35 = vld [vmem:[#allocation11 + $0xc8] sm:$0xff]  ;;  %v5419_v37 = vld [vmem:[#allocation11 + $0xc0] sm:$0xff] }
 0x44c   :  { %v5431_v42 = vld [vmem:[#allocation11 + $0xa0] sm:$0xff]  ;;  %v5434_v43 = vld [vmem:[#allocation11 + $0xb0] sm:$0xff] }
 0x44d   :  { %4096 = vpow2.f32 %v3943_v36  ;;  %v3944_v41 = vmul.f32 -1.442695, %v1223_v39  ;;  %v3945_v48 = vmul.f32 -1.442695, %v1225_v44  ;;  %v5416_v36 = vld [vmem:[#allocation11 + $0xd8] sm:$0xff]  ;;  %v5422_v39 = vld [vmem:[#allocation11 + $0xd0] sm:$0xff] }
 0x44e   :  { %v5437_v44 = vld [vmem:[#allocation11 + $0x88] sm:$0xff] }
 0x44f   :  { %4098 = vpow2.f32 %v3944_v41  ;;  %v5428_v41 = vld [vmem:[#allocation11 + $0xb8] sm:$0xff] }
 0x450   :  { %4100 = vtanh.f32 %v1224_v46  ;;  %v5443_v46 = vld [vmem:[#allocation11 + $0x80] sm:$0xff] }
 0x451   :  { %4102 = vpow2.f32 %v3945_v48  ;;  %v5446_v48 = vld [vmem:[#allocation11 + $0x90] sm:$0xff] }
 0x452   :  { %7006 = vst [vmem:[#allocation49_spill] sm:$0xff] %v5446_v48 }
 0x45a   :  { %v4097_v49 = vpop.eup %4096 }
 0x45b   :  { %v1229_v50 = vadd.f32 1.0, %v4097_v49  ;;  %v5449_v49 = vld [vmem:[#allocation11 + $0x68] sm:$0xff] }
 0x45c   :  { %v4099_v20 = vpop.eup %4098  ;;  %7007 = vst [vmem:[#allocation47_spill] sm:$0xff] %v5449_v49 }
 0x45d   :  { %4104 = vrcp.f32 %v1229_v50  ;;  %v1235_v62 = vadd.f32 1.0, %v4099_v20  ;;  %v4101_v54 = vpop.eup %4100  ;;  %v5452_v50 = vld [vmem:[#allocation11 + $0x78] sm:$0xff]  ;;  %v5455_v20 = vld [vmem:[#allocation11 + $0x60] sm:$0xff] }
 0x45e   :  { %v4103_v53 = vpop.eup %4102  ;;  %7008 = vst [vmem:[#allocation29_spill] sm:$0xff] %v5452_v50  ;;  %7009 = vst [vmem:[#allocation30_spill] sm:$0xff] %v5455_v20 }
 0x45f   :  { %4106 = vrcp.f32 %v1235_v62  ;;  %v1242_v8 = vadd.f32 1.0, %v4103_v53  ;;  %v5458_v62 = vld [vmem:[#allocation11 + $0x70] sm:$0xff]  ;;  %v5464_v53 = vld [vmem:[#allocation11 + $0x58] sm:$0xff] }
 0x460   :  { %7010 = vst [vmem:[#allocation31_spill] sm:$0xff] %v5458_v62  ;;  %7012 = vst [vmem:[#allocation33_spill] sm:$0xff] %v5464_v53 }
 0x461   :  { %4108 = vrcp.f32 %v1242_v8  ;;  %v5476_v8 = vld [vmem:[#allocation11 + $0x38] sm:$0xff] }
 0x462   :  { %7016 = vst [vmem:[#allocation37_spill] sm:$0xff] %v5476_v8 }
 0x46a   :  { %v4105_v5 = vpop.eup %4104 }
 0x46b   :  { %v1247_v6 = vmul.f32 %v4105_v5, %v4101_v54  ;;  %v5461_v54 = vld [vmem:[#allocation11 + $0x48] sm:$0xff]  ;;  %v5467_v5 = vld [vmem:[#allocation11 + $0x40] sm:$0xff] }
 0x46c   :  { %v4107_v7 = vpop.eup %4106  ;;  %7011 = vst [vmem:[#allocation32_spill] sm:$0xff] %v5461_v54  ;;  %7013 = vst [vmem:[#allocation34_spill] sm:$0xff] %v5467_v5 }
 0x46d   :  { %v1246_v9 = vmul.f32 %v4107_v7, %v5226_v1  ;;  %v5401_v1 = vld [vmem:[#allocation11 + $0xe8] sm:$0xff] }
 0x46e   :  { %v4109_v12 = vpop.eup %4108  ;;  %v5473_v7 = vld [vmem:[#allocation11 + $0x28] sm:$0xff] }
 0x46f   :  { %v5352_v10 = vadd.f32 %v1247_v6, %v1246_v9  ;;  %v5470_v6 = vld [vmem:[#allocation11 + $0x50] sm:$0xff]  ;;  %7015 = vst [vmem:[#allocation36_spill] sm:$0xff] %v5473_v7  ;;  %v5479_v9 = vld [vmem:[#allocation11 + $0x20] sm:$0xff] }
 0x470   :  { %7014 = vst [vmem:[#allocation35_spill] sm:$0xff] %v5470_v6  ;;  %7017 = vst [vmem:[#allocation38_spill] sm:$0xff] %v5479_v9 }
 0x471   :  { %4110 = vtanh.f32 %v5352_v10 }
 0x47e   :  { %v4111_v13 = vpop.eup %4110 }
 0x47f   :  { %v5355_v14 = vmul.f32 %v4111_v13, %v4109_v12  ;;  %v5482_v12 = vld [vmem:[#allocation11 + $0x30] sm:$0xff]  ;;  %v5485_v13 = vld [vmem:[#allocation11 + $0x8] sm:$0xff] }
 0x480   :  { %7018 = vst [vmem:[#allocation39_spill] sm:$0xff] %v5482_v12  ;;  %7019 = vst [vmem:[#allocation40_spill] sm:$0xff] %v5485_v13 }
 0x481   :  { %7003 = vst [vmem:[#allocation48_spill] sm:$0xff] %v5355_v14  ;;  %1326 = vmatmul.mubr.f32.vlgmr.msra.gmra.mxu0 %v5355_v14  ;;  %1397 = vmatmul.mubr.f32.vlgmr.msra.gmra.mxu1 %v5355_v14  ;;  %v5488_v14 = vld [vmem:[#allocation11 + $0x18] sm:$0xff] }
 0x482   :  { %1443 = vmatpush1.msra.mxu0 %v5233_v29  ;;  %1514 = vmatpush1.msra.mxu1 %v5236_v0  ;;  %7020 = vst [vmem:[#allocation41_spill] sm:$0xff] %v5488_v14 }
 0x483   :  { %1444 = vmatprep.subr.mxu0 %v5239_v38  ;;  %1515 = vmatprep.subr.mxu1 %v5242_v59 }
 0x484   :  { %1445 = vmatpush1.msra.mxu0 %v5245_v57  ;;  %1516 = vmatpush1.msra.mxu1 %v5248_v56 }
 0x485   :  { %1446 = vmatprep.subr.mxu0 %v5251_v55  ;;  %1517 = vmatprep.subr.mxu1 %v5254_v3 }
 0x486   :  { %1447 = vmatpush1.msra.mxu0 %v5257_v2  ;;  %1518 = vmatpush1.msra.mxu1 %v5260_v60 }
 0x487   :  { %1448 = vmatprep.subr.mxu0 %v5263_v58  ;;  %1519 = vmatprep.subr.mxu1 %v5266_v11 }
 0x488   :  { %1449 = vmatpush1.msra.mxu0 %v5269_v47  ;;  %1520 = vmatpush1.msra.mxu1 %v5272_v27 }
 0x489   :  { %1450 = vmatprep.subr.mxu0 %v5275_v28  ;;  %1521 = vmatprep.subr.mxu1 %v5278_v30 }
 0x48a   :  { %1451 = vmatpush1.msra.mxu0 %v7004_v15  ;;  %1522 = vmatpush1.msra.mxu1 %v7005_v16 }
 0x48b   :  { %1452 = vmatprep.subr.mxu0 %v5287_v63  ;;  %1523 = vmatprep.subr.mxu1 %v5290_v51 }
 0x48c   :  { %1453 = vmatpush1.msra.mxu0 %v5293_v52  ;;  %1524 = vmatpush1.msra.mxu1 %v5296_v61 }
 0x48d   :  { %1454 = vmatprep.subr.mxu0 %v5299_v31  ;;  %1525 = vmatprep.subr.mxu1 %v5302_v4 }
 0x48e   :  { %1455 = vmatpush1.msra.mxu0 %v5383_v17  ;;  %1526 = vmatpush1.msra.mxu1 %v5386_v18 }
 0x48f   :  { %1456 = vmatprep.subr.mxu0 %v5389_v19  ;;  %1527 = vmatprep.subr.mxu1 %v5392_v21 }
 0x490   :  { %1457 = vmatpush1.msra.mxu0 %v5395_v22  ;;  %1528 = vmatpush1.msra.mxu1 %v5398_v24 }
 0x491   :  { %1458 = vmatprep.subr.mxu0 %v5401_v1  ;;  %1529 = vmatprep.subr.mxu1 %v5404_v32 }
 0x492   :  { %1459 = vmatpush1.msra.mxu0 %v5407_v33  ;;  %1530 = vmatpush1.msra.mxu1 %v5410_v34 }
 0x493   :  { %1460 = vmatprep.subr.mxu0 %v5413_v35  ;;  %1531 = vmatprep.subr.mxu1 %v5416_v36 }
 0x494   :  { %1461 = vmatpush1.msra.mxu0 %v5419_v37  ;;  %1532 = vmatpush1.msra.mxu1 %v5422_v39 }
 0x495   :  { %1462 = vmatprep.subr.mxu0 %v5425_v40  ;;  %1533 = vmatprep.subr.mxu1 %v5428_v41 }
 0x496   :  { %1463 = vmatpush1.msra.mxu0 %v5431_v42  ;;  %1534 = vmatpush1.msra.mxu1 %v5434_v43 }
 0x497   :  { %1464 = vmatprep.subr.mxu0 %v5437_v44  ;;  %1535 = vmatprep.subr.mxu1 %v5440_v45 }
 0x498   :  { %1465 = vmatpush1.msra.mxu0 %v5443_v46  ;;  %1536 = vmatpush1.msra.mxu1 %v5446_v48 }
 0x499   :  { %1466 = vmatprep.subr.mxu0 %v5449_v49  ;;  %1537 = vmatprep.subr.mxu1 %v5452_v50  ;;  %v7026_v50 = vld [vmem:[#allocation59_spill] sm:$0xff] }
 0x49a   :  { %1467 = vmatpush1.msra.mxu0 %v5455_v20  ;;  %1538 = vmatpush1.msra.mxu1 %v5458_v62  ;;  %v7025_v20 = vld [vmem:[#allocation61_spill] sm:$0xff] }
 0x49b   :  { %1468 = vmatprep.subr.mxu0 %v5461_v54  ;;  %1539 = vmatprep.subr.mxu1 %v5464_v53 }
 0x49c   :  { %1469 = vmatpush1.msra.mxu0 %v5467_v5  ;;  %1540 = vmatpush1.msra.mxu1 %v5470_v6  ;;  %v7024_v5 = vld [vmem:[#allocation60_spill] sm:$0xff] }
 0x49d   :  { %1470 = vmatprep.subr.mxu0 %v5473_v7  ;;  %1541 = vmatprep.subr.mxu1 %v5476_v8  ;;  %v5491_v7 = vld [vmem:[#allocation11] sm:$0xff]  ;;  %v5495_v8 = vld [vmem:[#allocation11 + $0x10] sm:$0xff] }
 0x49e   :  { %1471 = vmatpush1.msra.mxu0 %v5479_v9  ;;  %1542 = vmatpush1.msra.mxu1 %v5482_v12  ;;  %7021 = vst [vmem:[#allocation42_spill] sm:$0xff] %v5491_v7  ;;  %7022 = vst [vmem:[#allocation43_spill] sm:$0xff] %v5495_v8  ;;  %v7023_v12 = vld [vmem:[#allocation58_spill] sm:$0xff] }
 0x49f   :  { %1472 = vmatprep.subr.mxu0 %v5485_v13  ;;  %1543 = vmatprep.subr.mxu1 %v5488_v14 }
 0x4a0   :  { %1473 = vmatpush1.msra.mxu0 %v5491_v7  ;;  %1506 = vmatprep.mubr.f32.mxu0 %v6988_v23 }
 0x4a1   :  { %1544 = vmatpush1.msra.mxu1 %v5495_v8  ;;  %1577 = vmatprep.mubr.f32.mxu1 %v6988_v23 }
 0x4a2   :  { %1623 = vmatprep.subr.mxu0 %v5215_v25  ;;  %1694 = vmatprep.subr.mxu1 %v5218_v26 }
 0x541   :  { %v1327_v13 = vpop.f32.mrf.mxu0  ;;  %v1398_v7 = vpop.f32.mrf.mxu1 }
 0x542   :  { %v1403_v9 = vadd.f32 %v1327_v13, %v7023_v12  ;;  %v1405_v23 = vadd.f32 %v1398_v7, %v7026_v50  ;;  %v7033_v7 = vld [vmem:[#allocation32_spill] sm:$0xff] }
 0x543   :  { %v1329_v14 = vpop.f32.mrf.mxu0  ;;  %v1400_v62 = vpop.f32.mrf.mxu1 }
 0x544   :  { %v3946_v6 = vmul.f32 -1.442695, %v1403_v9  ;;  %v1404_v53 = vadd.f32 %v1329_v14, %v7024_v5  ;;  %v1406_v8 = vadd.f32 %v1400_v62, %v7025_v20  ;;  %v7032_v62 = vld [vmem:[#allocation31_spill] sm:$0xff] }
 0x546   :  { %4112 = vpow2.f32 %v3946_v6  ;;  %v3947_v54 = vmul.f32 -1.442695, %v1404_v53  ;;  %v3948_v49 = vmul.f32 -1.442695, %v1406_v8  ;;  %v7034_v8 = vld [vmem:[#allocation33_spill] sm:$0xff] }
 0x548   :  { %4114 = vpow2.f32 %v3947_v54 }
 0x549   :  { %4116 = vtanh.f32 %v1405_v23 }
 0x54a   :  { %4118 = vpow2.f32 %v3948_v49  ;;  %v7031_v49 = vld [vmem:[#allocation30_spill] sm:$0xff] }
 0x553   :  { %v4113_v25 = vpop.eup %4112 }
 0x554   :  { %v1410_v48 = vadd.f32 1.0, %v4113_v25 }
 0x555   :  { %v4115_v26 = vpop.eup %4114 }
 0x556   :  { %4120 = vrcp.f32 %v1410_v48  ;;  %v1416_v12 = vadd.f32 1.0, %v4115_v26  ;;  %v4117_v9 = vpop.eup %4116  ;;  %v7028_v26 = vld [vmem:[#allocation49_spill] sm:$0xff] }
 0x557   :  { %v4119_v14 = vpop.eup %4118  ;;  %v7030_v48 = vld [vmem:[#allocation29_spill] sm:$0xff] }
 0x558   :  { %4122 = vrcp.f32 %v1416_v12  ;;  %v1423_v54 = vadd.f32 1.0, %v4119_v14  ;;  %v7035_v12 = vld [vmem:[#allocation34_spill] sm:$0xff]  ;;  %v7037_v14 = vld [vmem:[#allocation36_spill] sm:$0xff] }
 0x55a   :  { %4124 = vrcp.f32 %v1423_v54  ;;  %v7041_v54 = vld [vmem:[#allocation40_spill] sm:$0xff] }
 0x563   :  { %v4121_v5 = vpop.eup %4120 }
 0x564   :  { %v1428_v6 = vmul.f32 %v4121_v5, %v4117_v9  ;;  %v7036_v9 = vld [vmem:[#allocation35_spill] sm:$0xff]  ;;  %v7038_v5 = vld [vmem:[#allocation37_spill] sm:$0xff] }
 0x565   :  { %v4123_v53 = vpop.eup %4122 }
 0x566   :  { %v1427_v13 = vmul.f32 %v4123_v53, %v5352_v10  ;;  %v7029_v10 = vld [vmem:[#allocation47_spill] sm:$0xff] }
 0x567   :  { %v4125_v25 = vpop.eup %4124  ;;  %v7040_v53 = vld [vmem:[#allocation39_spill] sm:$0xff] }
 0x568   :  { %v5506_v20 = vadd.f32 %v1428_v6, %v1427_v13  ;;  %v7039_v6 = vld [vmem:[#allocation38_spill] sm:$0xff]  ;;  %v7042_v13 = vld [vmem:[#allocation41_spill] sm:$0xff] }
 0x56a   :  { %4126 = vtanh.f32 %v5506_v20 }
 0x577   :  { %v4127_v23 = vpop.eup %4126 }
 0x578   :  { %v5509_v50 = vmul.f32 %v4127_v23, %v4125_v25  ;;  %v7043_v25 = vld [vmem:[#allocation42_spill] sm:$0xff]  ;;  %v7044_v23 = vmov 0.0  }
 0x57a   :  { %7027 = vst [vmem:[#allocation44_spill] sm:$0xff] %v5509_v50  ;;  %1507 = vmatmul.mubr.f32.vlgmr.msra.gmra.mxu0 %v5509_v50  ;;  %1578 = vmatmul.mubr.f32.vlgmr.msra.gmra.mxu1 %v5509_v50  ;;  %v7045_v50 = vld [vmem:[#allocation43_spill] sm:$0xff] }
 0x57b   :  { %1624 = vmatpush1.msra.mxu0 %v5233_v29  ;;  %1695 = vmatpush1.msra.mxu1 %v5236_v0 }
 0x57c   :  { %1625 = vmatprep.subr.mxu0 %v5239_v38  ;;  %1696 = vmatprep.subr.mxu1 %v5242_v59 }
 0x57d   :  { %1626 = vmatpush1.msra.mxu0 %v5245_v57  ;;  %1697 = vmatpush1.msra.mxu1 %v5248_v56 }
 0x57e   :  { %1627 = vmatprep.subr.mxu0 %v5251_v55  ;;  %1698 = vmatprep.subr.mxu1 %v5254_v3 }
 0x57f   :  { %1628 = vmatpush1.msra.mxu0 %v5257_v2  ;;  %1699 = vmatpush1.msra.mxu1 %v5260_v60 }
 0x580   :  { %1629 = vmatprep.subr.mxu0 %v5263_v58  ;;  %1700 = vmatprep.subr.mxu1 %v5266_v11 }
 0x581   :  { %1630 = vmatpush1.msra.mxu0 %v5269_v47  ;;  %1701 = vmatpush1.msra.mxu1 %v5272_v27 }
 0x582   :  { %1631 = vmatprep.subr.mxu0 %v5275_v28  ;;  %1702 = vmatprep.subr.mxu1 %v5278_v30 }
 0x583   :  { %1632 = vmatpush1.msra.mxu0 %v7004_v15  ;;  %1703 = vmatpush1.msra.mxu1 %v7005_v16 }
 0x584   :  { %1633 = vmatprep.subr.mxu0 %v5287_v63  ;;  %1704 = vmatprep.subr.mxu1 %v5290_v51 }
 0x585   :  { %1634 = vmatpush1.msra.mxu0 %v5293_v52  ;;  %1705 = vmatpush1.msra.mxu1 %v5296_v61 }
 0x586   :  { %1635 = vmatprep.subr.mxu0 %v5299_v31  ;;  %1706 = vmatprep.subr.mxu1 %v5302_v4 }
 0x587   :  { %1636 = vmatpush1.msra.mxu0 %v5383_v17  ;;  %1707 = vmatpush1.msra.mxu1 %v5386_v18 }
 0x588   :  { %1637 = vmatprep.subr.mxu0 %v5389_v19  ;;  %1708 = vmatprep.subr.mxu1 %v5392_v21 }
 0x589   :  { %1638 = vmatpush1.msra.mxu0 %v5395_v22  ;;  %1709 = vmatpush1.msra.mxu1 %v5398_v24 }
 0x58a   :  { %1639 = vmatprep.subr.mxu0 %v5401_v1  ;;  %1710 = vmatprep.subr.mxu1 %v5404_v32 }
 0x58b   :  { %1640 = vmatpush1.msra.mxu0 %v5407_v33  ;;  %1711 = vmatpush1.msra.mxu1 %v5410_v34 }
 0x58c   :  { %1641 = vmatprep.subr.mxu0 %v5413_v35  ;;  %1712 = vmatprep.subr.mxu1 %v5416_v36 }
 0x58d   :  { %1642 = vmatpush1.msra.mxu0 %v5419_v37  ;;  %1713 = vmatpush1.msra.mxu1 %v5422_v39 }
 0x58e   :  { %1643 = vmatprep.subr.mxu0 %v5425_v40  ;;  %1714 = vmatprep.subr.mxu1 %v5428_v41 }
 0x58f   :  { %1644 = vmatpush1.msra.mxu0 %v5431_v42  ;;  %1715 = vmatpush1.msra.mxu1 %v5434_v43 }
 0x590   :  { %1645 = vmatprep.subr.mxu0 %v5437_v44  ;;  %1716 = vmatprep.subr.mxu1 %v5440_v45 }
 0x591   :  { %1646 = vmatpush1.msra.mxu0 %v5443_v46  ;;  %1717 = vmatpush1.msra.mxu1 %v7028_v26 }
 0x592   :  { %1647 = vmatprep.subr.mxu0 %v7029_v10  ;;  %1718 = vmatprep.subr.mxu1 %v7030_v48  ;;  %v7051_v48 = vld [vmem:[#allocation63_spill] sm:$0xff] }
 0x593   :  { %1648 = vmatpush1.msra.mxu0 %v7031_v49  ;;  %1719 = vmatpush1.msra.mxu1 %v7032_v62  ;;  %v7050_v49 = vld [vmem:[#allocation65_spill] sm:$0xff] }
 0x594   :  { %1649 = vmatprep.subr.mxu0 %v7033_v7  ;;  %1720 = vmatprep.subr.mxu1 %v7034_v8 }
 0x595   :  { %1650 = vmatpush1.msra.mxu0 %v7035_v12  ;;  %1721 = vmatpush1.msra.mxu1 %v7036_v9  ;;  %v7046_v9 = vld [vmem:[#allocation26_spill] sm:$0xff] }
 0x596   :  { %1651 = vmatprep.subr.mxu0 %v7037_v14  ;;  %1722 = vmatprep.subr.mxu1 %v7038_v5  ;;  %v7047_v14 = vld [vmem:[#allocation27_spill] sm:$0xff] }
 0x597   :  { %1652 = vmatpush1.msra.mxu0 %v7039_v6  ;;  %1723 = vmatpush1.msra.mxu1 %v7040_v53  ;;  %v7048_v6 = vld [vmem:[#allocation62_spill] sm:$0xff] }
 0x598   :  { %1653 = vmatprep.subr.mxu0 %v7041_v54  ;;  %1724 = vmatprep.subr.mxu1 %v7042_v13  ;;  %v7049_v54 = vld [vmem:[#allocation64_spill] sm:$0xff] }
 0x599   :  { %1654 = vmatpush1.msra.mxu0 %v7043_v25  ;;  %1687 = vmatprep.mubr.f32.mxu0 %v7044_v23 }
 0x59a   :  { %1725 = vmatpush1.msra.mxu1 %v7045_v50  ;;  %1758 = vmatprep.mubr.f32.mxu1 %v7044_v23 }
 0x59b   :  { %1804 = vmatprep.subr.mxu0 %v7046_v9  ;;  %1875 = vmatprep.subr.mxu1 %v7047_v14 }
 0x63a   :  { %v1508_v5 = vpop.f32.mrf.mxu0  ;;  %v1579_v13 = vpop.f32.mrf.mxu1 }
 0x63b   :  { %v1584_v12 = vadd.f32 %v1508_v5, %v7048_v6  ;;  %v1586_v23 = vadd.f32 %v1579_v13, %v7051_v48 }
 0x63c   :  { %v1510_v53 = vpop.f32.mrf.mxu0  ;;  %v1581_v62 = vpop.f32.mrf.mxu1 }
 0x63d   :  { %v3949_v8 = vmul.f32 -1.442695, %v1584_v12  ;;  %v1585_v7 = vadd.f32 %v1510_v53, %v7049_v54  ;;  %v1587_v50 = vadd.f32 %v1581_v62, %v7050_v49 }
 0x63f   :  { %4128 = vpow2.f32 %v3949_v8  ;;  %v3950_v25 = vmul.f32 -1.442695, %v1585_v7  ;;  %v3951_v10 = vmul.f32 -1.442695, %v1587_v50 }
 0x641   :  { %4130 = vpow2.f32 %v3950_v25 }
 0x642   :  { %4132 = vtanh.f32 %v1586_v23 }
 0x643   :  { %4134 = vpow2.f32 %v3951_v10 }
 0x64c   :  { %v4129_v9 = vpop.eup %4128 }
 0x64d   :  { %v1591_v26 = vadd.f32 1.0, %v4129_v9  ;;  %v2039_v9 = vld [vmem:[#allocation12 + $0x1e0] sm:$0xff] }
 0x64e   :  { %v4131_v14 = vpop.eup %4130 }
 0x64f   :  { %4136 = vrcp.f32 %v1591_v26  ;;  %v1597_v5 = vadd.f32 1.0, %v4131_v14  ;;  %v4133_v12 = vpop.eup %4132  ;;  %v2041_v14 = vld [vmem:[#allocation12 + $0x1f0] sm:$0xff] }
 0x650   :  { %v4135_v6 = vpop.eup %4134 }
 0x651   :  { %4138 = vrcp.f32 %v1597_v5  ;;  %v1604_v54 = vadd.f32 1.0, %v4135_v6  ;;  %v2036_v5 = vld [vmem:[#allocation12 + $0x1c8] sm:$0xff]  ;;  %v2035_v6 = vld [vmem:[#allocation12 + $0x1c0] sm:$0xff] }
 0x653   :  { %4140 = vrcp.f32 %v1604_v54  ;;  %v2031_v54 = vld [vmem:[#allocation12 + $0x1a0] sm:$0xff] }
 0x65c   :  { %v4137_v8 = vpop.eup %4136 }
 0x65d   :  { %v1609_v53 = vmul.f32 %v4137_v8, %v4133_v12  ;;  %v2038_v12 = vld [vmem:[#allocation12 + $0x1d8] sm:$0xff]  ;;  %v2037_v8 = vld [vmem:[#allocation12 + $0x1d0] sm:$0xff] }
 0x65e   :  { %v4139_v7 = vpop.eup %4138 }
 0x65f   :  { %v1608_v25 = vmul.f32 %v4139_v7, %v5506_v20  ;;  %v2034_v7 = vld [vmem:[#allocation12 + $0x1b8] sm:$0xff] }
 0x660   :  { %v4141_v50 = vpop.eup %4140 }
 0x661   :  { %v5584_v49 = vadd.f32 %v1609_v53, %v1608_v25  ;;  %v2032_v53 = vld [vmem:[#allocation12 + $0x1a8] sm:$0xff]  ;;  %v2033_v25 = vld [vmem:[#allocation12 + $0x1b0] sm:$0xff] }
 0x663   :  { %4142 = vtanh.f32 %v5584_v49 }
 0x670   :  { %v4143_v48 = vpop.eup %4142 }
 0x671   :  { %v5587_v62 = vmul.f32 %v4143_v48, %v4141_v50  ;;  %v2030_v50 = vld [vmem:[#allocation12 + $0x198] sm:$0xff]  ;;  %v2027_v48 = vld [vmem:[#allocation12 + $0x180] sm:$0xff] }
 0x673   :  { %1688 = vmatmul.mubr.f32.vlgmr.msra.gmra.mxu0 %v5587_v62  ;;  %1759 = vmatmul.mubr.f32.vlgmr.msra.gmra.mxu1 %v5587_v62 }
 0x674   :  { %1805 = vmatpush1.msra.mxu0 %v5233_v29  ;;  %1876 = vmatpush1.msra.mxu1 %v5236_v0  ;;  %v7054_v29 = vld [vmem:[#allocation29_spill] sm:$0xff]  ;;  %v7055_v0 = vld [vmem:[#allocation30_spill] sm:$0xff] }
 0x675   :  { %1806 = vmatprep.subr.mxu0 %v5239_v38  ;;  %1877 = vmatprep.subr.mxu1 %v5242_v59  ;;  %v7056_v38 = vld [vmem:[#allocation31_spill] sm:$0xff]  ;;  %v7057_v59 = vld [vmem:[#allocation32_spill] sm:$0xff] }
 0x676   :  { %1807 = vmatpush1.msra.mxu0 %v5245_v57  ;;  %1878 = vmatpush1.msra.mxu1 %v5248_v56  ;;  %v7058_v57 = vld [vmem:[#allocation33_spill] sm:$0xff]  ;;  %v7059_v56 = vld [vmem:[#allocation34_spill] sm:$0xff] }
 0x677   :  { %1808 = vmatprep.subr.mxu0 %v5251_v55  ;;  %1879 = vmatprep.subr.mxu1 %v5254_v3  ;;  %v7060_v55 = vld [vmem:[#allocation35_spill] sm:$0xff]  ;;  %v7061_v3 = vld [vmem:[#allocation36_spill] sm:$0xff] }
 0x678   :  { %1809 = vmatpush1.msra.mxu0 %v5257_v2  ;;  %1880 = vmatpush1.msra.mxu1 %v5260_v60  ;;  %v7062_v2 = vld [vmem:[#allocation37_spill] sm:$0xff]  ;;  %v7063_v60 = vld [vmem:[#allocation38_spill] sm:$0xff] }
 0x679   :  { %1810 = vmatprep.subr.mxu0 %v5263_v58  ;;  %1881 = vmatprep.subr.mxu1 %v5266_v11  ;;  %v7064_v58 = vld [vmem:[#allocation39_spill] sm:$0xff]  ;;  %v7065_v11 = vld [vmem:[#allocation40_spill] sm:$0xff] }
 0x67a   :  { %1811 = vmatpush1.msra.mxu0 %v5269_v47  ;;  %1882 = vmatpush1.msra.mxu1 %v5272_v27  ;;  %v7066_v47 = vld [vmem:[#allocation41_spill] sm:$0xff]  ;;  %v7067_v27 = vld [vmem:[#allocation42_spill] sm:$0xff] }
 0x67b   :  { %1812 = vmatprep.subr.mxu0 %v5275_v28  ;;  %1883 = vmatprep.subr.mxu1 %v5278_v30  ;;  %v7068_v28 = vld [vmem:[#allocation43_spill] sm:$0xff]  ;;  %v7069_v30 = vmov 0.0  }
 0x67c   :  { %1813 = vmatpush1.msra.mxu0 %v7004_v15  ;;  %1884 = vmatpush1.msra.mxu1 %v7005_v16 }
 0x67d   :  { %1814 = vmatprep.subr.mxu0 %v5287_v63  ;;  %1885 = vmatprep.subr.mxu1 %v5290_v51  ;;  %v7070_v51 = vld [vmem:[#allocation66_spill] sm:$0xff] }
 0x67e   :  { %1815 = vmatpush1.msra.mxu0 %v5293_v52  ;;  %1886 = vmatpush1.msra.mxu1 %v5296_v61  ;;  %v7052_v61 = vld [vmem:[#allocation49_spill] sm:$0xff]  ;;  %v7053_v52 = vld [vmem:[#allocation47_spill] sm:$0xff] }
 0x67f   :  { %1816 = vmatprep.subr.mxu0 %v5299_v31  ;;  %1887 = vmatprep.subr.mxu1 %v5302_v4  ;;  %v2040_v31 = vld [vmem:[#allocation12 + $0x1e8] sm:$0xff]  ;;  %v2042_v4 = vld [vmem:[#allocation12 + $0x1f8] sm:$0xff] }
 0x680   :  { %1817 = vmatpush1.msra.mxu0 %v5383_v17  ;;  %1888 = vmatpush1.msra.mxu1 %v5386_v18  ;;  %v7071_v18 = vld [vmem:[#allocation68_spill] sm:$0xff] }
 0x681   :  { %1818 = vmatprep.subr.mxu0 %v5389_v19  ;;  %1889 = vmatprep.subr.mxu1 %v5392_v21 }
 0x682   :  { %1819 = vmatpush1.msra.mxu0 %v5395_v22  ;;  %1890 = vmatpush1.msra.mxu1 %v5398_v24 }
 0x683   :  { %1820 = vmatprep.subr.mxu0 %v5401_v1  ;;  %1891 = vmatprep.subr.mxu1 %v5404_v32  ;;  %v7072_v1 = vld [vmem:[#allocation69_spill] sm:$0xff] }
 0x684   :  { %1821 = vmatpush1.msra.mxu0 %v5407_v33  ;;  %1892 = vmatpush1.msra.mxu1 %v5410_v34  ;;  %v7073_v33 = vld [vmem:[#allocation67_spill] sm:$0xff] }
 0x685   :  { %1822 = vmatprep.subr.mxu0 %v5413_v35  ;;  %1893 = vmatprep.subr.mxu1 %v5416_v36 }
 0x686   :  { %1823 = vmatpush1.msra.mxu0 %v5419_v37  ;;  %1894 = vmatpush1.msra.mxu1 %v5422_v39 }
 0x687   :  { %1824 = vmatprep.subr.mxu0 %v5425_v40  ;;  %1895 = vmatprep.subr.mxu1 %v5428_v41 }
 0x688   :  { %1825 = vmatpush1.msra.mxu0 %v5431_v42  ;;  %1896 = vmatpush1.msra.mxu1 %v5434_v43 }
 0x689   :  { %1826 = vmatprep.subr.mxu0 %v5437_v44  ;;  %1897 = vmatprep.subr.mxu1 %v5440_v45 }
 0x68a   :  { %1827 = vmatpush1.msra.mxu0 %v5443_v46  ;;  %1898 = vmatpush1.msra.mxu1 %v7052_v61  ;;  %v2029_v61 = vld [vmem:[#allocation12 + $0x190] sm:$0xff] }
 0x68b   :  { %1828 = vmatprep.subr.mxu0 %v7053_v52  ;;  %1899 = vmatprep.subr.mxu1 %v7054_v29  ;;  %v2024_v52 = vld [vmem:[#allocation12 + $0x168] sm:$0xff]  ;;  %v2026_v29 = vld [vmem:[#allocation12 + $0x178] sm:$0xff] }
 0x68c   :  { %1829 = vmatpush1.msra.mxu0 %v7055_v0  ;;  %1900 = vmatpush1.msra.mxu1 %v7056_v38  ;;  %v2023_v0 = vld [vmem:[#allocation12 + $0x160] sm:$0xff]  ;;  %v2025_v38 = vld [vmem:[#allocation12 + $0x170] sm:$0xff] }
 0x68d   :  { %1830 = vmatprep.subr.mxu0 %v7057_v59  ;;  %1901 = vmatprep.subr.mxu1 %v7058_v57  ;;  %v2020_v59 = vld [vmem:[#allocation12 + $0x148] sm:$0xff]  ;;  %v2022_v57 = vld [vmem:[#allocation12 + $0x158] sm:$0xff] }
 0x68e   :  { %1831 = vmatpush1.msra.mxu0 %v7059_v56  ;;  %1902 = vmatpush1.msra.mxu1 %v7060_v55  ;;  %v2019_v56 = vld [vmem:[#allocation12 + $0x140] sm:$0xff]  ;;  %v2021_v55 = vld [vmem:[#allocation12 + $0x150] sm:$0xff] }
 0x68f   :  { %1832 = vmatprep.subr.mxu0 %v7061_v3  ;;  %1903 = vmatprep.subr.mxu1 %v7062_v2  ;;  %v2016_v3 = vld [vmem:[#allocation12 + $0x128] sm:$0xff]  ;;  %v2018_v2 = vld [vmem:[#allocation12 + $0x138] sm:$0xff] }
 0x690   :  { %1833 = vmatpush1.msra.mxu0 %v7063_v60  ;;  %1904 = vmatpush1.msra.mxu1 %v7064_v58  ;;  %v2015_v60 = vld [vmem:[#allocation12 + $0x120] sm:$0xff]  ;;  %v2017_v58 = vld [vmem:[#allocation12 + $0x130] sm:$0xff] }
 0x691   :  { %1834 = vmatprep.subr.mxu0 %v7065_v11  ;;  %1905 = vmatprep.subr.mxu1 %v7066_v47  ;;  %v2012_v11 = vld [vmem:[#allocation12 + $0x108] sm:$0xff]  ;;  %v2014_v47 = vld [vmem:[#allocation12 + $0x118] sm:$0xff] }
 0x692   :  { %1835 = vmatpush1.msra.mxu0 %v7067_v27  ;;  %1906 = vmatpush1.msra.mxu1 %v7068_v28  ;;  %v2011_v27 = vld [vmem:[#allocation12 + $0x100] sm:$0xff]  ;;  %v2013_v28 = vld [vmem:[#allocation12 + $0x110] sm:$0xff] }
 0x693   :  { %1868 = vmatprep.mubr.f32.mxu0 %v7069_v30  ;;  %1939 = vmatprep.mubr.f32.mxu1 %v7069_v30 }
 0x694   :  { %2137 = vmatprep.subr.mxu0 %v2040_v31  ;;  %2250 = vmatprep.subr.mxu1 %v2042_v4  ;;  %v2008_v31 = vld [vmem:[#allocation12 + $0xe8] sm:$0xff]  ;;  %v2010_v4 = vld [vmem:[#allocation12 + $0xf8] sm:$0xff] }
 0x733   :  { %v1689_v63 = vpop.f32.mrf.mxu0  ;;  %v1760_v21 = vpop.f32.mrf.mxu1 }
 0x734   :  { %v1765_v15 = vadd.f32 %v1689_v63, %v7070_v51  ;;  %v1767_v34 = vadd.f32 %v1760_v21, %v7073_v33  ;;  %v2007_v63 = vld [vmem:[#allocation12 + $0xe0] sm:$0xff]  ;;  %v2009_v51 = vld [vmem:[#allocation12 + $0xf0] sm:$0xff]  ;;  %v2002_v21 = vld [vmem:[#allocation12 + $0xb8] sm:$0xff] }
 0x735   :  { %v1691_v16 = vpop.f32.mrf.mxu0  ;;  %v1762_v24 = vpop.f32.mrf.mxu1  ;;  %v1995_v33 = vld [vmem:[#allocation12 + $0x80] sm:$0xff] }
 0x736   :  { %v3952_v17 = vmul.f32 -1.442695, %v1765_v15  ;;  %v1766_v19 = vadd.f32 %v1691_v16, %v7071_v18  ;;  %v1768_v32 = vadd.f32 %v1762_v24, %v7072_v1  ;;  %v2004_v15 = vld [vmem:[#allocation12 + $0xc8] sm:$0xff]  ;;  %v2006_v16 = vld [vmem:[#allocation12 + $0xd8] sm:$0xff]  ;;  %v2005_v18 = vld [vmem:[#allocation12 + $0xd0] sm:$0xff] }
 0x737   :  { %v2001_v24 = vld [vmem:[#allocation12 + $0xb0] sm:$0xff]  ;;  %v1996_v1 = vld [vmem:[#allocation12 + $0x88] sm:$0xff] }
 0x738   :  { %4144 = vpow2.f32 %v3952_v17  ;;  %v3953_v22 = vmul.f32 -1.442695, %v1766_v19  ;;  %v3954_v35 = vmul.f32 -1.442695, %v1768_v32  ;;  %v2003_v17 = vld [vmem:[#allocation12 + $0xc0] sm:$0xff]  ;;  %v2000_v19 = vld [vmem:[#allocation12 + $0xa8] sm:$0xff] }
 0x739   :  { %v1998_v32 = vld [vmem:[#allocation12 + $0x98] sm:$0xff] }
 0x73a   :  { %4146 = vpow2.f32 %v3953_v22  ;;  %v1999_v22 = vld [vmem:[#allocation12 + $0xa0] sm:$0xff] }
 0x73b   :  { %4148 = vtanh.f32 %v1767_v34  ;;  %v1997_v34 = vld [vmem:[#allocation12 + $0x90] sm:$0xff] }
 0x73c   :  { %4150 = vpow2.f32 %v3954_v35  ;;  %v1992_v35 = vld [vmem:[#allocation12 + $0x68] sm:$0xff] }
 0x745   :  { %v4145_v36 = vpop.eup %4144 }
 0x746   :  { %v1772_v37 = vadd.f32 1.0, %v4145_v36  ;;  %v1994_v36 = vld [vmem:[#allocation12 + $0x78] sm:$0xff] }
 0x747   :  { %v4147_v39 = vpop.eup %4146 }
 0x748   :  { %4152 = vrcp.f32 %v1772_v37  ;;  %v1778_v40 = vadd.f32 1.0, %v4147_v39  ;;  %v4149_v41 = vpop.eup %4148  ;;  %v1991_v37 = vld [vmem:[#allocation12 + $0x60] sm:$0xff]  ;;  %v1993_v39 = vld [vmem:[#allocation12 + $0x70] sm:$0xff] }
 0x749   :  { %v4151_v42 = vpop.eup %4150 }
 0x74a   :  { %4154 = vrcp.f32 %v1778_v40  ;;  %v1785_v46 = vadd.f32 1.0, %v4151_v42  ;;  %v1988_v40 = vld [vmem:[#allocation12 + $0x48] sm:$0xff]  ;;  %v1987_v42 = vld [vmem:[#allocation12 + $0x40] sm:$0xff] }
 0x74c   :  { %4156 = vrcp.f32 %v1785_v46  ;;  %v1983_v46 = vld [vmem:[#allocation12 + $0x20] sm:$0xff] }
 0x755   :  { %v4153_v43 = vpop.eup %4152 }
 0x756   :  { %v1790_v44 = vmul.f32 %v4153_v43, %v4149_v41  ;;  %v1990_v41 = vld [vmem:[#allocation12 + $0x58] sm:$0xff]  ;;  %v1989_v43 = vld [vmem:[#allocation12 + $0x50] sm:$0xff] }
 0x757   :  { %v4155_v45 = vpop.eup %4154 }
 0x758   :  { %v1789_v20 = vmul.f32 %v4155_v45, %v5584_v49  ;;  %v2028_v49 = vld [vmem:[#allocation12 + $0x188] sm:$0xff]  ;;  %v1986_v45 = vld [vmem:[#allocation12 + $0x38] sm:$0xff] }
 0x759   :  { %v4157_v10 = vpop.eup %4156 }
 0x75a   :  { %v5660_v26 = vadd.f32 %v1790_v44, %v1789_v20  ;;  %v1984_v44 = vld [vmem:[#allocation12 + $0x28] sm:$0xff]  ;;  %v1985_v20 = vld [vmem:[#allocation12 + $0x30] sm:$0xff] }
 0x75c   :  { %4158 = vtanh.f32 %v5660_v26 }
 0x769   :  { %v4159_v13 = vpop.eup %4158 }
 0x76a   :  { %v5663_v23 = vmul.f32 %v4159_v13, %v4157_v10  ;;  %v1980_v10 = vld [vmem:[#allocation12 + $0x8] sm:$0xff]  ;;  %v1982_v13 = vld [vmem:[#allocation12 + $0x18] sm:$0xff] }
 0x76c   :  { %1869 = vmatmul.mubr.f32.vlgmr.msra.gmra.mxu0 %v5663_v23  ;;  %1940 = vmatmul.mubr.f32.vlgmr.msra.gmra.mxu1 %v5663_v23 }
 0x76d   :  { %2138 = vmatpush1.msra.mxu0 %v2039_v9  ;;  %2251 = vmatpush1.msra.mxu1 %v2041_v14  ;;  %v1979_v9 = vld [vmem:[#allocation12] sm:$0xff]  ;;  %v1981_v14 = vld [vmem:[#allocation12 + $0x10] sm:$0xff] }
 0x76e   :  { %2139 = vmatprep.subr.mxu0 %v2036_v5  ;;  %2252 = vmatprep.subr.mxu1 %v2038_v12  ;;  %v7074_v5 = vld [vmem:[#allocation74_spill] sm:$0xff]  ;;  %v7075_v12 = vld [vmem:[#allocation25_spill] sm:$0xff] }
 0x76f   :  { %2140 = vmatpush1.msra.mxu0 %v2035_v6  ;;  %2253 = vmatpush1.msra.mxu1 %v2037_v8  ;;  %v7076_v6 = vld [vmem:[#allocation28_spill] sm:$0xff] }
 0x770   :  { %2141 = vmatprep.subr.mxu0 %v2032_v53  ;;  %2254 = vmatprep.subr.mxu1 %v2034_v7  ;;  %v7077_v8 = vld [vmem:[#allocation48_spill] sm:$0xff]  ;;  %v5697_v7 = vld [vmem:[#allocation14 + $0x1e8] sm:$0xff] }
 0x771   :  { %2142 = vmatpush1.msra.mxu0 %v2031_v54  ;;  %2255 = vmatpush1.msra.mxu1 %v2033_v25  ;;  %v7078_v53 = vld [vmem:[#allocation44_spill] sm:$0xff]  ;;  %7079 = vst [vmem:[#allocation45_spill] sm:$0xff] %v5697_v7  ;;  %v5699_v54 = vld [vmem:[#allocation14 + $0x1f8] sm:$0xff] }
 0x772   :  { %2143 = vmatprep.subr.mxu0 %v2028_v49  ;;  %2256 = vmatprep.subr.mxu1 %v2030_v50  ;;  %7080 = vst [vmem:[#allocation50_spill] sm:$0xff] %v5699_v54  ;;  %v5705_v25 = vld [vmem:[#allocation14 + $0x1f0] sm:$0xff]  ;;  %v5711_v49 = vld [vmem:[#allocation14 + $0x1d8] sm:$0xff]  ;;  %v5715_v50 = vld [vmem:[#allocation14 + $0x1c0] sm:$0xff] }
 0x773   :  { %2144 = vmatpush1.msra.mxu0 %v2027_v48  ;;  %2257 = vmatpush1.msra.mxu1 %v2029_v61  ;;  %v5717_v48 = vld [vmem:[#allocation14 + $0x1d0] sm:$0xff]  ;;  %v5721_v61 = vld [vmem:[#allocation14 + $0x1a8] sm:$0xff] }
 0x774   :  { %2145 = vmatprep.subr.mxu0 %v2024_v52  ;;  %2258 = vmatprep.subr.mxu1 %v2026_v29  ;;  %v5723_v52 = vld [vmem:[#allocation14 + $0x1b8] sm:$0xff]  ;;  %v5727_v29 = vld [vmem:[#allocation14 + $0x1a0] sm:$0xff] }
 0x775   :  { %2146 = vmatpush1.msra.mxu0 %v2023_v0  ;;  %2259 = vmatpush1.msra.mxu1 %v2025_v38  ;;  %v5729_v0 = vld [vmem:[#allocation14 + $0x1b0] sm:$0xff]  ;;  %v5733_v38 = vld [vmem:[#allocation14 + $0x188] sm:$0xff] }
 0x776   :  { %2147 = vmatprep.subr.mxu0 %v2020_v59  ;;  %2260 = vmatprep.subr.mxu1 %v2022_v57  ;;  %v5735_v59 = vld [vmem:[#allocation14 + $0x198] sm:$0xff]  ;;  %v5739_v57 = vld [vmem:[#allocation14 + $0x180] sm:$0xff] }
 0x777   :  { %2148 = vmatpush1.msra.mxu0 %v2019_v56  ;;  %2261 = vmatpush1.msra.mxu1 %v2021_v55  ;;  %v5741_v56 = vld [vmem:[#allocation14 + $0x190] sm:$0xff]  ;;  %v5745_v55 = vld [vmem:[#allocation14 + $0x168] sm:$0xff] }
 0x778   :  { %2149 = vmatprep.subr.mxu0 %v2016_v3  ;;  %2262 = vmatprep.subr.mxu1 %v2018_v2  ;;  %v5747_v3 = vld [vmem:[#allocation14 + $0x178] sm:$0xff]  ;;  %v5751_v2 = vld [vmem:[#allocation14 + $0x160] sm:$0xff] }
 0x779   :  { %2150 = vmatpush1.msra.mxu0 %v2015_v60  ;;  %2263 = vmatpush1.msra.mxu1 %v2017_v58  ;;  %v5753_v60 = vld [vmem:[#allocation14 + $0x170] sm:$0xff]  ;;  %v5757_v58 = vld [vmem:[#allocation14 + $0x148] sm:$0xff] }
 0x77a   :  { %2151 = vmatprep.subr.mxu0 %v2012_v11  ;;  %2264 = vmatprep.subr.mxu1 %v2014_v47  ;;  %v5759_v11 = vld [vmem:[#allocation14 + $0x158] sm:$0xff]  ;;  %v5763_v47 = vld [vmem:[#allocation14 + $0x140] sm:$0xff] }
 0x77b   :  { %2152 = vmatpush1.msra.mxu0 %v2011_v27  ;;  %2265 = vmatpush1.msra.mxu1 %v2013_v28  ;;  %v5765_v27 = vld [vmem:[#allocation14 + $0x150] sm:$0xff]  ;;  %v5769_v28 = vld [vmem:[#allocation14 + $0x128] sm:$0xff] }
 0x77c   :  { %2153 = vmatprep.subr.mxu0 %v2008_v31  ;;  %2266 = vmatprep.subr.mxu1 %v2010_v4  ;;  %v5771_v31 = vld [vmem:[#allocation14 + $0x138] sm:$0xff]  ;;  %v5775_v4 = vld [vmem:[#allocation14 + $0x120] sm:$0xff] }
 0x77d   :  { %2154 = vmatpush1.msra.mxu0 %v2007_v63  ;;  %2267 = vmatpush1.msra.mxu1 %v2009_v51  ;;  %v5777_v63 = vld [vmem:[#allocation14 + $0x130] sm:$0xff]  ;;  %v5781_v51 = vld [vmem:[#allocation14 + $0x108] sm:$0xff] }
 0x77e   :  { %2155 = vmatprep.subr.mxu0 %v2004_v15  ;;  %2268 = vmatprep.subr.mxu1 %v2006_v16  ;;  %v5783_v15 = vld [vmem:[#allocation14 + $0x118] sm:$0xff]  ;;  %v5787_v16 = vld [vmem:[#allocation14 + $0x100] sm:$0xff] }
 0x77f   :  { %2156 = vmatpush1.msra.mxu0 %v2003_v17  ;;  %2269 = vmatpush1.msra.mxu1 %v2005_v18  ;;  %v5789_v17 = vld [vmem:[#allocation14 + $0x110] sm:$0xff]  ;;  %v5793_v18 = vld [vmem:[#allocation14 + $0xe8] sm:$0xff] }
 0x780   :  { %2157 = vmatprep.subr.mxu0 %v2000_v19  ;;  %2270 = vmatprep.subr.mxu1 %v2002_v21  ;;  %v5795_v19 = vld [vmem:[#allocation14 + $0xf8] sm:$0xff]  ;;  %v5799_v21 = vld [vmem:[#allocation14 + $0xe0] sm:$0xff] }
 0x781   :  { %2158 = vmatpush1.msra.mxu0 %v1999_v22  ;;  %2271 = vmatpush1.msra.mxu1 %v2001_v24  ;;  %v5801_v22 = vld [vmem:[#allocation14 + $0xf0] sm:$0xff]  ;;  %v5805_v24 = vld [vmem:[#allocation14 + $0xc8] sm:$0xff] }
 0x782   :  { %2159 = vmatprep.subr.mxu0 %v1996_v1  ;;  %2272 = vmatprep.subr.mxu1 %v1998_v32  ;;  %v5807_v1 = vld [vmem:[#allocation14 + $0xd8] sm:$0xff]  ;;  %v5811_v32 = vld [vmem:[#allocation14 + $0xc0] sm:$0xff] }
 0x783   :  { %2160 = vmatpush1.msra.mxu0 %v1995_v33  ;;  %2273 = vmatpush1.msra.mxu1 %v1997_v34  ;;  %v5813_v33 = vld [vmem:[#allocation14 + $0xd0] sm:$0xff]  ;;  %v5817_v34 = vld [vmem:[#allocation14 + $0xa8] sm:$0xff] }
 0x784   :  { %2161 = vmatprep.subr.mxu0 %v1992_v35  ;;  %2274 = vmatprep.subr.mxu1 %v1994_v36  ;;  %v5819_v35 = vld [vmem:[#allocation14 + $0xb8] sm:$0xff]  ;;  %v5823_v36 = vld [vmem:[#allocation14 + $0xa0] sm:$0xff] }
 0x785   :  { %2162 = vmatpush1.msra.mxu0 %v1991_v37  ;;  %2275 = vmatpush1.msra.mxu1 %v1993_v39  ;;  %v5825_v37 = vld [vmem:[#allocation14 + $0xb0] sm:$0xff]  ;;  %v5829_v39 = vld [vmem:[#allocation14 + $0x88] sm:$0xff] }
 0x786   :  { %2163 = vmatprep.subr.mxu0 %v1988_v40  ;;  %2276 = vmatprep.subr.mxu1 %v1990_v41  ;;  %7081 = vst [vmem:[#allocation52_spill] sm:$0xff] %v5825_v37  ;;  %7082 = vst [vmem:[#allocation53_spill] sm:$0xff] %v5829_v39  ;;  %v5831_v40 = vld [vmem:[#allocation14 + $0x98] sm:$0xff]  ;;  %v5835_v41 = vld [vmem:[#allocation14 + $0x80] sm:$0xff] }
 0x787   :  { %2164 = vmatpush1.msra.mxu0 %v1987_v42  ;;  %2277 = vmatpush1.msra.mxu1 %v1989_v43  ;;  %7083 = vst [vmem:[#allocation51_spill] sm:$0xff] %v5831_v40  ;;  %7084 = vst [vmem:[#allocation54_spill] sm:$0xff] %v5835_v41  ;;  %v5837_v42 = vld [vmem:[#allocation14 + $0x90] sm:$0xff]  ;;  %v5841_v43 = vld [vmem:[#allocation14 + $0x68] sm:$0xff] }
 0x788   :  { %2165 = vmatprep.subr.mxu0 %v1984_v44  ;;  %2278 = vmatprep.subr.mxu1 %v1986_v45  ;;  %7085 = vst [vmem:[#allocation56_spill] sm:$0xff] %v5837_v42  ;;  %7086 = vst [vmem:[#allocation57_spill] sm:$0xff] %v5841_v43  ;;  %v5843_v44 = vld [vmem:[#allocation14 + $0x78] sm:$0xff]  ;;  %v5847_v45 = vld [vmem:[#allocation14 + $0x60] sm:$0xff] }
 0x789   :  { %2166 = vmatpush1.msra.mxu0 %v1983_v46  ;;  %2279 = vmatpush1.msra.mxu1 %v1985_v20  ;;  %7087 = vst [vmem:[#allocation55_spill] sm:$0xff] %v5843_v44  ;;  %7088 = vst [vmem:[#allocation23_spill] sm:$0xff] %v5847_v45  ;;  %v5849_v46 = vld [vmem:[#allocation14 + $0x70] sm:$0xff]  ;;  %v5853_v20 = vld [vmem:[#allocation14 + $0x48] sm:$0xff] }
 0x78a   :  { %2167 = vmatprep.subr.mxu0 %v1980_v10  ;;  %2280 = vmatprep.subr.mxu1 %v1982_v13  ;;  %7089 = vst [vmem:[#allocation24_spill] sm:$0xff] %v5849_v46  ;;  %7090 = vst [vmem:[#allocation58_spill] sm:$0xff] %v5853_v20  ;;  %v5855_v10 = vld [vmem:[#allocation14 + $0x58] sm:$0xff]  ;;  %v5859_v13 = vld [vmem:[#allocation14 + $0x40] sm:$0xff] }
 0x78b   :  { %2168 = vmatpush1.msra.mxu0 %v1979_v9  ;;  %2201 = vmatprep.mubr.f32.mxu0 %v7069_v30  ;;  %7091 = vst [vmem:[#allocation60_spill] sm:$0xff] %v5855_v10  ;;  %7092 = vst [vmem:[#allocation61_spill] sm:$0xff] %v5859_v13  ;;  %v5861_v9 = vld [vmem:[#allocation14 + $0x50] sm:$0xff] }
 0x78c   :  { %2281 = vmatpush1.msra.mxu1 %v1981_v14  ;;  %2314 = vmatprep.mubr.f32.mxu1 %v7069_v30  ;;  %7093 = vst [vmem:[#allocation59_spill] sm:$0xff] %v5861_v9  ;;  %v5865_v14 = vld [vmem:[#allocation14 + $0x28] sm:$0xff] }
 0x78d   :  { %2202 = vmatmul.mubr.f32.vlgmr.msra.gmra.mxu0 %v7074_v5  ;;  %2315 = vmatmul.mubr.f32.vlgmr.msra.gmra.mxu1 %v7074_v5  ;;  %7094 = vst [vmem:[#allocation26_spill] sm:$0xff] %v5865_v14  ;;  %v5867_v5 = vld [vmem:[#allocation14 + $0x38] sm:$0xff] }
 0x78e   :  { %2207 = vmatprep.mubr.f32.mxu0 %v7069_v30  ;;  %2320 = vmatprep.mubr.f32.mxu1 %v7069_v30  ;;  %7095 = vst [vmem:[#allocation27_spill] sm:$0xff] %v5867_v5 }
 0x78f   :  { %2402 = vmatprep.subr.mxu0 %v5697_v7  ;;  %2473 = vmatprep.subr.mxu1 %v5699_v54 }
 0x790   :  { %2474 = vmatpush1.msra.mxu1 %v5705_v25 }
 0x791   :  { %2208 = vmatmul.mubr.f32.gmra.mxu0 %v7075_v12  ;;  %2321 = vmatmul.mubr.f32.gmra.mxu1 %v7075_v12  ;;  %v5871_v12 = vld [vmem:[#allocation14 + $0x20] sm:$0xff] }
 0x792   :  { %2213 = vmatprep.mubr.f32.mxu0 %v7069_v30  ;;  %2326 = vmatprep.mubr.f32.mxu1 %v7069_v30  ;;  %7096 = vst [vmem:[#allocation62_spill] sm:$0xff] %v5871_v12 }
 0x793   :  { %2475 = vmatprep.subr.mxu1 %v5711_v49 }
 0x794   :  { %2476 = vmatpush1.msra.mxu1 %v5717_v48 }
 0x795   :  { %2214 = vmatmul.mubr.f32.gmra.mxu0 %v7076_v6  ;;  %2327 = vmatmul.mubr.f32.gmra.mxu1 %v7076_v6  ;;  %v5873_v6 = vld [vmem:[#allocation14 + $0x30] sm:$0xff] }
 0x796   :  { %2219 = vmatprep.mubr.f32.mxu0 %v7069_v30  ;;  %2332 = vmatprep.mubr.f32.mxu1 %v7069_v30  ;;  %7097 = vst [vmem:[#allocation64_spill] sm:$0xff] %v5873_v6 }
 0x797   :  { %2477 = vmatprep.subr.mxu1 %v5723_v52 }
 0x798   :  { %2478 = vmatpush1.msra.mxu1 %v5729_v0 }
 0x799   :  { %2220 = vmatmul.mubr.f32.gmra.mxu0 %v7077_v8  ;;  %2333 = vmatmul.mubr.f32.gmra.mxu1 %v7077_v8  ;;  %v5877_v8 = vld [vmem:[#allocation14 + $0x8] sm:$0xff] }
 0x79a   :  { %2225 = vmatprep.mubr.f32.mxu0 %v7069_v30  ;;  %2338 = vmatprep.mubr.f32.mxu1 %v7069_v30  ;;  %7098 = vst [vmem:[#allocation65_spill] sm:$0xff] %v5877_v8 }
 0x79b   :  { %2479 = vmatprep.subr.mxu1 %v5735_v59 }
 0x79c   :  { %2480 = vmatpush1.msra.mxu1 %v5741_v56 }
 0x79d   :  { %2226 = vmatmul.mubr.f32.gmra.mxu0 %v7078_v53  ;;  %2339 = vmatmul.mubr.f32.gmra.mxu1 %v7078_v53  ;;  %v5879_v53 = vld [vmem:[#allocation14 + $0x18] sm:$0xff] }
 0x79e   :  { %2231 = vmatprep.mubr.f32.mxu0 %v7069_v30  ;;  %2344 = vmatprep.mubr.f32.mxu1 %v7069_v30  ;;  %7099 = vst [vmem:[#allocation63_spill] sm:$0xff] %v5879_v53 }
 0x79f   :  { %2481 = vmatprep.subr.mxu1 %v5747_v3 }
 0x7a0   :  { %2482 = vmatpush1.msra.mxu1 %v5753_v60 }
 0x7a1   :  { %2232 = vmatmul.mubr.f32.gmra.mxu0 %v5587_v62  ;;  %2345 = vmatmul.mubr.f32.gmra.mxu1 %v5587_v62  ;;  %v5703_v62 = vld [vmem:[#allocation14 + $0x1e0] sm:$0xff] }
 0x7a2   :  { %2237 = vmatprep.mubr.f32.mxu0 %v7069_v30  ;;  %2350 = vmatprep.mubr.f32.mxu1 %v7069_v30 }
 0x7a3   :  { %2403 = vmatpush1.msra.mxu0 %v5703_v62  ;;  %2483 = vmatprep.subr.mxu1 %v5759_v11 }
 0x7a4   :  { %2484 = vmatpush1.msra.mxu1 %v5765_v27 }
 0x7a5   :  { %2238 = vmatmul.mubr.f32.gmra.mxu0 %v5663_v23  ;;  %2351 = vmatmul.mubr.f32.gmra.mxu1 %v5663_v23  ;;  %v5709_v23 = vld [vmem:[#allocation14 + $0x1c8] sm:$0xff] }
 0x7a6   :  { %2243 = vmatprep.mubr.f32.mxu0 %v7069_v30  ;;  %2356 = vmatprep.mubr.f32.mxu1 %v7069_v30 }
 0x7a7   :  { %2404 = vmatprep.subr.mxu0 %v5709_v23  ;;  %2485 = vmatprep.subr.mxu1 %v5771_v31 }
 0x7a8   :  { %2405 = vmatpush1.msra.mxu0 %v5715_v50  ;;  %2486 = vmatpush1.msra.mxu1 %v5777_v63 }
 0x7a9   :  { %2406 = vmatprep.subr.mxu0 %v5721_v61  ;;  %2487 = vmatprep.subr.mxu1 %v5783_v15 }
 0x7aa   :  { %2407 = vmatpush1.msra.mxu0 %v5727_v29  ;;  %2488 = vmatpush1.msra.mxu1 %v5789_v17 }
 0x7ab   :  { %2408 = vmatprep.subr.mxu0 %v5733_v38  ;;  %2489 = vmatprep.subr.mxu1 %v5795_v19 }
 0x7ac   :  { %2409 = vmatpush1.msra.mxu0 %v5739_v57  ;;  %2490 = vmatpush1.msra.mxu1 %v5801_v22 }
 0x7ad   :  { %2410 = vmatprep.subr.mxu0 %v5745_v55  ;;  %2491 = vmatprep.subr.mxu1 %v5807_v1 }
 0x7ae   :  { %2411 = vmatpush1.msra.mxu0 %v5751_v2  ;;  %2492 = vmatpush1.msra.mxu1 %v5813_v33 }
 0x7af   :  { %2412 = vmatprep.subr.mxu0 %v5757_v58  ;;  %2493 = vmatprep.subr.mxu1 %v5819_v35 }
 0x7b0   :  { %2413 = vmatpush1.msra.mxu0 %v5763_v47  ;;  %2494 = vmatpush1.msra.mxu1 %v5825_v37 }
 0x7b1   :  { %2414 = vmatprep.subr.mxu0 %v5769_v28  ;;  %2495 = vmatprep.subr.mxu1 %v5831_v40 }
 0x7b2   :  { %2415 = vmatpush1.msra.mxu0 %v5775_v4  ;;  %2496 = vmatpush1.msra.mxu1 %v5837_v42 }
 0x7b3   :  { %2416 = vmatprep.subr.mxu0 %v5781_v51  ;;  %2497 = vmatprep.subr.mxu1 %v5843_v44  ;;  %v7104_v44 = vld [vmem:[#allocation73_spill] sm:$0xff] }
 0x7b4   :  { %2417 = vmatpush1.msra.mxu0 %v5787_v16  ;;  %2498 = vmatpush1.msra.mxu1 %v5849_v46 }
 0x7b5   :  { %2418 = vmatprep.subr.mxu0 %v5793_v18  ;;  %2499 = vmatprep.subr.mxu1 %v5855_v10 }
 0x7b6   :  { %2419 = vmatpush1.msra.mxu0 %v5799_v21  ;;  %2500 = vmatpush1.msra.mxu1 %v5861_v9  ;;  %v5881_v9 = vld [vmem:[#allocation14] sm:$0xff] }
 0x7b7   :  { %2420 = vmatprep.subr.mxu0 %v5805_v24  ;;  %2501 = vmatprep.subr.mxu1 %v5867_v5  ;;  %7100 = vst [vmem:[#allocation49_spill] sm:$0xff] %v5881_v9 }
 0x7b8   :  { %2421 = vmatpush1.msra.mxu0 %v5811_v32  ;;  %2502 = vmatpush1.msra.mxu1 %v5873_v6 }
 0x7b9   :  { %2422 = vmatprep.subr.mxu0 %v5817_v34  ;;  %2503 = vmatprep.subr.mxu1 %v5879_v53 }
 0x7ba   :  { %2423 = vmatpush1.msra.mxu0 %v5823_v36 }
 0x7bb   :  { %2424 = vmatprep.subr.mxu0 %v5829_v39 }
 0x7bc   :  { %2425 = vmatpush1.msra.mxu0 %v5835_v41 }
 0x7bd   :  { %2426 = vmatprep.subr.mxu0 %v5841_v43  ;;  %v7105_v43 = vld [vmem:[#allocation71_spill] sm:$0xff] }
 0x7be   :  { %2427 = vmatpush1.msra.mxu0 %v5847_v45 }
 0x7bf   :  { %2428 = vmatprep.subr.mxu0 %v5853_v20  ;;  %v7103_v20 = vld [vmem:[#allocation72_spill] sm:$0xff] }
 0x7c0   :  { %2429 = vmatpush1.msra.mxu0 %v5859_v13 }
 0x7c1   :  { %2430 = vmatprep.subr.mxu0 %v5865_v14  ;;  %v5885_v14 = vld [vmem:[#allocation14 + $0x10] sm:$0xff] }
 0x7c2   :  { %2431 = vmatpush1.msra.mxu0 %v5871_v12  ;;  %7101 = vst [vmem:[#allocation47_spill] sm:$0xff] %v5885_v14  ;;  %2504 = vmatpush1.msra.mxu1 %v5885_v14  ;;  %v7102_v12 = vld [vmem:[#allocation70_spill] sm:$0xff] }
 0x7c3   :  { %2432 = vmatprep.subr.mxu0 %v5877_v8  ;;  %2651 = vmatprep.subr.mxu1 %v5699_v54 }
 0x7c4   :  { %2433 = vmatpush1.msra.mxu0 %v5881_v9 }
 0x7c5   :  { %2580 = vmatprep.subr.mxu0 %v5697_v7 }
 0x82c   :  { %v1870_v6 = vpop.f32.mrf.mxu0  ;;  %v1941_v8 = vpop.f32.mrf.mxu1 }
 0x82d   :  { %v1946_v5 = vadd.f32 %v1870_v6, %v7102_v12  ;;  %v1948_v14 = vadd.f32 %v1941_v8, %v7105_v43  ;;  %v7112_v8 = vld [vmem:[#allocation58_spill] sm:$0xff] }
 0x82e   :  { %v1872_v13 = vpop.f32.mrf.mxu0  ;;  %v1943_v45 = vpop.f32.mrf.mxu1 }
 0x82f   :  { %v3955_v10 = vmul.f32 -1.442695, %v1946_v5  ;;  %v1947_v46 = vadd.f32 %v1872_v13, %v7103_v20  ;;  %v1949_v9 = vadd.f32 %v1943_v45, %v7104_v44 }
 0x831   :  { %4160 = vpow2.f32 %v3955_v10  ;;  %v3956_v53 = vmul.f32 -1.442695, %v1947_v46  ;;  %v3957_v42 = vmul.f32 -1.442695, %v1949_v9  ;;  %v7110_v9 = vld [vmem:[#allocation23_spill] sm:$0xff] }
 0x833   :  { %4162 = vpow2.f32 %v3956_v53 }
 0x834   :  { %4164 = vtanh.f32 %v1948_v14  ;;  %v7111_v14 = vld [vmem:[#allocation24_spill] sm:$0xff] }
 0x835   :  { %4166 = vpow2.f32 %v3957_v42  ;;  %v7109_v42 = vld [vmem:[#allocation55_spill] sm:$0xff] }
 0x83e   :  { %v4161_v7 = vpop.eup %4160 }
 0x83f   :  { %v1953_v41 = vadd.f32 1.0, %v4161_v7 }
 0x840   :  { %v4163_v54 = vpop.eup %4162 }
 0x841   :  { %4168 = vrcp.f32 %v1953_v41  ;;  %v1959_v12 = vadd.f32 1.0, %v4163_v54  ;;  %v4165_v5 = vpop.eup %4164  ;;  %v7107_v54 = vld [vmem:[#allocation56_spill] sm:$0xff]  ;;  %v7108_v41 = vld [vmem:[#allocation57_spill] sm:$0xff] }
 0x842   :  { %v4167_v20 = vpop.eup %4166 }
 0x843   :  { %4170 = vrcp.f32 %v1959_v12  ;;  %v1966_v6 = vadd.f32 1.0, %v4167_v20  ;;  %v7113_v12 = vld [vmem:[#allocation60_spill] sm:$0xff]  ;;  %v7115_v20 = vld [vmem:[#allocation59_spill] sm:$0xff] }
 0x845   :  { %4172 = vrcp.f32 %v1966_v6  ;;  %v7119_v6 = vld [vmem:[#allocation64_spill] sm:$0xff] }
 0x84e   :  { %v4169_v10 = vpop.eup %4168 }
 0x84f   :  { %v1971_v13 = vmul.f32 %v4169_v10, %v4165_v5  ;;  %v7114_v5 = vld [vmem:[#allocation61_spill] sm:$0xff]  ;;  %v7116_v10 = vld [vmem:[#allocation26_spill] sm:$0xff] }
 0x850   :  { %v4171_v46 = vpop.eup %4170 }
 0x851   :  { %v1970_v53 = vmul.f32 %v4171_v46, %v5660_v26  ;;  %v7106_v26 = vld [vmem:[#allocation54_spill] sm:$0xff] }
 0x852   :  { %v4173_v43 = vpop.eup %4172  ;;  %v7118_v46 = vld [vmem:[#allocation62_spill] sm:$0xff] }
 0x853   :  { %v1972_v44 = vadd.f32 %v1971_v13, %v1970_v53  ;;  %v7117_v13 = vld [vmem:[#allocation27_spill] sm:$0xff]  ;;  %v7120_v53 = vld [vmem:[#allocation65_spill] sm:$0xff] }
 0x855   :  { %4174 = vtanh.f32 %v1972_v44  ;;  %v7121_v44 = vld [vmem:[#allocation63_spill] sm:$0xff] }
 0x862   :  { %v4175_v45 = vpop.eup %4174 }
 0x863   :  { %v1974_v7 = vmul.f32 %v4175_v45, %v4173_v43  ;;  %v7122_v43 = vld [vmem:[#allocation49_spill] sm:$0xff]  ;;  %v7123_v45 = vld [vmem:[#allocation47_spill] sm:$0xff] }
 0x865   :  { %2244 = vmatmul.mubr.f32.gmra.mxu0 %v1974_v7  ;;  %2357 = vmatmul.mubr.f32.gmra.mxu1 %v1974_v7  ;;  %v7124_v7 = vld [vmem:[#allocation45_spill] sm:$0xff] }
 0x866   :  { %2466 = vmatprep.mubr.f32.mxu0 %v7069_v30  ;;  %2537 = vmatprep.mubr.f32.mxu1 %v7069_v30 }
 0x869   :  { %2467 = vmatmul.mubr.f32.vlgmr.msra.gmra.mxu0 %v7069_v30  ;;  %2538 = vmatmul.mubr.f32.vlgmr.msra.gmra.mxu1 %v7069_v30 }
 0x86a   :  { %2581 = vmatpush1.msra.mxu0 %v5703_v62  ;;  %2652 = vmatpush1.msra.mxu1 %v5705_v25 }
 0x86b   :  { %2582 = vmatprep.subr.mxu0 %v5709_v23  ;;  %2653 = vmatprep.subr.mxu1 %v5711_v49 }
 0x86c   :  { %2583 = vmatpush1.msra.mxu0 %v5715_v50  ;;  %2654 = vmatpush1.msra.mxu1 %v5717_v48 }
 0x86d   :  { %2584 = vmatprep.subr.mxu0 %v5721_v61  ;;  %2655 = vmatprep.subr.mxu1 %v5723_v52 }
 0x86e   :  { %2585 = vmatpush1.msra.mxu0 %v5727_v29  ;;  %2656 = vmatpush1.msra.mxu1 %v5729_v0 }
 0x86f   :  { %2586 = vmatprep.subr.mxu0 %v5733_v38  ;;  %2657 = vmatprep.subr.mxu1 %v5735_v59 }
 0x870   :  { %2587 = vmatpush1.msra.mxu0 %v5739_v57  ;;  %2658 = vmatpush1.msra.mxu1 %v5741_v56 }
 0x871   :  { %2588 = vmatprep.subr.mxu0 %v5745_v55  ;;  %2659 = vmatprep.subr.mxu1 %v5747_v3 }
 0x872   :  { %2589 = vmatpush1.msra.mxu0 %v5751_v2  ;;  %2660 = vmatpush1.msra.mxu1 %v5753_v60 }
 0x873   :  { %2590 = vmatprep.subr.mxu0 %v5757_v58  ;;  %2661 = vmatprep.subr.mxu1 %v5759_v11 }
 0x874   :  { %2591 = vmatpush1.msra.mxu0 %v5763_v47  ;;  %2662 = vmatpush1.msra.mxu1 %v5765_v27 }
 0x875   :  { %2592 = vmatprep.subr.mxu0 %v5769_v28  ;;  %2663 = vmatprep.subr.mxu1 %v5771_v31 }
 0x876   :  { %2593 = vmatpush1.msra.mxu0 %v5775_v4  ;;  %2664 = vmatpush1.msra.mxu1 %v5777_v63 }
 0x877   :  { %2594 = vmatprep.subr.mxu0 %v5781_v51  ;;  %2665 = vmatprep.subr.mxu1 %v5783_v15 }
 0x878   :  { %2595 = vmatpush1.msra.mxu0 %v5787_v16  ;;  %2666 = vmatpush1.msra.mxu1 %v5789_v17 }
 0x879   :  { %2596 = vmatprep.subr.mxu0 %v5793_v18  ;;  %2667 = vmatprep.subr.mxu1 %v5795_v19 }
 0x87a   :  { %2597 = vmatpush1.msra.mxu0 %v5799_v21  ;;  %2668 = vmatpush1.msra.mxu1 %v5801_v22 }
 0x87b   :  { %2598 = vmatprep.subr.mxu0 %v5805_v24  ;;  %2669 = vmatprep.subr.mxu1 %v5807_v1 }
 0x87c   :  { %2599 = vmatpush1.msra.mxu0 %v5811_v32  ;;  %2670 = vmatpush1.msra.mxu1 %v5813_v33 }
 0x87d   :  { %2600 = vmatprep.subr.mxu0 %v5817_v34  ;;  %2671 = vmatprep.subr.mxu1 %v5819_v35 }
 0x87e   :  { %2601 = vmatpush1.msra.mxu0 %v5823_v36  ;;  %2672 = vmatpush1.msra.mxu1 %v5825_v37 }
 0x87f   :  { %2602 = vmatprep.subr.mxu0 %v5829_v39  ;;  %2673 = vmatprep.subr.mxu1 %v5831_v40 }
 0x880   :  { %2603 = vmatpush1.msra.mxu0 %v7106_v26  ;;  %2674 = vmatpush1.msra.mxu1 %v7107_v54 }
 0x881   :  { %2604 = vmatprep.subr.mxu0 %v7108_v41  ;;  %2675 = vmatprep.subr.mxu1 %v7109_v42 }
 0x882   :  { %2605 = vmatpush1.msra.mxu0 %v7110_v9  ;;  %2676 = vmatpush1.msra.mxu1 %v7111_v14 }
 0x883   :  { %2606 = vmatprep.subr.mxu0 %v7112_v8  ;;  %2677 = vmatprep.subr.mxu1 %v7113_v12 }
 0x884   :  { %2607 = vmatpush1.msra.mxu0 %v7114_v5  ;;  %2678 = vmatpush1.msra.mxu1 %v7115_v20 }
 0x885   :  { %2608 = vmatprep.subr.mxu0 %v7116_v10  ;;  %2679 = vmatprep.subr.mxu1 %v7117_v13  ;;  %v7125_v10 = vld [vmem:[#allocation50_spill] sm:$0xff]  ;;  %v2203_v13 = vpop.f32.mrf.mxu0 }
 0x886   :  { %2609 = vmatpush1.msra.mxu0 %v7118_v46  ;;  %2680 = vmatpush1.msra.mxu1 %v7119_v6  ;;  %v2316_v46 = vpop.f32.mrf.mxu1 }
 0x887   :  { %2610 = vmatprep.subr.mxu0 %v7120_v53  ;;  %2681 = vmatprep.subr.mxu1 %v7121_v44  ;;  %v2205_v20 = vpop.f32.mrf.mxu0 }
 0x888   :  { %2611 = vmatpush1.msra.mxu0 %v7122_v43  ;;  %2644 = vmatprep.mubr.f32.mxu0 %v7069_v30  ;;  %v2318_v6 = vpop.f32.mrf.mxu1 }
 0x889   :  { %2682 = vmatpush1.msra.mxu1 %v7123_v45  ;;  %2715 = vmatprep.mubr.f32.mxu1 %v7069_v30  ;;  %v5966_v5 = vpop.f32.mrf.mxu0 }
 0x88a   :  { %2758 = vmatprep.subr.mxu0 %v7124_v7  ;;  %2829 = vmatprep.subr.mxu1 %v7125_v10  ;;  %7126 = vst [vmem:[#allocation29_spill] sm:$0xff] %v5966_v5  ;;  %v5968_v53 = vpop.f32.mrf.mxu1 }
 0x88b   :  { %7127 = vst [vmem:[#allocation30_spill] sm:$0xff] %v5968_v53  ;;  %v5970_v44 = vpop.f32.mrf.mxu0 }
 0x88c   :  { %7128 = vst [vmem:[#allocation31_spill] sm:$0xff] %v5970_v44  ;;  %v5972_v43 = vpop.f32.mrf.mxu1 }
 0x88d   :  { %7129 = vst [vmem:[#allocation32_spill] sm:$0xff] %v5972_v43  ;;  %v5974_v12 = vpop.f32.mrf.mxu0 }
 0x88e   :  { %7130 = vst [vmem:[#allocation33_spill] sm:$0xff] %v5974_v12  ;;  %v5976_v45 = vpop.f32.mrf.mxu1 }
 0x88f   :  { %7131 = vst [vmem:[#allocation34_spill] sm:$0xff] %v5976_v45  ;;  %v5978_v30 = vpop.f32.mrf.mxu0 }
 0x890   :  { %7132 = vst [vmem:[#allocation35_spill] sm:$0xff] %v5978_v30  ;;  %v5980_v7 = vpop.f32.mrf.mxu1 }
 0x891   :  { %7133 = vst [vmem:[#allocation36_spill] sm:$0xff] %v5980_v7  ;;  %v5982_v10 = vpop.f32.mrf.mxu0 }
 0x892   :  { %7134 = vst [vmem:[#allocation37_spill] sm:$0xff] %v5982_v10  ;;  %v5984_v8 = vpop.f32.mrf.mxu1 }
 0x893   :  { %7135 = vst [vmem:[#allocation38_spill] sm:$0xff] %v5984_v8  ;;  %v5986_v14 = vpop.f32.mrf.mxu0 }
 0x894   :  { %7136 = vst [vmem:[#allocation39_spill] sm:$0xff] %v5986_v14  ;;  %v5988_v5 = vpop.f32.mrf.mxu1 }
 0x895   :  { %7137 = vst [vmem:[#allocation40_spill] sm:$0xff] %v5988_v5  ;;  %v5990_v53 = vpop.f32.mrf.mxu0 }
 0x896   :  { %7138 = vst [vmem:[#allocation41_spill] sm:$0xff] %v5990_v53  ;;  %v5992_v44 = vpop.f32.mrf.mxu1 }
 0x897   :  { %7139 = vst [vmem:[#allocation42_spill] sm:$0xff] %v5992_v44  ;;  %v5994_v43 = vpop.f32.mrf.mxu0  ;;  %v2107_v44 = vld [vmem:[%s6680_s6] sm:$0xf] }
 0x898   :  { %7140 = vst [vmem:[#allocation43_spill] sm:$0xff] %v5994_v43  ;;  %v5996_v12 = vpop.f32.mrf.mxu1  ;;  %v7149_v43 = vld [vmem:[#allocation46_spill] sm:$0xff] }
 0x899   :  { %7141 = vst [vmem:[#allocation66_spill] sm:$0xff] %v5996_v12  ;;  %v5998_v45 = vpop.f32.mrf.mxu0  ;;  %v7150_v12 = vsub.s32 0, %v7149_v43 }
 0x89a   :  { %7142 = vst [vmem:[#allocation68_spill] sm:$0xff] %v5998_v45  ;;  %v6000_v30 = vpop.f32.mrf.mxu1 }
 0x89b   :  { %7143 = vst [vmem:[#allocation69_spill] sm:$0xff] %v6000_v30  ;;  %v6002_v7 = vpop.f32.mrf.mxu0  ;;  %v6017_v5 = vrot.slane %v2107_v44, %v7150_v12 }
 0x89c   :  { %7144 = vst [vmem:[#allocation67_spill] sm:$0xff] %v6002_v7  ;;  %v6004_v10 = vpop.f32.mrf.mxu1 }
 0x89d   :  { %7145 = vst [vmem:[#allocation74_spill] sm:$0xff] %v6004_v10  ;;  %v6006_v8 = vpop.f32.mrf.mxu0  ;;  %7151 = vst [vmem:[#allocation44_spill] sm:$0xff] %v6017_v5  ;;  %v7154_v10 = vsub.s32 1, %v7149_v43  ;;  %v2204_v9 = vadd.f32 %v2203_v13, %v6017_v5 }
 0x89e   :  { %7146 = vst [vmem:[#allocation25_spill] sm:$0xff] %v6006_v8  ;;  %v6008_v14 = vpop.f32.mrf.mxu1 }
 0x89f   :  { %7147 = vst [vmem:[#allocation28_spill] sm:$0xff] %v6008_v14  ;;  %v6013_v53 = vpop.f32.mrf.mxu0  ;;  %v6025_v7 = vrot.slane %v2107_v44, %v7154_v10  ;;  %v7158_v10 = vsub.s32 3, %v7149_v43 }
 0x8a0   :  { %7148 = vst [vmem:[#allocation48_spill] sm:$0xff] %v6013_v53  ;;  %v6019_v45 = vpop.f32.mrf.mxu1 }
 0x8a1   :  { %7152 = vst [vmem:[#allocation70_spill] sm:$0xff] %v6019_v45  ;;  %v2206_v53 = vadd.f32 %v2205_v20, %v6025_v7  ;;  %v6037_v39 = vrot.slane %v2107_v44, %v7158_v10 }
 0x8a3   :  { %7159 = vst [vmem:[#allocation75_spill] sm:$0xff] %v6037_v39  ;;  %v2319_v13 = vadd.f32 %v2318_v6, %v6037_v39 }
 0x925   :  { %v6021_v30 = vpop.f32.mrf.mxu0  ;;  %v6027_v8 = vpop.f32.mrf.mxu1 }
 0x926   :  { %7153 = vst [vmem:[#allocation72_spill] sm:$0xff] %v6021_v30  ;;  %7155 = vst [vmem:[#allocation73_spill] sm:$0xff] %v6027_v8 }
 0x927   :  { %v6029_v14 = vpop.f32.mrf.mxu0  ;;  %v6033_v41 = vpop.f32.mrf.mxu1 }
 0x928   :  { %7156 = vst [vmem:[#allocation71_spill] sm:$0xff] %v6029_v14  ;;  %7157 = vst [vmem:[#allocation46_spill] sm:$0xff] %v6033_v41  ;;  %v7160_v14 = vsub.s32 2, %v7149_v43 }
 0x929   :  { %v2468_v42 = vpop.f32.mrf.mxu0  ;;  %v2539_v30 = vpop.f32.mrf.mxu1 }
 0x92a   :  { %v2544_v12 = vadd.f32 %v2468_v42, %v2204_v9  ;;  %v6042_v20 = vrot.slane %v2107_v44, %v7160_v14 }
 0x92b   :  { %v2470_v54 = vpop.f32.mrf.mxu0  ;;  %v2541_v8 = vpop.f32.mrf.mxu1 }
 0x92c   :  { %v3958_v45 = vmul.f32 -1.442695, %v2544_v12  ;;  %v2545_v26 = vadd.f32 %v2470_v54, %v2206_v53  ;;  %v2547_v41 = vadd.f32 %v2541_v8, %v2319_v13  ;;  %v2317_v42 = vadd.f32 %v2316_v46, %v6042_v20  ;;  %v7162_v13 = vld [vmem:[#allocation51_spill] sm:$0xff] }
 0x92e   :  { %4176 = vpow2.f32 %v3958_v45  ;;  %v3959_v40 = vmul.f32 -1.442695, %v2545_v26  ;;  %v3960_v9 = vmul.f32 -1.442695, %v2547_v41  ;;  %v2546_v53 = vadd.f32 %v2539_v30, %v2317_v42  ;;  %v7163_v42 = vld [vmem:[#allocation54_spill] sm:$0xff] }
 0x930   :  { %4178 = vpow2.f32 %v3959_v40 }
 0x931   :  { %4180 = vpow2.f32 %v3960_v9  ;;  %v7164_v9 = vld [vmem:[#allocation56_spill] sm:$0xff] }
 0x93b   :  { %v4177_v54 = vpop.eup %4176 }
 0x93c   :  { %v2551_v45 = vadd.f32 1.0, %v4177_v54  ;;  %v7165_v54 = vld [vmem:[#allocation57_spill] sm:$0xff] }
 0x93d   :  { %v4179_v26 = vpop.eup %4178 }
 0x93e   :  { %4182 = vrcp.f32 %v2551_v45  ;;  %v2557_v12 = vadd.f32 1.0, %v4179_v26  ;;  %v4181_v40 = vpop.eup %4180  ;;  %v7167_v45 = vld [vmem:[#allocation23_spill] sm:$0xff]  ;;  %v7168_v26 = vld [vmem:[#allocation24_spill] sm:$0xff] }
 0x93f   :  { %4184 = vtanh.f32 %v2546_v53  ;;  %v2564_v43 = vadd.f32 1.0, %v4181_v40  ;;  %v7166_v53 = vld [vmem:[#allocation55_spill] sm:$0xff]  ;;  %v7170_v40 = vld [vmem:[#allocation60_spill] sm:$0xff] }
 0x940   :  { %4186 = vrcp.f32 %v2557_v12  ;;  %v7169_v12 = vld [vmem:[#allocation58_spill] sm:$0xff] }
 0x941   :  { %4188 = vrcp.f32 %v2564_v43  ;;  %v7173_v43 = vld [vmem:[#allocation26_spill] sm:$0xff] }
 0x94b   :  { %v4183_v10 = vpop.eup %4182 }
 0x94c   :  { %v4185_v6 = vpop.eup %4184 }
 0x94d   :  { %v4187_v39 = vpop.eup %4186  ;;  %v2569_v44 = vmul.f32 %v4185_v6, %v4183_v10  ;;  %v7171_v10 = vld [vmem:[#allocation61_spill] sm:$0xff]  ;;  %v7172_v6 = vld [vmem:[#allocation59_spill] sm:$0xff] }
 0x94e   :  { %v2568_v14 = vmul.f32 0.0, %v4187_v39  ;;  %v4189_v30 = vpop.eup %4188  ;;  %v7161_v39 = vld [vmem:[#allocation53_spill] sm:$0xff] }
 0x950   :  { %v6045_v8 = vadd.f32 %v2569_v44, %v2568_v14  ;;  %v7174_v14 = vld [vmem:[#allocation27_spill] sm:$0xff]  ;;  %v7175_v44 = vld [vmem:[#allocation62_spill] sm:$0xff] }
 0x952   :  { %4190 = vtanh.f32 %v6045_v8 }
 0x95f   :  { %v4191_v41 = vpop.eup %4190 }
 0x960   :  { %v2572_v46 = vmul.f32 %v4191_v41, %v4189_v30  ;;  %v7176_v30 = vld [vmem:[#allocation64_spill] sm:$0xff]  ;;  %v7177_v41 = vld [vmem:[#allocation65_spill] sm:$0xff] }
 0x962   :  { %2645 = vmatmul.mubr.f32.vlgmr.msra.gmra.mxu0 %v2572_v46  ;;  %2716 = vmatmul.mubr.f32.vlgmr.msra.gmra.mxu1 %v2572_v46  ;;  %v7178_v46 = vld [vmem:[#allocation63_spill] sm:$0xff] }
 0x963   :  { %2759 = vmatpush1.msra.mxu0 %v5703_v62  ;;  %2830 = vmatpush1.msra.mxu1 %v5705_v25 }
 0x964   :  { %2760 = vmatprep.subr.mxu0 %v5709_v23  ;;  %2831 = vmatprep.subr.mxu1 %v5711_v49 }
 0x965   :  { %2761 = vmatpush1.msra.mxu0 %v5715_v50  ;;  %2832 = vmatpush1.msra.mxu1 %v5717_v48 }
 0x966   :  { %2762 = vmatprep.subr.mxu0 %v5721_v61  ;;  %2833 = vmatprep.subr.mxu1 %v5723_v52 }
 0x967   :  { %2763 = vmatpush1.msra.mxu0 %v5727_v29  ;;  %2834 = vmatpush1.msra.mxu1 %v5729_v0 }
 0x968   :  { %2764 = vmatprep.subr.mxu0 %v5733_v38  ;;  %2835 = vmatprep.subr.mxu1 %v5735_v59 }
 0x969   :  { %2765 = vmatpush1.msra.mxu0 %v5739_v57  ;;  %2836 = vmatpush1.msra.mxu1 %v5741_v56 }
 0x96a   :  { %2766 = vmatprep.subr.mxu0 %v5745_v55  ;;  %2837 = vmatprep.subr.mxu1 %v5747_v3 }
 0x96b   :  { %2767 = vmatpush1.msra.mxu0 %v5751_v2  ;;  %2838 = vmatpush1.msra.mxu1 %v5753_v60 }
 0x96c   :  { %2768 = vmatprep.subr.mxu0 %v5757_v58  ;;  %2839 = vmatprep.subr.mxu1 %v5759_v11 }
 0x96d   :  { %2769 = vmatpush1.msra.mxu0 %v5763_v47  ;;  %2840 = vmatpush1.msra.mxu1 %v5765_v27 }
 0x96e   :  { %2770 = vmatprep.subr.mxu0 %v5769_v28  ;;  %2841 = vmatprep.subr.mxu1 %v5771_v31 }
 0x96f   :  { %2771 = vmatpush1.msra.mxu0 %v5775_v4  ;;  %2842 = vmatpush1.msra.mxu1 %v5777_v63 }
 0x970   :  { %2772 = vmatprep.subr.mxu0 %v5781_v51  ;;  %2843 = vmatprep.subr.mxu1 %v5783_v15 }
 0x971   :  { %2773 = vmatpush1.msra.mxu0 %v5787_v16  ;;  %2844 = vmatpush1.msra.mxu1 %v5789_v17 }
 0x972   :  { %2774 = vmatprep.subr.mxu0 %v5793_v18  ;;  %2845 = vmatprep.subr.mxu1 %v5795_v19 }
 0x973   :  { %2775 = vmatpush1.msra.mxu0 %v5799_v21  ;;  %2846 = vmatpush1.msra.mxu1 %v5801_v22 }
 0x974   :  { %2776 = vmatprep.subr.mxu0 %v5805_v24  ;;  %2847 = vmatprep.subr.mxu1 %v5807_v1 }
 0x975   :  { %2777 = vmatpush1.msra.mxu0 %v5811_v32  ;;  %2848 = vmatpush1.msra.mxu1 %v5813_v33 }
 0x976   :  { %2778 = vmatprep.subr.mxu0 %v5817_v34  ;;  %2849 = vmatprep.subr.mxu1 %v5819_v35 }
 0x977   :  { %2779 = vmatpush1.msra.mxu0 %v5823_v36  ;;  %2850 = vmatpush1.msra.mxu1 %v5825_v37 }
 0x978   :  { %2780 = vmatprep.subr.mxu0 %v7161_v39  ;;  %2851 = vmatprep.subr.mxu1 %v7162_v13  ;;  %v7188_v13 = vld [vmem:[#allocation30_spill] sm:$0xff] }
 0x979   :  { %2781 = vmatpush1.msra.mxu0 %v7163_v42  ;;  %2852 = vmatpush1.msra.mxu1 %v7164_v9  ;;  %v7186_v9 = vld [vmem:[#allocation75_spill] sm:$0xff] }
 0x97a   :  { %2782 = vmatprep.subr.mxu0 %v7165_v54  ;;  %2853 = vmatprep.subr.mxu1 %v7166_v53 }
 0x97b   :  { %2783 = vmatpush1.msra.mxu0 %v7167_v45  ;;  %2854 = vmatpush1.msra.mxu1 %v7168_v26  ;;  %v7179_v26 = vld [vmem:[#allocation49_spill] sm:$0xff] }
 0x97c   :  { %2784 = vmatprep.subr.mxu0 %v7169_v12  ;;  %2855 = vmatprep.subr.mxu1 %v7170_v40  ;;  %v7180_v12 = vmov 0.0   ;;  %v7181_v40 = vld [vmem:[#allocation47_spill] sm:$0xff] }
 0x97d   :  { %2785 = vmatpush1.msra.mxu0 %v7171_v10  ;;  %2856 = vmatpush1.msra.mxu1 %v7172_v6  ;;  %v7182_v6 = vld [vmem:[#allocation45_spill] sm:$0xff] }
 0x97e   :  { %2786 = vmatprep.subr.mxu0 %v7173_v43  ;;  %2857 = vmatprep.subr.mxu1 %v7174_v14  ;;  %v7183_v43 = vld [vmem:[#allocation50_spill] sm:$0xff] }
 0x97f   :  { %2787 = vmatpush1.msra.mxu0 %v7175_v44  ;;  %2858 = vmatpush1.msra.mxu1 %v7176_v30  ;;  %v7184_v44 = vld [vmem:[#allocation29_spill] sm:$0xff] }
 0x980   :  { %2788 = vmatprep.subr.mxu0 %v7177_v41  ;;  %2859 = vmatprep.subr.mxu1 %v7178_v46  ;;  %v2210_v14 = vadd.f32 %v7184_v44, %v6017_v5  ;;  %v7185_v41 = vld [vmem:[#allocation31_spill] sm:$0xff]  ;;  %v2323_v44 = vadd.f32 %v7188_v13, %v6042_v20 }
 0x981   :  { %2789 = vmatpush1.msra.mxu0 %v7179_v26  ;;  %2822 = vmatprep.mubr.f32.mxu0 %v7180_v12  ;;  %v2212_v10 = vadd.f32 %v7185_v41, %v6025_v7 }
 0x982   :  { %2860 = vmatpush1.msra.mxu1 %v7181_v40  ;;  %2893 = vmatprep.mubr.f32.mxu1 %v7180_v12 }
 0x983   :  { %2936 = vmatprep.subr.mxu0 %v7182_v6  ;;  %3007 = vmatprep.subr.mxu1 %v7183_v43  ;;  %v7187_v6 = vld [vmem:[#allocation32_spill] sm:$0xff] }
 0x984   :  { %v2325_v42 = vadd.f32 %v7187_v6, %v7186_v9 }
 0xa22   :  { %v2646_v30 = vpop.f32.mrf.mxu0  ;;  %v2717_v54 = vpop.f32.mrf.mxu1 }
 0xa23   :  { %v2722_v46 = vadd.f32 %v2646_v30, %v2210_v14  ;;  %v2724_v5 = vadd.f32 %v2717_v54, %v2323_v44  ;;  %v7201_v54 = vld [vmem:[#allocation59_spill] sm:$0xff]  ;;  %v7204_v44 = vld [vmem:[#allocation62_spill] sm:$0xff] }
 0xa24   :  { %v2648_v45 = vpop.f32.mrf.mxu0  ;;  %v2719_v12 = vpop.f32.mrf.mxu1 }
 0xa25   :  { %v3961_v26 = vmul.f32 -1.442695, %v2722_v46  ;;  %v2723_v53 = vadd.f32 %v2648_v45, %v2212_v10  ;;  %v2725_v43 = vadd.f32 %v2719_v12, %v2325_v42  ;;  %v7203_v46 = vld [vmem:[#allocation27_spill] sm:$0xff] }
 0xa27   :  { %4192 = vpow2.f32 %v3961_v26  ;;  %v3962_v40 = vmul.f32 -1.442695, %v2723_v53  ;;  %v3963_v39 = vmul.f32 -1.442695, %v2725_v43  ;;  %v7202_v43 = vld [vmem:[#allocation26_spill] sm:$0xff] }
 0xa29   :  { %4194 = vpow2.f32 %v3962_v40 }
 0xa2a   :  { %4196 = vtanh.f32 %v2724_v5 }
 0xa2b   :  { %4198 = vpow2.f32 %v3963_v39  ;;  %v7200_v39 = vld [vmem:[#allocation61_spill] sm:$0xff] }
 0xa34   :  { %v4193_v37 = vpop.eup %4192 }
 0xa35   :  { %v2729_v41 = vadd.f32 1.0, %v4193_v37 }
 0xa36   :  { %v4195_v14 = vpop.eup %4194 }
 0xa37   :  { %4200 = vrcp.f32 %v2729_v41  ;;  %v2735_v45 = vadd.f32 1.0, %v4195_v14  ;;  %v4197_v53 = vpop.eup %4196  ;;  %v7205_v41 = vld [vmem:[#allocation64_spill] sm:$0xff]  ;;  %v7206_v14 = vld [vmem:[#allocation65_spill] sm:$0xff] }
 0xa38   :  { %v4199_v26 = vpop.eup %4198 }
 0xa39   :  { %4202 = vrcp.f32 %v2735_v45  ;;  %v2742_v6 = vadd.f32 1.0, %v4199_v26  ;;  %v7207_v45 = vld [vmem:[#allocation63_spill] sm:$0xff]  ;;  %v7209_v26 = vmov 0.0  }
 0xa3b   :  { %4204 = vrcp.f32 %v2742_v6  ;;  %v7213_v6 = vld [vmem:[#allocation44_spill] sm:$0xff] }
 0xa44   :  { %v4201_v40 = vpop.eup %4200 }
 0xa45   :  { %v2747_v10 = vmul.f32 %v4201_v40, %v4197_v53  ;;  %v7208_v53 = vld [vmem:[#allocation49_spill] sm:$0xff]  ;;  %v7210_v40 = vld [vmem:[#allocation47_spill] sm:$0xff] }
 0xa46   :  { %v4203_v30 = vpop.eup %4202 }
 0xa47   :  { %v2746_v42 = vmul.f32 %v4203_v30, %v6045_v8  ;;  %v7199_v8 = vld [vmem:[#allocation60_spill] sm:$0xff]  ;;  %v7212_v30 = vld [vmem:[#allocation50_spill] sm:$0xff] }
 0xa48   :  { %v4205_v37 = vpop.eup %4204 }
 0xa49   :  { %v6123_v12 = vadd.f32 %v2747_v10, %v2746_v42  ;;  %v7211_v10 = vld [vmem:[#allocation45_spill] sm:$0xff] }
 0xa4a   :  { %v7214_v42 = vld [vmem:[#allocation33_spill] sm:$0xff] }
 0xa4b   :  { %4206 = vtanh.f32 %v6123_v12 }
 0xa58   :  { %v4207_v5 = vpop.eup %4206 }
 0xa59   :  { %v2750_v13 = vmul.f32 %v4207_v5, %v4205_v37  ;;  %v2216_v37 = vadd.f32 %v7214_v42, %v7213_v6 }
 0xa5b   :  { %2823 = vmatmul.mubr.f32.vlgmr.msra.gmra.mxu0 %v2750_v13  ;;  %2894 = vmatmul.mubr.f32.vlgmr.msra.gmra.mxu1 %v2750_v13  ;;  %v7215_v13 = vld [vmem:[#allocation35_spill] sm:$0xff] }
 0xa5c   :  { %2937 = vmatpush1.msra.mxu0 %v5703_v62  ;;  %3008 = vmatpush1.msra.mxu1 %v5705_v25  ;;  %v7189_v62 = vld [vmem:[#allocation52_spill] sm:$0xff]  ;;  %v7190_v25 = vld [vmem:[#allocation53_spill] sm:$0xff] }
 0xa5d   :  { %2938 = vmatprep.subr.mxu0 %v5709_v23  ;;  %3009 = vmatprep.subr.mxu1 %v5711_v49  ;;  %v7191_v23 = vld [vmem:[#allocation51_spill] sm:$0xff]  ;;  %v7192_v49 = vld [vmem:[#allocation54_spill] sm:$0xff] }
 0xa5e   :  { %2939 = vmatpush1.msra.mxu0 %v5715_v50  ;;  %3010 = vmatpush1.msra.mxu1 %v5717_v48  ;;  %v7193_v50 = vld [vmem:[#allocation56_spill] sm:$0xff]  ;;  %v7194_v48 = vld [vmem:[#allocation57_spill] sm:$0xff] }
 0xa5f   :  { %2940 = vmatprep.subr.mxu0 %v5721_v61  ;;  %3011 = vmatprep.subr.mxu1 %v5723_v52  ;;  %v7195_v61 = vld [vmem:[#allocation55_spill] sm:$0xff] }
 0xa60   :  { %2941 = vmatpush1.msra.mxu0 %v5727_v29  ;;  %3012 = vmatpush1.msra.mxu1 %v5729_v0  ;;  %v7196_v52 = vld [vmem:[#allocation23_spill] sm:$0xff]  ;;  %v7197_v29 = vld [vmem:[#allocation24_spill] sm:$0xff]  ;;  %v7198_v0 = vld [vmem:[#allocation58_spill] sm:$0xff] }
 0xa61   :  { %2942 = vmatprep.subr.mxu0 %v5733_v38  ;;  %3013 = vmatprep.subr.mxu1 %v5735_v59 }
 0xa62   :  { %2943 = vmatpush1.msra.mxu0 %v5739_v57  ;;  %3014 = vmatpush1.msra.mxu1 %v5741_v56 }
 0xa63   :  { %2944 = vmatprep.subr.mxu0 %v5745_v55  ;;  %3015 = vmatprep.subr.mxu1 %v5747_v3 }
 0xa64   :  { %2945 = vmatpush1.msra.mxu0 %v5751_v2  ;;  %3016 = vmatpush1.msra.mxu1 %v5753_v60 }
 0xa65   :  { %2946 = vmatprep.subr.mxu0 %v5757_v58  ;;  %3017 = vmatprep.subr.mxu1 %v5759_v11 }
 0xa66   :  { %2947 = vmatpush1.msra.mxu0 %v5763_v47  ;;  %3018 = vmatpush1.msra.mxu1 %v5765_v27 }
 0xa67   :  { %2948 = vmatprep.subr.mxu0 %v5769_v28  ;;  %3019 = vmatprep.subr.mxu1 %v5771_v31 }
 0xa68   :  { %2949 = vmatpush1.msra.mxu0 %v5775_v4  ;;  %3020 = vmatpush1.msra.mxu1 %v5777_v63 }
 0xa69   :  { %2950 = vmatprep.subr.mxu0 %v5781_v51  ;;  %3021 = vmatprep.subr.mxu1 %v5783_v15 }
 0xa6a   :  { %2951 = vmatpush1.msra.mxu0 %v5787_v16  ;;  %3022 = vmatpush1.msra.mxu1 %v5789_v17 }
 0xa6b   :  { %2952 = vmatprep.subr.mxu0 %v5793_v18  ;;  %3023 = vmatprep.subr.mxu1 %v5795_v19 }
 0xa6c   :  { %2953 = vmatpush1.msra.mxu0 %v5799_v21  ;;  %3024 = vmatpush1.msra.mxu1 %v5801_v22 }
 0xa6d   :  { %2954 = vmatprep.subr.mxu0 %v5805_v24  ;;  %3025 = vmatprep.subr.mxu1 %v5807_v1 }
 0xa6e   :  { %2955 = vmatpush1.msra.mxu0 %v5811_v32  ;;  %3026 = vmatpush1.msra.mxu1 %v5813_v33 }
 0xa6f   :  { %2956 = vmatprep.subr.mxu0 %v5817_v34  ;;  %3027 = vmatprep.subr.mxu1 %v5819_v35 }
 0xa70   :  { %2957 = vmatpush1.msra.mxu0 %v5823_v36  ;;  %3028 = vmatpush1.msra.mxu1 %v7189_v62 }
 0xa71   :  { %2958 = vmatprep.subr.mxu0 %v7190_v25  ;;  %3029 = vmatprep.subr.mxu1 %v7191_v23 }
 0xa72   :  { %2959 = vmatpush1.msra.mxu0 %v7192_v49  ;;  %3030 = vmatpush1.msra.mxu1 %v7193_v50 }
 0xa73   :  { %2960 = vmatprep.subr.mxu0 %v7194_v48  ;;  %3031 = vmatprep.subr.mxu1 %v7195_v61 }
 0xa74   :  { %2961 = vmatpush1.msra.mxu0 %v7196_v52  ;;  %3032 = vmatpush1.msra.mxu1 %v7197_v29 }
 0xa75   :  { %2962 = vmatprep.subr.mxu0 %v7198_v0  ;;  %3033 = vmatprep.subr.mxu1 %v7199_v8 }
 0xa76   :  { %2963 = vmatpush1.msra.mxu0 %v7200_v39  ;;  %3034 = vmatpush1.msra.mxu1 %v7201_v54  ;;  %v7217_v54 = vld [vmem:[#allocation34_spill] sm:$0xff] }
 0xa77   :  { %2964 = vmatprep.subr.mxu0 %v7202_v43  ;;  %3035 = vmatprep.subr.mxu1 %v7203_v46  ;;  %v2329_v42 = vadd.f32 %v7217_v54, %v6042_v20 }
 0xa78   :  { %2965 = vmatpush1.msra.mxu0 %v7204_v44  ;;  %3036 = vmatpush1.msra.mxu1 %v7205_v41 }
 0xa79   :  { %2966 = vmatprep.subr.mxu0 %v7206_v14  ;;  %3037 = vmatprep.subr.mxu1 %v7207_v45  ;;  %v2218_v14 = vadd.f32 %v7215_v13, %v6025_v7 }
 0xa7a   :  { %2967 = vmatpush1.msra.mxu0 %v7208_v53  ;;  %3000 = vmatprep.mubr.f32.mxu0 %v7209_v26 }
 0xa7b   :  { %3038 = vmatpush1.msra.mxu1 %v7210_v40  ;;  %3071 = vmatprep.mubr.f32.mxu1 %v7209_v26 }
 0xa7c   :  { %3114 = vmatprep.subr.mxu0 %v7211_v10  ;;  %3185 = vmatprep.subr.mxu1 %v7212_v30  ;;  %v7216_v10 = vld [vmem:[#allocation36_spill] sm:$0xff] }
 0xa7d   :  { %v2331_v43 = vadd.f32 %v7216_v10, %v7186_v9  ;;  %v6210_v10 = vld [vmem:[#allocation14 + $0x1c8] sm:$0xff] }
 0xb1b   :  { %v2824_v5 = vpop.f32.mrf.mxu0  ;;  %v2895_v46 = vpop.f32.mrf.mxu1 }
 0xb1c   :  { %v2900_v45 = vadd.f32 %v2824_v5, %v2216_v37  ;;  %v2902_v6 = vadd.f32 %v2895_v46, %v2329_v42  ;;  %v6219_v42 = vld [vmem:[#allocation14 + $0x1d0] sm:$0xff] }
 0xb1d   :  { %v2826_v41 = vpop.f32.mrf.mxu0  ;;  %v2897_v26 = vpop.f32.mrf.mxu1 }
 0xb1e   :  { %v3964_v53 = vmul.f32 -1.442695, %v2900_v45  ;;  %v2901_v44 = vadd.f32 %v2826_v41, %v2218_v14  ;;  %v2903_v30 = vadd.f32 %v2897_v26, %v2331_v43 }
 0xb20   :  { %4208 = vpow2.f32 %v3964_v53  ;;  %v3965_v40 = vmul.f32 -1.442695, %v2901_v44  ;;  %v3966_v39 = vmul.f32 -1.442695, %v2903_v30  ;;  %v6216_v30 = vld [vmem:[#allocation14 + $0x1c0] sm:$0xff] }
 0xb22   :  { %4210 = vpow2.f32 %v3965_v40 }
 0xb23   :  { %4212 = vtanh.f32 %v2902_v6  ;;  %v6207_v6 = vld [vmem:[#allocation14 + $0x1f0] sm:$0xff] }
 0xb24   :  { %4214 = vpow2.f32 %v3966_v39  ;;  %v6204_v39 = vld [vmem:[#allocation14 + $0x1e0] sm:$0xff] }
 0xb2d   :  { %v4209_v8 = vpop.eup %4208 }
 0xb2e   :  { %v2907_v13 = vadd.f32 1.0, %v4209_v8 }
 0xb2f   :  { %v4211_v37 = vpop.eup %4210 }
 0xb30   :  { %4216 = vrcp.f32 %v2907_v13  ;;  %v2913_v41 = vadd.f32 1.0, %v4211_v37  ;;  %v4213_v44 = vpop.eup %4212  ;;  %v6222_v13 = vld [vmem:[#allocation14 + $0x1a8] sm:$0xff]  ;;  %v6225_v37 = vld [vmem:[#allocation14 + $0x1b8] sm:$0xff] }
 0xb31   :  { %v4215_v14 = vpop.eup %4214 }
 0xb32   :  { %4218 = vrcp.f32 %v2913_v41  ;;  %v2920_v5 = vadd.f32 1.0, %v4215_v14  ;;  %v6228_v41 = vld [vmem:[#allocation14 + $0x1a0] sm:$0xff] }
 0xb34   :  { %4220 = vrcp.f32 %v2920_v5 }
 0xb3d   :  { %v4217_v45 = vpop.eup %4216 }
 0xb3e   :  { %v2925_v53 = vmul.f32 %v4217_v45, %v4213_v44  ;;  %v6231_v44 = vld [vmem:[#allocation14 + $0x1b0] sm:$0xff] }
 0xb3f   :  { %v4219_v40 = vpop.eup %4218 }
 0xb40   :  { %v2924_v43 = vmul.f32 %v4219_v40, %v6123_v12  ;;  %v6213_v12 = vld [vmem:[#allocation14 + $0x1d8] sm:$0xff] }
 0xb41   :  { %v4221_v8 = vpop.eup %4220 }
 0xb42   :  { %v6201_v26 = vadd.f32 %v2925_v53, %v2924_v43 }
 0xb44   :  { %4222 = vtanh.f32 %v6201_v26 }
 0xb51   :  { %v4223_v54 = vpop.eup %4222 }
 0xb52   :  { %v2928_v46 = vmul.f32 %v4223_v54, %v4221_v8 }
 0xb54   :  { %3001 = vmatmul.mubr.f32.vlgmr.msra.gmra.mxu0 %v2928_v46  ;;  %3072 = vmatmul.mubr.f32.vlgmr.msra.gmra.mxu1 %v2928_v46  ;;  %v6319_v46 = vld [vmem:[#allocation14 + $0x198] sm:$0xff] }
 0xb55   :  { %3115 = vmatpush1.msra.mxu0 %v6204_v39  ;;  %3186 = vmatpush1.msra.mxu1 %v6207_v6 }
 0xb56   :  { %3116 = vmatprep.subr.mxu0 %v6210_v10  ;;  %3187 = vmatprep.subr.mxu1 %v6213_v12 }
 0xb57   :  { %3117 = vmatpush1.msra.mxu0 %v6216_v30  ;;  %3188 = vmatpush1.msra.mxu1 %v6219_v42 }
 0xb58   :  { %3118 = vmatprep.subr.mxu0 %v6222_v13  ;;  %3189 = vmatprep.subr.mxu1 %v6225_v37 }
 0xb59   :  { %3119 = vmatpush1.msra.mxu0 %v6228_v41  ;;  %3190 = vmatpush1.msra.mxu1 %v6231_v44 }
 0xb5a   :  { %3120 = vmatprep.subr.mxu0 %v5733_v38  ;;  %3191 = vmatprep.subr.mxu1 %v5735_v59  ;;  %v7218_v38 = vld [vmem:[#allocation60_spill] sm:$0xff]  ;;  %v7219_v59 = vld [vmem:[#allocation61_spill] sm:$0xff] }
 0xb5b   :  { %3121 = vmatpush1.msra.mxu0 %v5739_v57  ;;  %3192 = vmatpush1.msra.mxu1 %v5741_v56  ;;  %v7220_v57 = vld [vmem:[#allocation59_spill] sm:$0xff]  ;;  %v7221_v56 = vld [vmem:[#allocation26_spill] sm:$0xff] }
 0xb5c   :  { %3122 = vmatprep.subr.mxu0 %v5745_v55  ;;  %3193 = vmatprep.subr.mxu1 %v5747_v3  ;;  %v7222_v55 = vld [vmem:[#allocation27_spill] sm:$0xff]  ;;  %v7223_v3 = vld [vmem:[#allocation62_spill] sm:$0xff] }
 0xb5d   :  { %3123 = vmatpush1.msra.mxu0 %v5751_v2  ;;  %3194 = vmatpush1.msra.mxu1 %v5753_v60  ;;  %v7224_v2 = vld [vmem:[#allocation64_spill] sm:$0xff]  ;;  %v7225_v60 = vld [vmem:[#allocation65_spill] sm:$0xff] }
 0xb5e   :  { %3124 = vmatprep.subr.mxu0 %v5757_v58  ;;  %3195 = vmatprep.subr.mxu1 %v5759_v11  ;;  %v7226_v58 = vld [vmem:[#allocation63_spill] sm:$0xff]  ;;  %v7227_v11 = vld [vmem:[#allocation49_spill] sm:$0xff] }
 0xb5f   :  { %3125 = vmatpush1.msra.mxu0 %v5763_v47  ;;  %3196 = vmatpush1.msra.mxu1 %v5765_v27  ;;  %v7228_v47 = vmov 0.0   ;;  %v7229_v27 = vld [vmem:[#allocation47_spill] sm:$0xff] }
 0xb60   :  { %3126 = vmatprep.subr.mxu0 %v5769_v28  ;;  %3197 = vmatprep.subr.mxu1 %v5771_v31  ;;  %v6288_v28 = vld [vmem:[#allocation14 + $0x1e8] sm:$0xff]  ;;  %v6291_v31 = vld [vmem:[#allocation14 + $0x1f8] sm:$0xff] }
 0xb61   :  { %3127 = vmatpush1.msra.mxu0 %v5775_v4  ;;  %3198 = vmatpush1.msra.mxu1 %v5777_v63  ;;  %7230 = vst [vmem:[#allocation29_spill] sm:$0xff] %v6288_v28  ;;  %7231 = vst [vmem:[#allocation31_spill] sm:$0xff] %v6291_v31  ;;  %v7232_v4 = vld [vmem:[#allocation44_spill] sm:$0xff]  ;;  %v7233_v63 = vld [vmem:[#allocation37_spill] sm:$0xff] }
 0xb62   :  { %3128 = vmatprep.subr.mxu0 %v5781_v51  ;;  %3199 = vmatprep.subr.mxu1 %v5783_v15  ;;  %v2222_v51 = vadd.f32 %v7233_v63, %v7232_v4  ;;  %v6355_v63 = vld [vmem:[#allocation14 + $0x138] sm:$0xff] }
 0xb63   :  { %3129 = vmatpush1.msra.mxu0 %v5787_v16  ;;  %3200 = vmatpush1.msra.mxu1 %v5789_v17  ;;  %v7234_v16 = vld [vmem:[#allocation39_spill] sm:$0xff] }
 0xb64   :  { %3130 = vmatprep.subr.mxu0 %v5793_v18  ;;  %3201 = vmatprep.subr.mxu1 %v5795_v19  ;;  %v2224_v17 = vadd.f32 %v7234_v16, %v6025_v7  ;;  %v6364_v16 = vld [vmem:[#allocation14 + $0x108] sm:$0xff] }
 0xb65   :  { %3131 = vmatpush1.msra.mxu0 %v5799_v21  ;;  %3202 = vmatpush1.msra.mxu1 %v5801_v22 }
 0xb66   :  { %3132 = vmatprep.subr.mxu0 %v5805_v24  ;;  %3203 = vmatprep.subr.mxu1 %v5807_v1 }
 0xb67   :  { %3133 = vmatpush1.msra.mxu0 %v5811_v32  ;;  %3204 = vmatpush1.msra.mxu1 %v5813_v33  ;;  %v7235_v33 = vld [vmem:[#allocation40_spill] sm:$0xff] }
 0xb68   :  { %3134 = vmatprep.subr.mxu0 %v5817_v34  ;;  %3205 = vmatprep.subr.mxu1 %v5819_v35  ;;  %v2337_v34 = vadd.f32 %v7235_v33, %v7186_v9  ;;  %v6391_v33 = vld [vmem:[#allocation14 + $0xd8] sm:$0xff] }
 0xb69   :  { %3135 = vmatpush1.msra.mxu0 %v5823_v36  ;;  %3206 = vmatpush1.msra.mxu1 %v7189_v62  ;;  %v7236_v36 = vld [vmem:[#allocation38_spill] sm:$0xff] }
 0xb6a   :  { %3136 = vmatprep.subr.mxu0 %v7190_v25  ;;  %3207 = vmatprep.subr.mxu1 %v7191_v23  ;;  %v2335_v62 = vadd.f32 %v7236_v36, %v6042_v20  ;;  %v6400_v36 = vld [vmem:[#allocation14 + $0xa8] sm:$0xff] }
 0xb6b   :  { %3137 = vmatpush1.msra.mxu0 %v7192_v49  ;;  %3208 = vmatpush1.msra.mxu1 %v7193_v50 }
 0xb6c   :  { %3138 = vmatprep.subr.mxu0 %v7194_v48  ;;  %3209 = vmatprep.subr.mxu1 %v7195_v61 }
 0xb6d   :  { %3139 = vmatpush1.msra.mxu0 %v7196_v52  ;;  %3210 = vmatpush1.msra.mxu1 %v7197_v29 }
 0xb6e   :  { %3140 = vmatprep.subr.mxu0 %v7198_v0  ;;  %3211 = vmatprep.subr.mxu1 %v7218_v38  ;;  %v6322_v38 = vld [vmem:[#allocation14 + $0x180] sm:$0xff] }
 0xb6f   :  { %3141 = vmatpush1.msra.mxu0 %v7219_v59  ;;  %3212 = vmatpush1.msra.mxu1 %v7220_v57  ;;  %v6325_v59 = vld [vmem:[#allocation14 + $0x190] sm:$0xff]  ;;  %v6328_v57 = vld [vmem:[#allocation14 + $0x168] sm:$0xff] }
 0xb70   :  { %3142 = vmatprep.subr.mxu0 %v7221_v56  ;;  %3213 = vmatprep.subr.mxu1 %v7222_v55  ;;  %v6331_v56 = vld [vmem:[#allocation14 + $0x178] sm:$0xff]  ;;  %v6334_v55 = vld [vmem:[#allocation14 + $0x160] sm:$0xff] }
 0xb71   :  { %3143 = vmatpush1.msra.mxu0 %v7223_v3  ;;  %3214 = vmatpush1.msra.mxu1 %v7224_v2  ;;  %v6337_v3 = vld [vmem:[#allocation14 + $0x170] sm:$0xff]  ;;  %v6340_v2 = vld [vmem:[#allocation14 + $0x148] sm:$0xff] }
 0xb72   :  { %3144 = vmatprep.subr.mxu0 %v7225_v60  ;;  %3215 = vmatprep.subr.mxu1 %v7226_v58  ;;  %v6343_v60 = vld [vmem:[#allocation14 + $0x158] sm:$0xff]  ;;  %v6346_v58 = vld [vmem:[#allocation14 + $0x140] sm:$0xff] }
 0xb73   :  { %3145 = vmatpush1.msra.mxu0 %v7227_v11  ;;  %3178 = vmatprep.mubr.f32.mxu0 %v7228_v47  ;;  %v6349_v11 = vld [vmem:[#allocation14 + $0x150] sm:$0xff] }
 0xb74   :  { %3216 = vmatpush1.msra.mxu1 %v7229_v27  ;;  %3249 = vmatprep.mubr.f32.mxu1 %v7228_v47  ;;  %v6352_v27 = vld [vmem:[#allocation14 + $0x128] sm:$0xff] }
 0xb75   :  { %3292 = vmatprep.subr.mxu0 %v6288_v28  ;;  %3363 = vmatprep.subr.mxu1 %v6291_v31 }
 0xc14   :  { %v3002_v15 = vpop.f32.mrf.mxu0  ;;  %v3073_v24 = vpop.f32.mrf.mxu1 }
 0xc15   :  { %v3078_v18 = vadd.f32 %v3002_v15, %v2222_v51  ;;  %v3080_v25 = vadd.f32 %v3073_v24, %v2335_v62  ;;  %v6358_v51 = vld [vmem:[#allocation14 + $0x120] sm:$0xff]  ;;  %v6361_v15 = vld [vmem:[#allocation14 + $0x130] sm:$0xff]  ;;  %v6403_v62 = vld [vmem:[#allocation14 + $0xb8] sm:$0xff] }
 0xc16   :  { %v3004_v19 = vpop.f32.mrf.mxu0  ;;  %v3075_v32 = vpop.f32.mrf.mxu1  ;;  %v6382_v24 = vld [vmem:[#allocation14 + $0xe0] sm:$0xff] }
 0xc17   :  { %v3967_v21 = vmul.f32 -1.442695, %v3078_v18  ;;  %v3079_v22 = vadd.f32 %v3004_v19, %v2224_v17  ;;  %v3081_v35 = vadd.f32 %v3075_v32, %v2337_v34  ;;  %v6367_v17 = vld [vmem:[#allocation14 + $0x118] sm:$0xff]  ;;  %v6370_v18 = vld [vmem:[#allocation14 + $0x100] sm:$0xff]  ;;  %v6373_v19 = vld [vmem:[#allocation14 + $0x110] sm:$0xff] }
 0xc18   :  { %v6388_v32 = vld [vmem:[#allocation14 + $0xc8] sm:$0xff]  ;;  %v6394_v34 = vld [vmem:[#allocation14 + $0xc0] sm:$0xff] }
 0xc19   :  { %4224 = vpow2.f32 %v3967_v21  ;;  %v3968_v1 = vmul.f32 -1.442695, %v3079_v22  ;;  %v3969_v23 = vmul.f32 -1.442695, %v3081_v35  ;;  %v6376_v21 = vld [vmem:[#allocation14 + $0xe8] sm:$0xff]  ;;  %v6379_v22 = vld [vmem:[#allocation14 + $0xf8] sm:$0xff] }
 0xc1a   :  { %v6397_v35 = vld [vmem:[#allocation14 + $0xd0] sm:$0xff] }
 0xc1b   :  { %4226 = vpow2.f32 %v3968_v1  ;;  %v6385_v1 = vld [vmem:[#allocation14 + $0xf0] sm:$0xff] }
 0xc1c   :  { %4228 = vtanh.f32 %v3080_v25  ;;  %v6406_v25 = vld [vmem:[#allocation14 + $0xa0] sm:$0xff] }
 0xc1d   :  { %4230 = vpow2.f32 %v3969_v23  ;;  %v6409_v23 = vld [vmem:[#allocation14 + $0xb0] sm:$0xff] }
 0xc1e   :  { %7237 = vst [vmem:[#allocation75_spill] sm:$0xff] %v6409_v23 }
 0xc26   :  { %v4225_v49 = vpop.eup %4224 }
 0xc27   :  { %v3085_v50 = vadd.f32 1.0, %v4225_v49  ;;  %v6412_v49 = vld [vmem:[#allocation14 + $0x88] sm:$0xff] }
 0xc28   :  { %v4227_v48 = vpop.eup %4226  ;;  %7238 = vst [vmem:[#allocation32_spill] sm:$0xff] %v6412_v49 }
 0xc29   :  { %4232 = vrcp.f32 %v3085_v50  ;;  %v3091_v61 = vadd.f32 1.0, %v4227_v48  ;;  %v4229_v52 = vpop.eup %4228  ;;  %v6415_v50 = vld [vmem:[#allocation14 + $0x98] sm:$0xff]  ;;  %v6418_v48 = vld [vmem:[#allocation14 + $0x80] sm:$0xff] }
 0xc2a   :  { %v4231_v29 = vpop.eup %4230  ;;  %7239 = vst [vmem:[#allocation30_spill] sm:$0xff] %v6415_v50  ;;  %7240 = vst [vmem:[#allocation52_spill] sm:$0xff] %v6418_v48 }
 0xc2b   :  { %4234 = vrcp.f32 %v3091_v61  ;;  %v3098_v53 = vadd.f32 1.0, %v4231_v29  ;;  %v6421_v61 = vld [vmem:[#allocation14 + $0x90] sm:$0xff]  ;;  %v6427_v29 = vld [vmem:[#allocation14 + $0x78] sm:$0xff] }
 0xc2c   :  { %7241 = vst [vmem:[#allocation53_spill] sm:$0xff] %v6421_v61  ;;  %7243 = vst [vmem:[#allocation54_spill] sm:$0xff] %v6427_v29 }
 0xc2d   :  { %4236 = vrcp.f32 %v3098_v53  ;;  %v6439_v53 = vld [vmem:[#allocation14 + $0x58] sm:$0xff] }
 0xc2e   :  { %7247 = vst [vmem:[#allocation23_spill] sm:$0xff] %v6439_v53 }
 0xc36   :  { %v4233_v0 = vpop.eup %4232 }
 0xc37   :  { %v3103_v14 = vmul.f32 %v4233_v0, %v4229_v52  ;;  %v6424_v52 = vld [vmem:[#allocation14 + $0x68] sm:$0xff]  ;;  %v6430_v0 = vld [vmem:[#allocation14 + $0x60] sm:$0xff] }
 0xc38   :  { %v4235_v45 = vpop.eup %4234  ;;  %7242 = vst [vmem:[#allocation51_spill] sm:$0xff] %v6424_v52  ;;  %7244 = vst [vmem:[#allocation56_spill] sm:$0xff] %v6430_v0 }
 0xc39   :  { %v3102_v40 = vmul.f32 %v4235_v45, %v6201_v26  ;;  %v6316_v26 = vld [vmem:[#allocation14 + $0x188] sm:$0xff] }
 0xc3a   :  { %v4237_v43 = vpop.eup %4236  ;;  %v6436_v45 = vld [vmem:[#allocation14 + $0x48] sm:$0xff] }
 0xc3b   :  { %v6303_v5 = vadd.f32 %v3103_v14, %v3102_v40  ;;  %v6433_v14 = vld [vmem:[#allocation14 + $0x70] sm:$0xff]  ;;  %7246 = vst [vmem:[#allocation55_spill] sm:$0xff] %v6436_v45  ;;  %v6442_v40 = vld [vmem:[#allocation14 + $0x40] sm:$0xff] }
 0xc3c   :  { %7245 = vst [vmem:[#allocation57_spill] sm:$0xff] %v6433_v14  ;;  %7248 = vst [vmem:[#allocation24_spill] sm:$0xff] %v6442_v40 }
 0xc3d   :  { %4238 = vtanh.f32 %v6303_v5 }
 0xc4a   :  { %v4239_v8 = vpop.eup %4238 }
 0xc4b   :  { %v3106_v54 = vmul.f32 %v4239_v8, %v4237_v43  ;;  %v6445_v43 = vld [vmem:[#allocation14 + $0x50] sm:$0xff]  ;;  %v6448_v8 = vld [vmem:[#allocation14 + $0x28] sm:$0xff] }
 0xc4c   :  { %7249 = vst [vmem:[#allocation58_spill] sm:$0xff] %v6445_v43  ;;  %7250 = vst [vmem:[#allocation45_spill] sm:$0xff] %v6448_v8 }
 0xc4d   :  { %3179 = vmatmul.mubr.f32.vlgmr.msra.gmra.mxu0 %v3106_v54  ;;  %3250 = vmatmul.mubr.f32.vlgmr.msra.gmra.mxu1 %v3106_v54  ;;  %v6451_v54 = vld [vmem:[#allocation14 + $0x38] sm:$0xff] }
 0xc4e   :  { %3293 = vmatpush1.msra.mxu0 %v6204_v39  ;;  %3364 = vmatpush1.msra.mxu1 %v6207_v6  ;;  %7251 = vst [vmem:[#allocation50_spill] sm:$0xff] %v6451_v54 }
 0xc4f   :  { %3294 = vmatprep.subr.mxu0 %v6210_v10  ;;  %3365 = vmatprep.subr.mxu1 %v6213_v12 }
 0xc50   :  { %3295 = vmatpush1.msra.mxu0 %v6216_v30  ;;  %3366 = vmatpush1.msra.mxu1 %v6219_v42 }
 0xc51   :  { %3296 = vmatprep.subr.mxu0 %v6222_v13  ;;  %3367 = vmatprep.subr.mxu1 %v6225_v37 }
 0xc52   :  { %3297 = vmatpush1.msra.mxu0 %v6228_v41  ;;  %3368 = vmatpush1.msra.mxu1 %v6231_v44 }
 0xc53   :  { %3298 = vmatprep.subr.mxu0 %v6316_v26  ;;  %3369 = vmatprep.subr.mxu1 %v6319_v46 }
 0xc54   :  { %3299 = vmatpush1.msra.mxu0 %v6322_v38  ;;  %3370 = vmatpush1.msra.mxu1 %v6325_v59 }
 0xc55   :  { %3300 = vmatprep.subr.mxu0 %v6328_v57  ;;  %3371 = vmatprep.subr.mxu1 %v6331_v56 }
 0xc56   :  { %3301 = vmatpush1.msra.mxu0 %v6334_v55  ;;  %3372 = vmatpush1.msra.mxu1 %v6337_v3 }
 0xc57   :  { %3302 = vmatprep.subr.mxu0 %v6340_v2  ;;  %3373 = vmatprep.subr.mxu1 %v6343_v60 }
 0xc58   :  { %3303 = vmatpush1.msra.mxu0 %v6346_v58  ;;  %3374 = vmatpush1.msra.mxu1 %v6349_v11 }
 0xc59   :  { %3304 = vmatprep.subr.mxu0 %v6352_v27  ;;  %3375 = vmatprep.subr.mxu1 %v6355_v63 }
 0xc5a   :  { %3305 = vmatpush1.msra.mxu0 %v6358_v51  ;;  %3376 = vmatpush1.msra.mxu1 %v6361_v15 }
 0xc5b   :  { %3306 = vmatprep.subr.mxu0 %v6364_v16  ;;  %3377 = vmatprep.subr.mxu1 %v6367_v17 }
 0xc5c   :  { %3307 = vmatpush1.msra.mxu0 %v6370_v18  ;;  %3378 = vmatpush1.msra.mxu1 %v6373_v19 }
 0xc5d   :  { %3308 = vmatprep.subr.mxu0 %v6376_v21  ;;  %3379 = vmatprep.subr.mxu1 %v6379_v22 }
 0xc5e   :  { %3309 = vmatpush1.msra.mxu0 %v6382_v24  ;;  %3380 = vmatpush1.msra.mxu1 %v6385_v1 }
 0xc5f   :  { %3310 = vmatprep.subr.mxu0 %v6388_v32  ;;  %3381 = vmatprep.subr.mxu1 %v6391_v33 }
 0xc60   :  { %3311 = vmatpush1.msra.mxu0 %v6394_v34  ;;  %3382 = vmatpush1.msra.mxu1 %v6397_v35 }
 0xc61   :  { %3312 = vmatprep.subr.mxu0 %v6400_v36  ;;  %3383 = vmatprep.subr.mxu1 %v6403_v62 }
 0xc62   :  { %3313 = vmatpush1.msra.mxu0 %v6406_v25  ;;  %3384 = vmatpush1.msra.mxu1 %v6409_v23 }
 0xc63   :  { %3314 = vmatprep.subr.mxu0 %v6412_v49  ;;  %3385 = vmatprep.subr.mxu1 %v6415_v50  ;;  %v7261_v50 = vld [vmem:[#allocation42_spill] sm:$0xff] }
 0xc64   :  { %3315 = vmatpush1.msra.mxu0 %v6418_v48  ;;  %3386 = vmatpush1.msra.mxu1 %v6421_v61 }
 0xc65   :  { %3316 = vmatprep.subr.mxu0 %v6424_v52  ;;  %3387 = vmatprep.subr.mxu1 %v6427_v29 }
 0xc66   :  { %3317 = vmatpush1.msra.mxu0 %v6430_v0  ;;  %3388 = vmatpush1.msra.mxu1 %v6433_v14 }
 0xc67   :  { %3318 = vmatprep.subr.mxu0 %v6436_v45  ;;  %3389 = vmatprep.subr.mxu1 %v6439_v53  ;;  %v6454_v45 = vld [vmem:[#allocation14 + $0x20] sm:$0xff]  ;;  %v6457_v53 = vld [vmem:[#allocation14 + $0x30] sm:$0xff] }
 0xc68   :  { %3319 = vmatpush1.msra.mxu0 %v6442_v40  ;;  %3390 = vmatpush1.msra.mxu1 %v6445_v43  ;;  %7252 = vst [vmem:[#allocation33_spill] sm:$0xff] %v6454_v45  ;;  %7253 = vst [vmem:[#allocation35_spill] sm:$0xff] %v6457_v53  ;;  %v6460_v40 = vld [vmem:[#allocation14 + $0x8] sm:$0xff]  ;;  %v6463_v43 = vld [vmem:[#allocation14 + $0x18] sm:$0xff] }
 0xc69   :  { %3320 = vmatprep.subr.mxu0 %v6448_v8  ;;  %3391 = vmatprep.subr.mxu1 %v6451_v54  ;;  %7254 = vst [vmem:[#allocation36_spill] sm:$0xff] %v6460_v40  ;;  %7255 = vst [vmem:[#allocation34_spill] sm:$0xff] %v6463_v43  ;;  %v6466_v8 = vld [vmem:[#allocation14] sm:$0xff]  ;;  %v6470_v54 = vld [vmem:[#allocation14 + $0x10] sm:$0xff] }
 0xc6a   :  { %3321 = vmatpush1.msra.mxu0 %v6454_v45  ;;  %3392 = vmatpush1.msra.mxu1 %v6457_v53  ;;  %7256 = vst [vmem:[#allocation60_spill] sm:$0xff] %v6466_v8  ;;  %7257 = vst [vmem:[#allocation61_spill] sm:$0xff] %v6470_v54  ;;  %v7259_v45 = vld [vmem:[#allocation43_spill] sm:$0xff] }
 0xc6b   :  { %3322 = vmatprep.subr.mxu0 %v6460_v40  ;;  %3393 = vmatprep.subr.mxu1 %v6463_v43  ;;  %v7258_v40 = vld [vmem:[#allocation41_spill] sm:$0xff]  ;;  %v2230_v14 = vadd.f32 %v7259_v45, %v6025_v7 }
 0xc6c   :  { %3323 = vmatpush1.msra.mxu0 %v6466_v8  ;;  %3356 = vmatprep.mubr.f32.mxu0 %v7228_v47  ;;  %v2228_v53 = vadd.f32 %v7258_v40, %v7232_v4  ;;  %v2341_v40 = vadd.f32 %v7261_v50, %v6042_v20  ;;  %v7264_v50 = vld [vmem:[#allocation30_spill] sm:$0xff] }
 0xc6d   :  { %3394 = vmatpush1.msra.mxu1 %v6470_v54  ;;  %3427 = vmatprep.mubr.f32.mxu1 %v7228_v47 }
 0xc6e   :  { %3470 = vmatprep.subr.mxu0 %v6288_v28  ;;  %3541 = vmatprep.subr.mxu1 %v6291_v31  ;;  %v7260_v28 = vld [vmem:[#allocation66_spill] sm:$0xff] }
 0xc6f   :  { %v2343_v48 = vadd.f32 %v7260_v28, %v7186_v9 }
 0xd0d   :  { %v3180_v43 = vpop.f32.mrf.mxu0  ;;  %v3251_v61 = vpop.f32.mrf.mxu1 }
 0xd0e   :  { %v3256_v8 = vadd.f32 %v3180_v43, %v2228_v53  ;;  %v3258_v4 = vadd.f32 %v3251_v61, %v2341_v40  ;;  %v7265_v61 = vld [vmem:[#allocation52_spill] sm:$0xff]  ;;  %v7267_v40 = vld [vmem:[#allocation51_spill] sm:$0xff] }
 0xd0f   :  { %v3182_v0 = vpop.f32.mrf.mxu0  ;;  %v3253_v47 = vpop.f32.mrf.mxu1 }
 0xd10   :  { %v3970_v29 = vmul.f32 -1.442695, %v3256_v8  ;;  %v3257_v52 = vadd.f32 %v3182_v0, %v2230_v14  ;;  %v3259_v31 = vadd.f32 %v3253_v47, %v2343_v48 }
 0xd12   :  { %4240 = vpow2.f32 %v3970_v29  ;;  %v3971_v54 = vmul.f32 -1.442695, %v3257_v52  ;;  %v3972_v49 = vmul.f32 -1.442695, %v3259_v31 }
 0xd14   :  { %4242 = vpow2.f32 %v3971_v54  ;;  %v7266_v54 = vld [vmem:[#allocation53_spill] sm:$0xff] }
 0xd15   :  { %4244 = vtanh.f32 %v3258_v4 }
 0xd16   :  { %4246 = vpow2.f32 %v3972_v49  ;;  %v7263_v49 = vld [vmem:[#allocation32_spill] sm:$0xff] }
 0xd1f   :  { %v4241_v23 = vpop.eup %4240 }
 0xd20   :  { %v3263_v45 = vadd.f32 1.0, %v4241_v23 }
 0xd21   :  { %v4243_v53 = vpop.eup %4242 }
 0xd22   :  { %4248 = vrcp.f32 %v3263_v45  ;;  %v3269_v29 = vadd.f32 1.0, %v4243_v53  ;;  %v4245_v52 = vpop.eup %4244  ;;  %v7268_v45 = vld [vmem:[#allocation54_spill] sm:$0xff]  ;;  %v7269_v53 = vld [vmem:[#allocation56_spill] sm:$0xff] }
 0xd23   :  { %v4247_v0 = vpop.eup %4246 }
 0xd24   :  { %4250 = vrcp.f32 %v3269_v29  ;;  %v3276_v28 = vadd.f32 1.0, %v4247_v0  ;;  %v7270_v29 = vld [vmem:[#allocation57_spill] sm:$0xff]  ;;  %v7272_v0 = vld [vmem:[#allocation23_spill] sm:$0xff] }
 0xd26   :  { %4252 = vrcp.f32 %v3276_v28  ;;  %v7276_v28 = vld [vmem:[#allocation50_spill] sm:$0xff] }
 0xd2f   :  { %v4249_v14 = vpop.eup %4248 }
 0xd30   :  { %v3281_v43 = vmul.f32 %v4249_v14, %v4245_v52  ;;  %v7271_v52 = vld [vmem:[#allocation55_spill] sm:$0xff]  ;;  %v7273_v14 = vld [vmem:[#allocation24_spill] sm:$0xff] }
 0xd31   :  { %v4251_v8 = vpop.eup %4250 }
 0xd32   :  { %v3280_v47 = vmul.f32 %v4251_v8, %v6303_v5  ;;  %v7262_v5 = vld [vmem:[#allocation75_spill] sm:$0xff]  ;;  %v7275_v8 = vld [vmem:[#allocation45_spill] sm:$0xff] }
 0xd33   :  { %v4253_v31 = vpop.eup %4252 }
 0xd34   :  { %v6485_v48 = vadd.f32 %v3281_v43, %v3280_v47  ;;  %v7274_v43 = vld [vmem:[#allocation58_spill] sm:$0xff]  ;;  %v7277_v47 = vld [vmem:[#allocation33_spill] sm:$0xff] }
 0xd36   :  { %4254 = vtanh.f32 %v6485_v48 }
 0xd43   :  { %v4255_v4 = vpop.eup %4254 }
 0xd44   :  { %v3284_v23 = vmul.f32 %v4255_v4, %v4253_v31  ;;  %v7278_v31 = vld [vmem:[#allocation35_spill] sm:$0xff]  ;;  %v7279_v4 = vld [vmem:[#allocation36_spill] sm:$0xff] }
 0xd46   :  { %3357 = vmatmul.mubr.f32.vlgmr.msra.gmra.mxu0 %v3284_v23  ;;  %3428 = vmatmul.mubr.f32.vlgmr.msra.gmra.mxu1 %v3284_v23  ;;  %v7280_v23 = vld [vmem:[#allocation34_spill] sm:$0xff] }
 0xd47   :  { %3471 = vmatpush1.msra.mxu0 %v6204_v39  ;;  %3542 = vmatpush1.msra.mxu1 %v6207_v6 }
 0xd48   :  { %3472 = vmatprep.subr.mxu0 %v6210_v10  ;;  %3543 = vmatprep.subr.mxu1 %v6213_v12 }
 0xd49   :  { %3473 = vmatpush1.msra.mxu0 %v6216_v30  ;;  %3544 = vmatpush1.msra.mxu1 %v6219_v42 }
 0xd4a   :  { %3474 = vmatprep.subr.mxu0 %v6222_v13  ;;  %3545 = vmatprep.subr.mxu1 %v6225_v37 }
 0xd4b   :  { %3475 = vmatpush1.msra.mxu0 %v6228_v41  ;;  %3546 = vmatpush1.msra.mxu1 %v6231_v44 }
 0xd4c   :  { %3476 = vmatprep.subr.mxu0 %v6316_v26  ;;  %3547 = vmatprep.subr.mxu1 %v6319_v46 }
 0xd4d   :  { %3477 = vmatpush1.msra.mxu0 %v6322_v38  ;;  %3548 = vmatpush1.msra.mxu1 %v6325_v59 }
 0xd4e   :  { %3478 = vmatprep.subr.mxu0 %v6328_v57  ;;  %3549 = vmatprep.subr.mxu1 %v6331_v56 }
 0xd4f   :  { %3479 = vmatpush1.msra.mxu0 %v6334_v55  ;;  %3550 = vmatpush1.msra.mxu1 %v6337_v3 }
 0xd50   :  { %3480 = vmatprep.subr.mxu0 %v6340_v2  ;;  %3551 = vmatprep.subr.mxu1 %v6343_v60 }
 0xd51   :  { %3481 = vmatpush1.msra.mxu0 %v6346_v58  ;;  %3552 = vmatpush1.msra.mxu1 %v6349_v11 }
 0xd52   :  { %3482 = vmatprep.subr.mxu0 %v6352_v27  ;;  %3553 = vmatprep.subr.mxu1 %v6355_v63 }
 0xd53   :  { %3483 = vmatpush1.msra.mxu0 %v6358_v51  ;;  %3554 = vmatpush1.msra.mxu1 %v6361_v15 }
 0xd54   :  { %3484 = vmatprep.subr.mxu0 %v6364_v16  ;;  %3555 = vmatprep.subr.mxu1 %v6367_v17 }
 0xd55   :  { %3485 = vmatpush1.msra.mxu0 %v6370_v18  ;;  %3556 = vmatpush1.msra.mxu1 %v6373_v19 }
 0xd56   :  { %3486 = vmatprep.subr.mxu0 %v6376_v21  ;;  %3557 = vmatprep.subr.mxu1 %v6379_v22 }
 0xd57   :  { %3487 = vmatpush1.msra.mxu0 %v6382_v24  ;;  %3558 = vmatpush1.msra.mxu1 %v6385_v1 }
 0xd58   :  { %3488 = vmatprep.subr.mxu0 %v6388_v32  ;;  %3559 = vmatprep.subr.mxu1 %v6391_v33 }
 0xd59   :  { %3489 = vmatpush1.msra.mxu0 %v6394_v34  ;;  %3560 = vmatpush1.msra.mxu1 %v6397_v35 }
 0xd5a   :  { %3490 = vmatprep.subr.mxu0 %v6400_v36  ;;  %3561 = vmatprep.subr.mxu1 %v6403_v62 }
 0xd5b   :  { %3491 = vmatpush1.msra.mxu0 %v6406_v25  ;;  %3562 = vmatpush1.msra.mxu1 %v7262_v5 }
 0xd5c   :  { %3492 = vmatprep.subr.mxu0 %v7263_v49  ;;  %3563 = vmatprep.subr.mxu1 %v7264_v50  ;;  %v7290_v50 = vld [vmem:[#allocation69_spill] sm:$0xff] }
 0xd5d   :  { %3493 = vmatpush1.msra.mxu0 %v7265_v61  ;;  %3564 = vmatpush1.msra.mxu1 %v7266_v54 }
 0xd5e   :  { %3494 = vmatprep.subr.mxu0 %v7267_v40  ;;  %3565 = vmatprep.subr.mxu1 %v7268_v45 }
 0xd5f   :  { %3495 = vmatpush1.msra.mxu0 %v7269_v53  ;;  %3566 = vmatpush1.msra.mxu1 %v7270_v29  ;;  %v7281_v29 = vld [vmem:[#allocation60_spill] sm:$0xff] }
 0xd60   :  { %3496 = vmatprep.subr.mxu0 %v7271_v52  ;;  %3567 = vmatprep.subr.mxu1 %v7272_v0  ;;  %v7282_v52 = vmov 0.0   ;;  %v7283_v0 = vld [vmem:[#allocation61_spill] sm:$0xff] }
 0xd61   :  { %3497 = vmatpush1.msra.mxu0 %v7273_v14  ;;  %3568 = vmatpush1.msra.mxu1 %v7274_v43  ;;  %v7284_v43 = vld [vmem:[#allocation29_spill] sm:$0xff] }
 0xd62   :  { %3498 = vmatprep.subr.mxu0 %v7275_v8  ;;  %3569 = vmatprep.subr.mxu1 %v7276_v28  ;;  %v7285_v8 = vld [vmem:[#allocation31_spill] sm:$0xff]  ;;  %v7286_v28 = vld [vmem:[#allocation44_spill] sm:$0xff] }
 0xd63   :  { %3499 = vmatpush1.msra.mxu0 %v7277_v47  ;;  %3570 = vmatpush1.msra.mxu1 %v7278_v31  ;;  %v7287_v47 = vld [vmem:[#allocation68_spill] sm:$0xff] }
 0xd64   :  { %3500 = vmatprep.subr.mxu0 %v7279_v4  ;;  %3571 = vmatprep.subr.mxu1 %v7280_v23  ;;  %v2234_v14 = vadd.f32 %v7287_v47, %v7286_v28  ;;  %v7288_v4 = vld [vmem:[#allocation67_spill] sm:$0xff]  ;;  %v2347_v47 = vadd.f32 %v7290_v50, %v6042_v20 }
 0xd65   :  { %3501 = vmatpush1.msra.mxu0 %v7281_v29  ;;  %3534 = vmatprep.mubr.f32.mxu0 %v7282_v52  ;;  %v2236_v53 = vadd.f32 %v7288_v4, %v6025_v7 }
 0xd66   :  { %3572 = vmatpush1.msra.mxu1 %v7283_v0  ;;  %3605 = vmatprep.mubr.f32.mxu1 %v7282_v52 }
 0xd67   :  { %3648 = vmatprep.subr.mxu0 %v7284_v43  ;;  %3719 = vmatprep.subr.mxu1 %v7285_v8  ;;  %v7289_v43 = vld [vmem:[#allocation74_spill] sm:$0xff] }
 0xd68   :  { %v2349_v61 = vadd.f32 %v7289_v43, %v7186_v9 }
 0xe06   :  { %v3358_v31 = vpop.f32.mrf.mxu0  ;;  %v3429_v54 = vpop.f32.mrf.mxu1 }
 0xe07   :  { %v3434_v23 = vadd.f32 %v3358_v31, %v2234_v14  ;;  %v3436_v28 = vadd.f32 %v3429_v54, %v2347_v47 }
 0xe08   :  { %v3360_v45 = vpop.f32.mrf.mxu0  ;;  %v3431_v52 = vpop.f32.mrf.mxu1 }
 0xe09   :  { %v3973_v29 = vmul.f32 -1.442695, %v3434_v23  ;;  %v3435_v40 = vadd.f32 %v3360_v45, %v2236_v53  ;;  %v3437_v8 = vadd.f32 %v3431_v52, %v2349_v61 }
 0xe0b   :  { %4256 = vpow2.f32 %v3973_v29  ;;  %v3974_v0 = vmul.f32 -1.442695, %v3435_v40  ;;  %v3975_v49 = vmul.f32 -1.442695, %v3437_v8 }
 0xe0d   :  { %4258 = vpow2.f32 %v3974_v0 }
 0xe0e   :  { %4260 = vtanh.f32 %v3436_v28 }
 0xe0f   :  { %4262 = vpow2.f32 %v3975_v49 }
 0xe18   :  { %v4257_v5 = vpop.eup %4256 }
 0xe19   :  { %v3441_v4 = vadd.f32 1.0, %v4257_v5 }
 0xe1a   :  { %v4259_v14 = vpop.eup %4258 }
 0xe1b   :  { %4264 = vrcp.f32 %v3441_v4  ;;  %v3447_v45 = vadd.f32 1.0, %v4259_v14  ;;  %v4261_v40 = vpop.eup %4260 }
 0xe1c   :  { %v4263_v53 = vpop.eup %4262 }
 0xe1d   :  { %4266 = vrcp.f32 %v3447_v45  ;;  %v3454_v23 = vadd.f32 1.0, %v4263_v53 }
 0xe1f   :  { %4268 = vrcp.f32 %v3454_v23 }
 0xe28   :  { %v4265_v29 = vpop.eup %4264 }
 0xe29   :  { %v3459_v0 = vmul.f32 %v4265_v29, %v4261_v40 }
 0xe2a   :  { %v4267_v31 = vpop.eup %4266 }
 0xe2b   :  { %v3458_v61 = vmul.f32 %v4267_v31, %v6485_v48 }
 0xe2c   :  { %v4269_v5 = vpop.eup %4268 }
 0xe2d   :  { %v6563_v52 = vadd.f32 %v3459_v0, %v3458_v61 }
 0xe2f   :  { %4270 = vtanh.f32 %v6563_v52 }
 0xe3c   :  { %v4271_v50 = vpop.eup %4270 }
 0xe3d   :  { %v3462_v54 = vmul.f32 %v4271_v50, %v4269_v5  ;;  %v3837_v5 = vld [vmem:[#allocation15 + $0x78] sm:$0xff]  ;;  %v3836_v50 = vld [vmem:[#allocation15 + $0x70] sm:$0xff] }
 0xe3f   :  { %3535 = vmatmul.mubr.f32.vlgmr.msra.gmra.mxu0 %v3462_v54  ;;  %3606 = vmatmul.mubr.f32.vlgmr.msra.gmra.mxu1 %v3462_v54  ;;  %v3835_v54 = vld [vmem:[#allocation15 + $0x68] sm:$0xff] }
 0xe40   :  { %3649 = vmatpush1.msra.mxu0 %v6204_v39  ;;  %3720 = vmatpush1.msra.mxu1 %v6207_v6  ;;  %v7291_v39 = vld [vmem:[#allocation75_spill] sm:$0xff]  ;;  %v7292_v6 = vld [vmem:[#allocation32_spill] sm:$0xff] }
 0xe41   :  { %3650 = vmatprep.subr.mxu0 %v6210_v10  ;;  %3721 = vmatprep.subr.mxu1 %v6213_v12  ;;  %v7293_v10 = vld [vmem:[#allocation30_spill] sm:$0xff]  ;;  %v7294_v12 = vld [vmem:[#allocation52_spill] sm:$0xff] }
 0xe42   :  { %3651 = vmatpush1.msra.mxu0 %v6216_v30  ;;  %3722 = vmatpush1.msra.mxu1 %v6219_v42  ;;  %v7295_v30 = vld [vmem:[#allocation53_spill] sm:$0xff]  ;;  %v7296_v42 = vld [vmem:[#allocation51_spill] sm:$0xff] }
 0xe43   :  { %3652 = vmatprep.subr.mxu0 %v6222_v13  ;;  %3723 = vmatprep.subr.mxu1 %v6225_v37  ;;  %v7297_v13 = vld [vmem:[#allocation54_spill] sm:$0xff]  ;;  %v7298_v37 = vld [vmem:[#allocation56_spill] sm:$0xff] }
 0xe44   :  { %3653 = vmatpush1.msra.mxu0 %v6228_v41  ;;  %3724 = vmatpush1.msra.mxu1 %v6231_v44  ;;  %v7299_v41 = vld [vmem:[#allocation57_spill] sm:$0xff]  ;;  %v7300_v44 = vld [vmem:[#allocation55_spill] sm:$0xff] }
 0xe45   :  { %3654 = vmatprep.subr.mxu0 %v6316_v26  ;;  %3725 = vmatprep.subr.mxu1 %v6319_v46  ;;  %v7301_v26 = vld [vmem:[#allocation23_spill] sm:$0xff]  ;;  %v7302_v46 = vld [vmem:[#allocation24_spill] sm:$0xff] }
 0xe46   :  { %3655 = vmatpush1.msra.mxu0 %v6322_v38  ;;  %3726 = vmatpush1.msra.mxu1 %v6325_v59  ;;  %v7303_v38 = vld [vmem:[#allocation58_spill] sm:$0xff]  ;;  %v7304_v59 = vld [vmem:[#allocation45_spill] sm:$0xff] }
 0xe47   :  { %3656 = vmatprep.subr.mxu0 %v6328_v57  ;;  %3727 = vmatprep.subr.mxu1 %v6331_v56  ;;  %v7305_v57 = vld [vmem:[#allocation50_spill] sm:$0xff]  ;;  %v7306_v56 = vld [vmem:[#allocation33_spill] sm:$0xff] }
 0xe48   :  { %3657 = vmatpush1.msra.mxu0 %v6334_v55  ;;  %3728 = vmatpush1.msra.mxu1 %v6337_v3  ;;  %v7307_v55 = vld [vmem:[#allocation35_spill] sm:$0xff]  ;;  %v7308_v3 = vld [vmem:[#allocation36_spill] sm:$0xff] }
 0xe49   :  { %3658 = vmatprep.subr.mxu0 %v6340_v2  ;;  %3729 = vmatprep.subr.mxu1 %v6343_v60  ;;  %v7309_v2 = vld [vmem:[#allocation34_spill] sm:$0xff]  ;;  %v7310_v60 = vld [vmem:[#allocation60_spill] sm:$0xff] }
 0xe4a   :  { %3659 = vmatpush1.msra.mxu0 %v6346_v58  ;;  %3730 = vmatpush1.msra.mxu1 %v6349_v11  ;;  %v7311_v58 = vmov 0.0   ;;  %v7312_v11 = vld [vmem:[#allocation61_spill] sm:$0xff] }
 0xe4b   :  { %3660 = vmatprep.subr.mxu0 %v6352_v27  ;;  %3731 = vmatprep.subr.mxu1 %v6355_v63  ;;  %v7313_v27 = vld [vmem:[#allocation44_spill] sm:$0xff]  ;;  %v7314_v63 = vld [vmem:[#allocation25_spill] sm:$0xff] }
 0xe4c   :  { %3661 = vmatpush1.msra.mxu0 %v6358_v51  ;;  %3732 = vmatpush1.msra.mxu1 %v6361_v15  ;;  %v2240_v51 = vadd.f32 %v7314_v63, %v7313_v27 }
 0xe4d   :  { %3662 = vmatprep.subr.mxu0 %v6364_v16  ;;  %3733 = vmatprep.subr.mxu1 %v6367_v17  ;;  %v7315_v16 = vld [vmem:[#allocation48_spill] sm:$0xff] }
 0xe4e   :  { %3663 = vmatpush1.msra.mxu0 %v6370_v18  ;;  %3734 = vmatpush1.msra.mxu1 %v6373_v19  ;;  %v2242_v17 = vadd.f32 %v7315_v16, %v6025_v7  ;;  %v7320_v16 = vld [vmem:[#allocation46_spill] sm:$0xff] }
 0xe4f   :  { %3664 = vmatprep.subr.mxu0 %v6376_v21  ;;  %3735 = vmatprep.subr.mxu1 %v6379_v22 }
 0xe50   :  { %3665 = vmatpush1.msra.mxu0 %v6382_v24  ;;  %3736 = vmatpush1.msra.mxu1 %v6385_v1 }
 0xe51   :  { %3666 = vmatprep.subr.mxu0 %v6388_v32  ;;  %3737 = vmatprep.subr.mxu1 %v6391_v33  ;;  %v7316_v33 = vld [vmem:[#allocation70_spill] sm:$0xff] }
 0xe52   :  { %3667 = vmatpush1.msra.mxu0 %v6394_v34  ;;  %3738 = vmatpush1.msra.mxu1 %v6397_v35  ;;  %v2355_v34 = vadd.f32 %v7316_v33, %v7186_v9 }
 0xe53   :  { %3668 = vmatprep.subr.mxu0 %v6400_v36  ;;  %3739 = vmatprep.subr.mxu1 %v6403_v62  ;;  %v7317_v36 = vld [vmem:[#allocation28_spill] sm:$0xff] }
 0xe54   :  { %3669 = vmatpush1.msra.mxu0 %v6406_v25  ;;  %3740 = vmatpush1.msra.mxu1 %v7291_v39  ;;  %v2353_v62 = vadd.f32 %v7317_v36, %v6042_v20  ;;  %v3833_v39 = vld [vmem:[#allocation15 + $0x58] sm:$0xff] }
 0xe55   :  { %3670 = vmatprep.subr.mxu0 %v7292_v6  ;;  %3741 = vmatprep.subr.mxu1 %v7293_v10  ;;  %v3832_v6 = vld [vmem:[#allocation15 + $0x50] sm:$0xff]  ;;  %v3831_v10 = vld [vmem:[#allocation15 + $0x48] sm:$0xff] }
 0xe56   :  { %3671 = vmatpush1.msra.mxu0 %v7294_v12  ;;  %3742 = vmatpush1.msra.mxu1 %v7295_v30  ;;  %v3830_v12 = vld [vmem:[#allocation15 + $0x40] sm:$0xff]  ;;  %v3829_v30 = vld [vmem:[#allocation15 + $0x38] sm:$0xff] }
 0xe57   :  { %3672 = vmatprep.subr.mxu0 %v7296_v42  ;;  %3743 = vmatprep.subr.mxu1 %v7297_v13  ;;  %v3828_v42 = vld [vmem:[#allocation15 + $0x30] sm:$0xff]  ;;  %v3827_v13 = vld [vmem:[#allocation15 + $0x28] sm:$0xff] }
 0xe58   :  { %3673 = vmatpush1.msra.mxu0 %v7298_v37  ;;  %3744 = vmatpush1.msra.mxu1 %v7299_v41  ;;  %v3826_v37 = vld [vmem:[#allocation15 + $0x20] sm:$0xff]  ;;  %v3825_v41 = vld [vmem:[#allocation15 + $0x18] sm:$0xff] }
 0xe59   :  { %3674 = vmatprep.subr.mxu0 %v7300_v44  ;;  %3745 = vmatprep.subr.mxu1 %v7301_v26  ;;  %v3824_v44 = vld [vmem:[#allocation15 + $0x10] sm:$0xff]  ;;  %v3823_v26 = vld [vmem:[#allocation15 + $0x8] sm:$0xff] }
 0xe5a   :  { %3675 = vmatpush1.msra.mxu0 %v7302_v46  ;;  %3746 = vmatpush1.msra.mxu1 %v7303_v38  ;;  %v3822_v46 = vld [vmem:[#allocation15] sm:$0xff]  ;;  %v7318_v38 = vld [vmem:[#allocation72_spill] sm:$0xff] }
 0xe5b   :  { %3676 = vmatprep.subr.mxu0 %v7304_v59  ;;  %3747 = vmatprep.subr.mxu1 %v7305_v57  ;;  %v2246_v59 = vadd.f32 %v7318_v38, %v7313_v27 }
 0xe5c   :  { %3677 = vmatpush1.msra.mxu0 %v7306_v56  ;;  %3748 = vmatpush1.msra.mxu1 %v7307_v55  ;;  %v7319_v56 = vld [vmem:[#allocation71_spill] sm:$0xff] }
 0xe5d   :  { %3678 = vmatprep.subr.mxu0 %v7308_v3  ;;  %3749 = vmatprep.subr.mxu1 %v7309_v2  ;;  %v2248_v55 = vadd.f32 %v7319_v56, %v6025_v7 }
 0xe5e   :  { %3679 = vmatpush1.msra.mxu0 %v7310_v60  ;;  %3712 = vmatprep.mubr.f32.mxu0 %v7311_v58 }
 0xe5f   :  { %3750 = vmatpush1.msra.mxu1 %v7312_v11  ;;  %3783 = vmatprep.mubr.f32.mxu1 %v7311_v58 }
 0xe60   :  { %4000 = vmatprep.subr.mxu0 %v7311_v58 }
 0xeff   :  { %v3536_v15 = vpop.f32.mrf.mxu0  ;;  %v3607_v24 = vpop.f32.mrf.mxu1 }
 0xf00   :  { %v3612_v18 = vadd.f32 %v3536_v15, %v2240_v51  ;;  %v3614_v25 = vadd.f32 %v3607_v24, %v2353_v62 }
 0xf01   :  { %v3538_v19 = vpop.f32.mrf.mxu0  ;;  %v3609_v32 = vpop.f32.mrf.mxu1 }
 0xf02   :  { %v3976_v21 = vmul.f32 -1.442695, %v3612_v18  ;;  %v3613_v22 = vadd.f32 %v3538_v19, %v2242_v17  ;;  %v3615_v35 = vadd.f32 %v3609_v32, %v2355_v34  ;;  %v7321_v18 = vld [vmem:[#allocation73_spill] sm:$0xff] }
 0xf03   :  { %v2359_v27 = vadd.f32 %v7321_v18, %v6042_v20 }
 0xf04   :  { %4272 = vpow2.f32 %v3976_v21  ;;  %v3977_v1 = vmul.f32 -1.442695, %v3613_v22  ;;  %v3978_v48 = vmul.f32 -1.442695, %v3615_v35 }
 0xf06   :  { %4274 = vpow2.f32 %v3977_v1 }
 0xf07   :  { %4276 = vtanh.f32 %v3614_v25 }
 0xf08   :  { %4278 = vpow2.f32 %v3978_v48 }
 0xf11   :  { %v4273_v49 = vpop.eup %4272 }
 0xf12   :  { %v3619_v28 = vadd.f32 1.0, %v4273_v49 }
 0xf13   :  { %v4275_v43 = vpop.eup %4274 }
 0xf14   :  { %4280 = vrcp.f32 %v3619_v28  ;;  %v3625_v8 = vadd.f32 1.0, %v4275_v43  ;;  %v4277_v47 = vpop.eup %4276  ;;  %v3982_v28 = vld [vmem:[%s6682_s8] ss:$0 sm:$0xff] }
 0xf15   :  { %v4279_v4 = vpop.eup %4278 }
 0xf16   :  { %4282 = vrcp.f32 %v3625_v8  ;;  %v3632_v53 = vadd.f32 1.0, %v4279_v4 }
 0xf18   :  { %4284 = vrcp.f32 %v3632_v53 }
 0xf21   :  { %v4281_v14 = vpop.eup %4280 }
 0xf22   :  { %v3637_v45 = vmul.f32 %v4281_v14, %v4277_v47 }
 0xf23   :  { %v4283_v40 = vpop.eup %4282 }
 0xf24   :  { %v3636_v29 = vmul.f32 %v4283_v40, %v6563_v52  ;;  %v3834_v52 = vld [vmem:[#allocation15 + $0x60] sm:$0xff] }
 0xf25   :  { %v4285_v31 = vpop.eup %4284 }
 0xf26   :  { %v6640_v0 = vadd.f32 %v3637_v45, %v3636_v29 }
 0xf28   :  { %4286 = vtanh.f32 %v6640_v0 }
 0xf35   :  { %v4287_v23 = vpop.eup %4286 }
 0xf36   :  { %v3640_v61 = vmul.f32 %v4287_v23, %v4285_v31 }
 0xf38   :  { %3713 = vmatmul.mubr.f32.vlgmr.msra.gmra.mxu0 %v3640_v61  ;;  %3784 = vmatmul.mubr.f32.vlgmr.msra.gmra.mxu1 %v3640_v61 }
 0xf39   :  { %4001 = vmatpush3.msra.mxu0 %v3837_v5  ;;  %4032 = vmatprep.mubr.msk.f32.mxu0 %vm4593_vm0, %v7311_v58 }
 0xf3a   :  { %4002 = vmatprep.subr.mxu0 %v7311_v58 }
 0xf3b   :  { %4003 = vmatpush3.msra.mxu0 %v3836_v50 }
 0xf3c   :  { %4004 = vmatprep.subr.mxu0 %v7311_v58 }
 0xf3d   :  { %4005 = vmatpush3.msra.mxu0 %v3835_v54 }
 0xf3e   :  { %4006 = vmatprep.subr.mxu0 %v7311_v58 }
 0xf3f   :  { %4007 = vmatpush3.msra.mxu0 %v3834_v52 }
 0xf40   :  { %4008 = vmatprep.subr.mxu0 %v7311_v58 }
 0xf41   :  { %4009 = vmatpush3.msra.mxu0 %v3833_v39 }
 0xf42   :  { %4010 = vmatprep.subr.mxu0 %v7311_v58 }
 0xf43   :  { %4011 = vmatpush3.msra.mxu0 %v3832_v6 }
 0xf44   :  { %4012 = vmatprep.subr.mxu0 %v7311_v58 }
 0xf45   :  { %4013 = vmatpush3.msra.mxu0 %v3831_v10 }
 0xf46   :  { %4014 = vmatprep.subr.mxu0 %v7311_v58 }
 0xf47   :  { %4015 = vmatpush3.msra.mxu0 %v3830_v12 }
 0xf48   :  { %4016 = vmatprep.subr.mxu0 %v7311_v58 }
 0xf49   :  { %4017 = vmatpush3.msra.mxu0 %v3829_v30 }
 0xf4a   :  { %4018 = vmatprep.subr.mxu0 %v7311_v58 }
 0xf4b   :  { %4019 = vmatpush3.msra.mxu0 %v3828_v42 }
 0xf4c   :  { %4020 = vmatprep.subr.mxu0 %v7311_v58 }
 0xf4d   :  { %4021 = vmatpush3.msra.mxu0 %v3827_v13 }
 0xf4e   :  { %4022 = vmatprep.subr.mxu0 %v7311_v58 }
 0xf4f   :  { %4023 = vmatpush3.msra.mxu0 %v3826_v37 }
 0xf50   :  { %4024 = vmatprep.subr.mxu0 %v7311_v58 }
 0xf51   :  { %4025 = vmatpush3.msra.mxu0 %v3825_v41 }
 0xf52   :  { %4026 = vmatprep.subr.mxu0 %v7311_v58 }
 0xf53   :  { %4027 = vmatpush3.msra.mxu0 %v3824_v44 }
 0xf54   :  { %4028 = vmatprep.subr.mxu0 %v7311_v58 }
 0xf55   :  { %4029 = vmatpush3.msra.mxu0 %v3823_v26 }
 0xf56   :  { %4030 = vmatprep.subr.mxu0 %v7311_v58  ;;  %v2361_v58 = vadd.f32 %v7320_v16, %v7186_v9 }
 0xf57   :  { %4031 = vmatpush3.msra.mxu0 %v3822_v46 }
 0xff8   :  { %v3714_v57 = vpop.f32.mrf.mxu0  ;;  %v3785_v63 = vpop.f32.mrf.mxu1 }
 0xff9   :  { %v3790_v3 = vadd.f32 %v3714_v57, %v2246_v59  ;;  %v3792_v19 = vadd.f32 %v3785_v63, %v2359_v27 }
 0xffa   :  { %v3716_v2 = vpop.f32.mrf.mxu0  ;;  %v3787_v15 = vpop.f32.mrf.mxu1 }
 0xffb   :  { %v3979_v60 = vmul.f32 -1.442695, %v3790_v3  ;;  %v3791_v11 = vadd.f32 %v3716_v2, %v2248_v55  ;;  %v3793_v17 = vadd.f32 %v3787_v15, %v2361_v58 }
 0xffd   :  { %4288 = vpow2.f32 %v3979_v60  ;;  %v3980_v51 = vmul.f32 -1.442695, %v3791_v11  ;;  %v3981_v21 = vmul.f32 -1.442695, %v3793_v17 }
 0xfff   :  { %4290 = vpow2.f32 %v3980_v51 }
0x1000   :  { %4292 = vtanh.f32 %v3792_v19 }
0x1001   :  { %4294 = vpow2.f32 %v3981_v21 }
0x100a   :  { %v4289_v22 = vpop.eup %4288 }
0x100b   :  { %v3797_v7 = vadd.f32 1.0, %v4289_v22 }
0x100c   :  { %v4291_v24 = vpop.eup %4290 }
0x100d   :  { %4296 = vrcp.f32 %v3797_v7  ;;  %v3803_v1 = vadd.f32 1.0, %v4291_v24  ;;  %v4293_v32 = vpop.eup %4292 }
0x100e   :  { %v4295_v33 = vpop.eup %4294 }
0x100f   :  { %4298 = vrcp.f32 %v3803_v1  ;;  %v3810_v9 = vadd.f32 1.0, %v4295_v33 }
0x1011   :  { %4300 = vrcp.f32 %v3810_v9 }
0x101a   :  { %v4297_v34 = vpop.eup %4296 }
0x101b   :  { %v3815_v35 = vmul.f32 %v4297_v34, %v4293_v32 }
0x101c   :  { %v4299_v36 = vpop.eup %4298 }
0x101d   :  { %v3814_v62 = vmul.f32 %v4299_v36, %v6640_v0 }
0x101e   :  { %v4301_v20 = vpop.eup %4300 }
0x101f   :  { %v3816_v25 = vadd.f32 %v3815_v35, %v3814_v62 }
0x1021   :  { %4302 = vtanh.f32 %v3816_v25 }
0x102e   :  { %v4303_v48 = vpop.eup %4302 }
0x102f   :  { %v3818_v49 = vmul.f32 %v4303_v48, %v4301_v20 }
0x1031   :  { %4033 = vmatmul.mubr.f32.vlgmr.msra.gmra.mxu0 %v3818_v49 }
0x10f1   :  { %v3911_v43 = vpop.f32.mrf.mxu0 }
0x10f2   :  { %v3912_v8 = vadd.f32 %v3982_v28, %v3911_v43 }
0x10f3   :  { %v4034_v47 = vpop.f32.mrf.mxu0 }
0x10f4   :  { %3915 = vst [vmem:[#allocation17] sm:$0xff] %v3912_v8 }
0x10f5   :  { %4563 = shalt.err (!%p4560_p6)
}
0x10f6   :  { %3925 = dma.vmem_to_hbm [thread:$0]  %s3923_s21, 128, %s6683_s9, [#allocation8]  }
0x10f7   :  { %4580 = dma.done.wait [#allocation8], 128  }
0x10f8   :  { %4581 = vsyncadd [#allocation8], 4294967168 }
0x10f9   :  { %3929 = vsyncpa [#allocation7], 1 }
0x10fa   :  { %3930 = vsyncpa [#allocation10], 1 }
0x10fb   :  { %3931 = vsyncpa [#allocation13], 1 }
0x10fc   :  { %3932 = vsyncpa [#allocation16], 1 }
0x10fd   :  { %3933 = vsyncpa [#allocation8], 1 }

</bundles_post_ra>
